<compile_context>
chip_gen: v6e
topology: v6e:2x2x1
jax: 0.10.0
libtpu: 0.0.40
codegen_flags: <defaults>
</compile_context>

<pallas_src>
import jax
import jax.numpy as jnp
from jax import lax
from jax.experimental import pallas as pl
from jax.experimental.pallas import tpu as pltpu

EPS = 1e-5
VMEM_LIMIT = 48 * 1024 * 1024  # raise above v5e/v6e scoped defaults, < v7x 64 MiB


# ----------------------------------------------------------------------------
# Pallas kernels
# ----------------------------------------------------------------------------
def _conv1_kernel(x2_ref, x1_ref, upad_ref, wa_ref, wb_ref, b_ref,
                  y_ref, sum_ref, sq_ref):
    """conv1 with fused upsample+pad of x1, channel concat, bias, BN1 stats.

    x2_ref  : (1, H, W, Ca) bf16        skip connection (unpadded)
    x1_ref  : (1, Hin, Win, Cb) f32     half-res lower path (unpadded)
    upad_ref: ((H+2)*(W+2), Hin*Win) f32  padded bilinear-interp matrix
    wa_ref  : (3, 3*Ca, Cout) bf16      per-dy weight slabs for the x2 half
    wb_ref  : (3, 3*Cb, Cout) bf16      per-dy weight slabs for the x1 half
    b_ref   : (1, Cout) f32
    y_ref   : (1, H+2, W+2, Cout) bf16  PRE-PADDED output (halo ring = 0)
    sum_ref/sq_ref : (1, 1, Cout) f32   per-image channel sum / sum-of-squares
    """
    Hp, Wp, Cout = y_ref.shape[1], y_ref.shape[2], y_ref.shape[3]
    H, W = Hp - 2, Wp - 2
    Ca = x2_ref.shape[3]
    Hin, Win, Cb = x1_ref.shape[1], x1_ref.shape[2], x1_ref.shape[3]

    # Fused bilinear-2x upsample + F.pad + conv halo of x1: one f32 matmul
    # against the precomputed padded interpolation matrix (pad rows are 0).
    x1_flat = x1_ref[...].reshape(Hin * Win, Cb)
    x1p = jnp.dot(upad_ref[...], x1_flat,
                  preferred_element_type=jnp.float32)          # (Hp*Wp, Cb)
    x1p = x1p.reshape(Hp, Wp, Cb).astype(jnp.bfloat16)

    # x2's zero conv halo built in-kernel (no XLA pad pass).
    x2 = x2_ref[0]                                             # (H, W, Ca)
    zr = jnp.zeros((1, W, Ca), x2.dtype)
    zc = jnp.zeros((Hp, 1, Ca), x2.dtype)
    x2p = jnp.concatenate([zr, x2, zr], axis=0)
    x2p = jnp.concatenate([zc, x2p, zc], axis=1)               # (Hp, Wp, Ca)

    # Per-dy slab matmuls (K = 3*C); the channel concat of [x2, x1] is fused
    # as two accumulating dots per row instead of materializing the concat.
    acc = jnp.zeros((H * W, Cout), jnp.float32)
    for dy in range(3):
        ra = x2p[dy:dy + H, :, :]                              # (H, Wp, Ca)
        rb = x1p[dy:dy + H, :, :]
        slab_a = jnp.concatenate([ra[:, dx:dx + W, :] for dx in range(3)],
                                 axis=-1).reshape(H * W, 3 * Ca)
        slab_b = jnp.concatenate([rb[:, dx:dx + W, :] for dx in range(3)],
                                 axis=-1).reshape(H * W, 3 * Cb)
        acc = acc + jnp.dot(slab_a, wa_ref[dy],
                            preferred_element_type=jnp.float32)
        acc = acc + jnp.dot(slab_b, wb_ref[dy],
                            preferred_element_type=jnp.float32)
    acc = acc + b_ref[0, :][None, :]

    # Pre-padded output (zero halo) -> conv2 needs no jnp.pad round trip.
    inner = acc.reshape(H, W, Cout)
    zr = jnp.zeros((1, W, Cout), jnp.float32)
    zc = jnp.zeros((Hp, 1, Cout), jnp.float32)
    yp = jnp.concatenate([zr, inner, zr], axis=0)
    yp = jnp.concatenate([zc, yp, zc], axis=1)
    y_ref[...] = yp[None].astype(y_ref.dtype)

    # BN1 statistics in f32 from the un-rounded accumulator.
    sum_ref[0] = jnp.sum(acc, axis=0, keepdims=True)
    sq_ref[0] = jnp.sum(acc * acc, axis=0, keepdims=True)


def _conv2_kernel(y1_ref, scale_ref, shift_ref, w_ref, b_ref,
                  y_ref, sum_ref, sq_ref):
    """conv2 with fused BN1-affine + ReLU prologue, bias, BN2 stats.

    y1_ref : (1, H+2, W+2, Cin) bf16  pre-padded conv1 output (halo = 0)
    scale_ref/shift_ref : (1, Cin) f32   BN1 affine
    w_ref  : (3, 3*Cin, Cout) bf16    per-dy weight slabs
    b_ref  : (1, Cout) f32
    y_ref  : (1, H, W, Cout) bf16
    sum_ref/sq_ref : (1, 1, Cout) f32
    """
    H, W, Cout = y_ref.shape[1], y_ref.shape[2], y_ref.shape[3]
    Hp, Wp, Cin = y1_ref.shape[1], y1_ref.shape[2], y1_ref.shape[3]

    # BN1 + ReLU prologue in f32; in-kernel iota border mask restores exact
    # zero conv padding (relu(0*scale + shift) != 0 in general).
    a = y1_ref[0].astype(jnp.float32)
    a = jnp.maximum(a * scale_ref[0, :] + shift_ref[0, :], 0.0)
    row = lax.broadcasted_iota(jnp.int32, (Hp, Wp, 1), 0)
    col = lax.broadcasted_iota(jnp.int32, (Hp, Wp, 1), 1)
    interior = (row >= 1) & (row <= H) & (col >= 1) & (col <= W)
    a = jnp.where(interior, a, 0.0).astype(jnp.bfloat16)

    acc = jnp.zeros((H * W, Cout), jnp.float32)
    for dy in range(3):
        r = a[dy:dy + H, :, :]
        slab = jnp.concatenate([r[:, dx:dx + W, :] for dx in range(3)],
                               axis=-1).reshape(H * W, 3 * Cin)
        acc = acc + jnp.dot(slab, w_ref[dy],
                            preferred_element_type=jnp.float32)
    acc = acc + b_ref[0, :][None, :]

    y_ref[...] = acc.reshape(1, H, W, Cout).astype(y_ref.dtype)
    sum_ref[0] = jnp.sum(acc, axis=0, keepdims=True)
    sq_ref[0] = jnp.sum(acc * acc, axis=0, keepdims=True)


def _bn_relu_kernel(x_ref, scale_ref, shift_ref, o_ref):
    """Final BN2 + ReLU epilogue: y = relu(x*scale + shift); bf16 in, f32 out."""
    x = x_ref[...].astype(jnp.float32)
    y = x * scale_ref[0, :] + shift_ref[0, :]
    o_ref[...] = jnp.maximum(y, 0.0).astype(o_ref.dtype)


# ----------------------------------------------------------------------------
# pallas_call wrappers
# ----------------------------------------------------------------------------
def conv1_fused(x2_bf, x1_small, upad, wa, wb, b1):
    N, H, W, Ca = x2_bf.shape
    _, Hin, Win, Cb = x1_small.shape
    Cout = wa.shape[-1]
    Hp, Wp = H + 2, W + 2

    return pl.pallas_call(
        _conv1_kernel,
        out_shape=(
            jax.ShapeDtypeStruct((N, Hp, Wp, Cout), jnp.bfloat16),
            jax.ShapeDtypeStruct((N, 1, Cout), jnp.float32),
            jax.ShapeDtypeStruct((N, 1, Cout), jnp.float32),
        ),
        grid=(N,),
        in_specs=[
            pl.BlockSpec((1, H, W, Ca), lambda n: (n, 0, 0, 0)),
            pl.BlockSpec((1, Hin, Win, Cb), lambda n: (n, 0, 0, 0)),
            pl.BlockSpec((Hp * Wp, Hin * Win), lambda n: (0, 0)),
            pl.BlockSpec((3, 3 * Ca, Cout), lambda n: (0, 0, 0)),
            pl.BlockSpec((3, 3 * Cb, Cout), lambda n: (0, 0, 0)),
            pl.BlockSpec((1, Cout), lambda n: (0, 0)),
        ],
        out_specs=(
            pl.BlockSpec((1, Hp, Wp, Cout), lambda n: (n, 0, 0, 0)),
            pl.BlockSpec((1, 1, Cout), lambda n: (n, 0, 0)),
            pl.BlockSpec((1, 1, Cout), lambda n: (n, 0, 0)),
        ),
        compiler_params=pltpu.CompilerParams(
            dimension_semantics=("parallel",),
            vmem_limit_bytes=VMEM_LIMIT),
    )(x2_bf, x1_small, upad, wa, wb, b1.reshape(1, Cout))


def conv2_fused(y1p, scale1, shift1, w2s, b2):
    N, Hp, Wp, Cin = y1p.shape
    H, W = Hp - 2, Wp - 2
    Cout = w2s.shape[-1]

    return pl.pallas_call(
        _conv2_kernel,
        out_shape=(
            jax.ShapeDtypeStruct((N, H, W, Cout), jnp.bfloat16),
            jax.ShapeDtypeStruct((N, 1, Cout), jnp.float32),
            jax.ShapeDtypeStruct((N, 1, Cout), jnp.float32),
        ),
        grid=(N,),
        in_specs=[
            pl.BlockSpec((1, Hp, Wp, Cin), lambda n: (n, 0, 0, 0)),
            pl.BlockSpec((1, Cin), lambda n: (0, 0)),
            pl.BlockSpec((1, Cin), lambda n: (0, 0)),
            pl.BlockSpec((3, 3 * Cin, Cout), lambda n: (0, 0, 0)),
            pl.BlockSpec((1, Cout), lambda n: (0, 0)),
        ],
        out_specs=(
            pl.BlockSpec((1, H, W, Cout), lambda n: (n, 0, 0, 0)),
            pl.BlockSpec((1, 1, Cout), lambda n: (n, 0, 0)),
            pl.BlockSpec((1, 1, Cout), lambda n: (n, 0, 0)),
        ),
        compiler_params=pltpu.CompilerParams(
            dimension_semantics=("parallel",),
            vmem_limit_bytes=VMEM_LIMIT),
    )(y1p, scale1.reshape(1, Cin), shift1.reshape(1, Cin), w2s,
      b2.reshape(1, Cout))


def bn_relu_pallas(x, scale, shift):
    N, H, W, C = x.shape
    return pl.pallas_call(
        _bn_relu_kernel,
        out_shape=jax.ShapeDtypeStruct((N, H, W, C), jnp.float32),
        grid=(N,),
        in_specs=[
            pl.BlockSpec((1, H, W, C), lambda n: (n, 0, 0, 0)),
            pl.BlockSpec((1, C), lambda n: (0, 0)),
            pl.BlockSpec((1, C), lambda n: (0, 0)),
        ],
        out_specs=pl.BlockSpec((1, H, W, C), lambda n: (n, 0, 0, 0)),
        compiler_params=pltpu.CompilerParams(
            dimension_semantics=("parallel",),
            vmem_limit_bytes=VMEM_LIMIT),
    )(x, scale.reshape(1, C), shift.reshape(1, C))


# ----------------------------------------------------------------------------
# Host-side prep (tiny, trace-time / XLA ops)
# ----------------------------------------------------------------------------
def _interp_matrix(n_in, n_out):
    """1-D align_corners bilinear interpolation matrix (n_out, n_in), f32."""
    if n_in == 1:
        return jnp.ones((n_out, 1), jnp.float32)
    src = jnp.arange(n_out, dtype=jnp.float32) * (n_in - 1) / (n_out - 1)
    i0 = jnp.clip(jnp.floor(src).astype(jnp.int32), 0, n_in - 1)
    i1 = jnp.minimum(i0 + 1, n_in - 1)
    frac = src - i0.astype(jnp.float32)
    m = jnp.zeros((n_out, n_in), jnp.float32)
    rows = jnp.arange(n_out)
    m = m.at[rows, i0].add(1.0 - frac)
    m = m.at[rows, i1].add(frac)
    return m


def _padded_upsample_matrix(h_in, w_in, h_out, w_out, H, W, diffY, diffX):
    """((H+2)*(W+2), h_in*w_in) matrix: bilinear 2x upsample of x1, embedded
    at the F.pad alignment offset inside the conv-halo'd (H+2, W+2) frame.
    Pad rows are all-zero, so the conv's zero padding stays exact."""
    R = _interp_matrix(h_in, h_out)                    # (h_out, h_in)
    C = _interp_matrix(w_in, w_out)                    # (w_out, w_in)
    U = jnp.einsum("oh,pw->ophw", R, C).reshape(h_out, w_out, h_in * w_in)
    py = 1 + diffY // 2
    px = 1 + diffX // 2
    full = jnp.zeros((H + 2, W + 2, h_in * w_in), jnp.float32)
    full = full.at[py:py + h_out, px:px + w_out, :].set(U)
    return full.reshape((H + 2) * (W + 2), h_in * w_in)


def _bn_affine_from_sums(s, q, per_block, gamma, beta):
    """Training-mode BN affine from per-image sums (blockwise-shifted combine
    to reduce E[x^2]-E[x]^2 cancellation). s, q: (N, 1, C) f32."""
    nb = s.shape[0]
    mean_b = s[:, 0, :] / per_block                                # (N, C)
    m2_b = jnp.maximum(q[:, 0, :] - per_block * mean_b * mean_b, 0.0)
    mean = jnp.mean(mean_b, axis=0)                                # (C,)
    m2 = jnp.sum(m2_b, axis=0) + per_block * jnp.sum(
        (mean_b - mean[None, :]) ** 2, axis=0)
    var = jnp.maximum(m2 / (nb * per_block), 0.0)
    scale = gamma * lax.rsqrt(var + EPS)
    shift = beta - mean * scale
    return scale, shift


def up_forward(x1_nchw, x2_nchw, params):
    """Matches Up.forward(x1, x2) with bilinear=True. NCHW in, NCHW out."""
    x1 = jnp.transpose(x1_nchw, (0, 2, 3, 1)).astype(jnp.float32)  # NHWC
    x2 = jnp.transpose(x2_nchw, (0, 2, 3, 1)).astype(jnp.float32)

    N, H, W, Ca = x2.shape
    _, Hin, Win, Cb = x1.shape
    Ho, Wo = 2 * Hin, 2 * Win
    diffY, diffX = H - Ho, W - Wo

    upad = _padded_upsample_matrix(Hin, Win, Ho, Wo, H, W, diffY, diffX)

    p = params
    Cout = p["w1"].shape[-1]
    w1_bf = p["w1"].astype(jnp.bfloat16)
    w2_bf = p["w2"].astype(jnp.bfloat16)
    # Per-dy weight slabs: (3, 3*Cin, Cout), k ordered as (dx, cin).
    wa = w1_bf[:, :, :Ca, :].reshape(3, 3 * Ca, Cout)   # multiplies x2 half
    wb = w1_bf[:, :, Ca:, :].reshape(3, 3 * Cb, Cout)   # multiplies x1 half
    w2s = w2_bf.reshape(3, 3 * Cout, Cout)

    count = H * W  # per-image pixel count

    # conv1: fused upsample+pad of x1, concat, bias, BN1 stats; padded output.
    y1p, s1, q1 = conv1_fused(x2.astype(jnp.bfloat16), x1, upad, wa, wb,
                              p["b1"])
    scale1, shift1 = _bn_affine_from_sums(s1, q1, count, p["g1"], p["be1"])

    # conv2: fused BN1+ReLU prologue (iota border mask), bias, BN2 stats.
    y2, s2, q2 = conv2_fused(y1p, scale1, shift1, w2s, p["b2"])
    scale2, shift2 = _bn_affine_from_sums(s2, q2, count, p["g2"], p["be2"])

    # Final BN2 + ReLU (stats span all batches, so it cannot fold into conv2).
    out = bn_relu_pallas(y2, scale2, shift2)
    # TODO(synk): keep NHWC end-to-end in a real pipeline; this transpose is a
    # full extra HBM pass on the output.
    return jnp.transpose(out, (0, 3, 1, 2))


# ----------------------------------------------------------------------------
# Pure-JAX reference (module semantics; mirrors the kernel's bf16 storage of
# y1/y2 and bf16 matmul operands with f32 accumulation / BN math).
# ----------------------------------------------------------------------------
def upsample_bilinear_2x_align_corners(x_nhwc):
    N, H, W, C = x_nhwc.shape
    Ho, Wo = 2 * H, 2 * W

    def coords(n_in, n_out):
        if n_in == 1:
            return (jnp.zeros((n_out,), jnp.int32),
                    jnp.zeros((n_out,), jnp.int32),
                    jnp.zeros((n_out,), jnp.float32))
        src = jnp.arange(n_out, dtype=jnp.float32) * (n_in - 1) / (n_out - 1)
        i0 = jnp.clip(jnp.floor(src).astype(jnp.int32), 0, n_in - 1)
        i1 = jnp.minimum(i0 + 1, n_in - 1)
        return i0, i1, src - i0.astype(jnp.float32)

    y0, y1, wy = coords(H, Ho)
    x0, x1, wx = coords(W, Wo)
    rows = (x_nhwc[:, y0] * (1.0 - wy)[None, :, None, None]
            + x_nhwc[:, y1] * wy[None, :, None, None])
    return (rows[:, :, x0] * (1.0 - wx)[None, None, :, None]
            + rows[:, :, x1] * wx[None, None, :, None])


def _conv3x3_bf16_ref(x_f32, w_f32, b):
    out = lax.conv_general_dilated(
        x_f32.astype(jnp.bfloat16), w_f32.astype(jnp.bfloat16),
        window_strides=(1, 1), padding=((1, 1), (1, 1)),
        dimension_numbers=("NHWC", "HWIO", "NHWC"),
        preferred_element_type=jnp.float32)
    return out + b[None, None, None, :]


def _bn_affine_ref(y, gamma, beta):
    mean = jnp.mean(y, axis=(0, 1, 2))
    var = jnp.maximum(jnp.mean(y * y, axis=(0, 1, 2)) - mean * mean, 0.0)
    scale = gamma * lax.rsqrt(var + EPS)
    shift = beta - mean * scale
    return scale, shift


def up_forward_ref(x1_nchw, x2_nchw, p):
    x1 = jnp.transpose(x1_nchw, (0, 2, 3, 1))
    x2 = jnp.transpose(x2_nchw, (0, 2, 3, 1))
    x1 = upsample_bilinear_2x_align_corners(x1)
    diffY = x2.shape[1] - x1.shape[1]
    diffX = x2.shape[2] - x1.shape[2]
    x1 = jnp.pad(x1, ((0, 0),
                      (diffY // 2, diffY - diffY // 2),
                      (diffX // 2, diffX - diffX // 2),
                      (0, 0)))
    x = jnp.concatenate([x2, x1], axis=-1)

    y1 = _conv3x3_bf16_ref(x, p["w1"], p["b1"])
    s, t = _bn_affine_ref(y1, p["g1"], p["be1"])
    a1 = jnp.maximum(
        y1.astype(jnp.bfloat16).astype(jnp.float32) * s + t, 0.0)
    y2 = _conv3x3_bf16_ref(a1, p["w2"], p["b2"])
    s, t = _bn_affine_ref(y2, p["g2"], p["be2"])
    out = jnp.maximum(
        y2.astype(jnp.bfloat16).astype(jnp.float32) * s + t, 0.0)
    return jnp.transpose(out, (0, 3, 1, 2))


# ----------------------------------------------------------------------------
def make_params(key, in_ch, out_ch):
    """DoubleConv(in_ch, out_ch) params. Conv weights stored HWIO (f32)."""
    k = jax.random.split(key, 6)
    w1 = jax.random.normal(k[0], (3, 3, in_ch, out_ch), jnp.float32) * 0.1
    b1 = jax.random.normal(k[1], (out_ch,), jnp.float32) * 0.1
    w2 = jax.random.normal(k[2], (3, 3, out_ch, out_ch), jnp.float32) * 0.1
    b2 = jax.random.normal(k[3], (out_ch,), jnp.float32) * 0.1
    g1 = 1.0 + 0.1 * jax.random.normal(k[4], (out_ch,), jnp.float32)
    be1 = 0.1 * jax.random.normal(k[5], (out_ch,), jnp.float32)
    g2 = jnp.ones((out_ch,), jnp.float32)
    be2 = jnp.zeros((out_ch,), jnp.float32)
    return {"w1": w1, "b1": b1, "g1": g1, "be1": be1,
            "w2": w2, "b2": b2, "g2": g2, "be2": be2}


if __name__ == "__main__":
    key = jax.random.PRNGKey(0)
    k1, k2, k3 = jax.random.split(key, 3)

    in_ch, out_ch = 8, 4          # Up(in_ch=8, out_ch=4, bilinear=True)
    N, H2, W2 = 2, 16, 16
    # x1: level below (in_ch//2 channels, half res); x2: skip (full res).
    x1 = jax.random.normal(k1, (N, in_ch // 2, H2 // 2, W2 // 2), jnp.float32)
    x2 = jax.random.normal(k2, (N, in_ch // 2, H2, W2), jnp.float32)
    params = make_params(k3, in_ch, out_ch)

    up_fn = jax.jit(up_forward)
    out = jax.block_until_ready(up_fn(x1, x2, params))
    ref = jax.block_until_ready(up_forward_ref(x1, x2, params))

    assert out.shape == (N, out_ch, H2, W2), out.shape
    # Tolerance covers bf16 operand rounding differences (slab matmuls vs XLA
    # conv, matmul-based vs gather-based bilinear interpolation).
    assert jnp.allclose(out, ref, rtol=2e-2, atol=2e-2), (
        float(jnp.max(jnp.abs(out - ref))))

    print("KERNEL_OK")
</pallas_src>

<mosaic_0001>
module attributes {stable_mosaic.version = 11 : i64} {
  func.func private @main(%arg0: i32) attributes {dimension_semantics = [#tpu.dimension_semantics<core_parallel>], iteration_bounds = array<i64: 2>, tpu.core_type = #tpu.core_type<sc_scalar_subcore>, window_params = []} {
    return
  }
}

module attributes {stable_mosaic.version = 11 : i64} {
  func.func private @main(%arg0: i32) attributes {dimension_semantics = [#tpu.dimension_semantics<core_parallel>], iteration_bounds = array<i64: 2>, tpu.core_type = #tpu.core_type<sc_scalar_subcore>, window_params = []} {
    return
  }
}

module attributes {stable_mosaic.version = 11 : i64} {
  func.func @_conv2_kernel(%arg0: i32, %arg1: memref<1x18x18x4xbf16, #tpu.memory_space<vmem>>, %arg2: memref<1x4xf32, #tpu.memory_space<vmem>>, %arg3: memref<1x4xf32, #tpu.memory_space<vmem>>, %arg4: memref<3x12x4xbf16, #tpu.memory_space<vmem>>, %arg5: memref<1x4xf32, #tpu.memory_space<vmem>>, %arg6: memref<1x16x16x4xbf16, #tpu.memory_space<vmem>>, %arg7: memref<1x1x4xf32, #tpu.memory_space<vmem>>, %arg8: memref<1x1x4xf32, #tpu.memory_space<vmem>>) attributes {dimension_semantics = [#tpu.dimension_semantics<parallel>], iteration_bounds = array<i64: 2>, scalar_prefetch = 0 : i64, scratch_operands = 0 : i64, tpu.core_type = #tpu.core_type<tc>, window_params = [{transform_indices = @transform_0, window_bounds = array<i64: 1, 18, 18, 4>}, {pipeline_mode = #tpu.pipeline_mode<synchronous>, transform_indices = @transform_1, window_bounds = array<i64: 1, 4>}, {pipeline_mode = #tpu.pipeline_mode<synchronous>, transform_indices = @transform_2, window_bounds = array<i64: 1, 4>}, {pipeline_mode = #tpu.pipeline_mode<synchronous>, transform_indices = @transform_3, window_bounds = array<i64: 3, 12, 4>}, {pipeline_mode = #tpu.pipeline_mode<synchronous>, transform_indices = @transform_4, window_bounds = array<i64: 1, 4>}, {transform_indices = @transform_5, window_bounds = array<i64: 1, 16, 16, 4>}, {transform_indices = @transform_6, window_bounds = array<i64: 1, 1, 4>}, {transform_indices = @transform_7, window_bounds = array<i64: 1, 1, 4>}]} {
    %c0 = arith.constant 0 : index
    %c0_0 = arith.constant 0 : index
    %c0_1 = arith.constant 0 : index
    %c0_2 = arith.constant 0 : index
    %0 = vector.load %arg1[%c0, %c0_0, %c0_1, %c0_2] : memref<1x18x18x4xbf16, #tpu.memory_space<vmem>>, vector<1x18x18x4xbf16>
    %1 = vector.shape_cast %0 : vector<1x18x18x4xbf16> to vector<18x18x4xbf16>
    %2 = arith.extf %1 : vector<18x18x4xbf16> to vector<18x18x4xf32>
    %c0_3 = arith.constant 0 : index
    %c0_4 = arith.constant 0 : index
    %3 = vector.load %arg2[%c0_3, %c0_4] : memref<1x4xf32, #tpu.memory_space<vmem>>, vector<1x4xf32>
    %4 = vector.shape_cast %3 : vector<1x4xf32> to vector<4xf32>
    %5 = vector.shape_cast %4 : vector<4xf32> to vector<1x1x4xf32>
    %6 = vector.broadcast %5 : vector<1x1x4xf32> to vector<18x18x4xf32>
    %7 = arith.mulf %2, %6 : vector<18x18x4xf32>
    %c0_5 = arith.constant 0 : index
    %c0_6 = arith.constant 0 : index
    %8 = vector.load %arg3[%c0_5, %c0_6] : memref<1x4xf32, #tpu.memory_space<vmem>>, vector<1x4xf32>
    %9 = vector.shape_cast %8 : vector<1x4xf32> to vector<4xf32>
    %10 = vector.shape_cast %9 : vector<4xf32> to vector<1x1x4xf32>
    %11 = vector.broadcast %10 : vector<1x1x4xf32> to vector<18x18x4xf32>
    %12 = arith.addf %7, %11 : vector<18x18x4xf32>
    %cst = arith.constant 0.000000e+00 : f32
    %13 = vector.broadcast %cst : f32 to vector<18x18x4xf32>
    %14 = arith.maximumf %12, %13 : vector<18x18x4xf32>
    %15 = tpu.iota {dimensions = array<i32: 0>} : vector<18x18x1xi32>
    %16 = tpu.iota {dimensions = array<i32: 1>} : vector<18x18x1xi32>
    %c1_i32 = arith.constant 1 : i32
    %17 = vector.broadcast %c1_i32 : i32 to vector<18x18x1xi32>
    %18 = arith.cmpi sge, %15, %17 : vector<18x18x1xi32>
    %c16_i32 = arith.constant 16 : i32
    %19 = vector.broadcast %c16_i32 : i32 to vector<18x18x1xi32>
    %20 = arith.cmpi sle, %15, %19 : vector<18x18x1xi32>
    %21 = arith.andi %18, %20 : vector<18x18x1xi1>
    %c1_i32_7 = arith.constant 1 : i32
    %22 = vector.broadcast %c1_i32_7 : i32 to vector<18x18x1xi32>
    %23 = arith.cmpi sge, %16, %22 : vector<18x18x1xi32>
    %24 = arith.andi %21, %23 : vector<18x18x1xi1>
    %c16_i32_8 = arith.constant 16 : i32
    %25 = vector.broadcast %c16_i32_8 : i32 to vector<18x18x1xi32>
    %26 = arith.cmpi sle, %16, %25 : vector<18x18x1xi32>
    %27 = arith.andi %24, %26 : vector<18x18x1xi1>
    %cst_9 = arith.constant 0.000000e+00 : f32
    %28 = vector.shape_cast %27 : vector<18x18x1xi1> to vector<18x18x1xi1>
    %29 = vector.broadcast %28 : vector<18x18x1xi1> to vector<18x18x4xi1>
    %30 = vector.broadcast %cst_9 : f32 to vector<18x18x4xf32>
    %31 = arith.select %29, %14, %30 : vector<18x18x4xi1>, vector<18x18x4xf32>
    %32 = arith.truncf %31 : vector<18x18x4xf32> to vector<18x18x4xbf16>
    %cst_10 = arith.constant 0.000000e+00 : f32
    %33 = vector.broadcast %cst_10 : f32 to vector<256x4xf32>
    %34 = vector.extract_strided_slice %32 {offsets = [0, 0, 0], sizes = [16, 18, 4], strides = [1, 1, 1]} : vector<18x18x4xbf16> to vector<16x18x4xbf16>
    %35 = vector.extract_strided_slice %34 {offsets = [0, 0, 0], sizes = [16, 16, 4], strides = [1, 1, 1]} : vector<16x18x4xbf16> to vector<16x16x4xbf16>
    %36 = vector.extract_strided_slice %34 {offsets = [0, 1, 0], sizes = [16, 16, 4], strides = [1, 1, 1]} : vector<16x18x4xbf16> to vector<16x16x4xbf16>
    %37 = vector.extract_strided_slice %34 {offsets = [0, 2, 0], sizes = [16, 16, 4], strides = [1, 1, 1]} : vector<16x18x4xbf16> to vector<16x16x4xbf16>
    %38 = tpu.concatenate %35, %36, %37 in 2 : vector<16x16x4xbf16>, vector<16x16x4xbf16>, vector<16x16x4xbf16> -> vector<16x16x12xbf16>
    %39 = vector.shape_cast %38 : vector<16x16x12xbf16> to vector<256x12xbf16>
    %c0_11 = arith.constant 0 : index
    %c0_12 = arith.constant 0 : index
    %c0_13 = arith.constant 0 : index
    %40 = vector.load %arg4[%c0_11, %c0_12, %c0_13] : memref<3x12x4xbf16, #tpu.memory_space<vmem>>, vector<1x12x4xbf16>
    %41 = vector.shape_cast %40 : vector<1x12x4xbf16> to vector<12x4xbf16>
    %cst_14 = arith.constant dense<0.000000e+00> : vector<256x4xf32>
    %42 = tpu.matmul %39, %41, %cst_14 {dimension_numbers = #tpu.dot_dimension_numbers<[1], [0], [0], [1], [0, 0, 1, 1], [], []>} : vector<256x12xbf16>, vector<12x4xbf16>, vector<256x4xf32> -> vector<256x4xf32>
    %43 = arith.addf %33, %42 : vector<256x4xf32>
    %44 = vector.extract_strided_slice %32 {offsets = [1, 0, 0], sizes = [16, 18, 4], strides = [1, 1, 1]} : vector<18x18x4xbf16> to vector<16x18x4xbf16>
    %45 = vector.extract_strided_slice %44 {offsets = [0, 0, 0], sizes = [16, 16, 4], strides = [1, 1, 1]} : vector<16x18x4xbf16> to vector<16x16x4xbf16>
    %46 = vector.extract_strided_slice %44 {offsets = [0, 1, 0], sizes = [16, 16, 4], strides = [1, 1, 1]} : vector<16x18x4xbf16> to vector<16x16x4xbf16>
    %47 = vector.extract_strided_slice %44 {offsets = [0, 2, 0], sizes = [16, 16, 4], strides = [1, 1, 1]} : vector<16x18x4xbf16> to vector<16x16x4xbf16>
    %48 = tpu.concatenate %45, %46, %47 in 2 : vector<16x16x4xbf16>, vector<16x16x4xbf16>, vector<16x16x4xbf16> -> vector<16x16x12xbf16>
    %49 = vector.shape_cast %48 : vector<16x16x12xbf16> to vector<256x12xbf16>
    %c1 = arith.constant 1 : index
    %c0_15 = arith.constant 0 : index
    %c0_16 = arith.constant 0 : index
    %50 = vector.load %arg4[%c1, %c0_15, %c0_16] : memref<3x12x4xbf16, #tpu.memory_space<vmem>>, vector<1x12x4xbf16>
    %51 = vector.shape_cast %50 : vector<1x12x4xbf16> to vector<12x4xbf16>
    %cst_17 = arith.constant dense<0.000000e+00> : vector<256x4xf32>
    %52 = tpu.matmul %49, %51, %cst_17 {dimension_numbers = #tpu.dot_dimension_numbers<[1], [0], [0], [1], [0, 0, 1, 1], [], []>} : vector<256x12xbf16>, vector<12x4xbf16>, vector<256x4xf32> -> vector<256x4xf32>
    %53 = arith.addf %43, %52 : vector<256x4xf32>
    %54 = vector.extract_strided_slice %32 {offsets = [2, 0, 0], sizes = [16, 18, 4], strides = [1, 1, 1]} : vector<18x18x4xbf16> to vector<16x18x4xbf16>
    %55 = vector.extract_strided_slice %54 {offsets = [0, 0, 0], sizes = [16, 16, 4], strides = [1, 1, 1]} : vector<16x18x4xbf16> to vector<16x16x4xbf16>
    %56 = vector.extract_strided_slice %54 {offsets = [0, 1, 0], sizes = [16, 16, 4], strides = [1, 1, 1]} : vector<16x18x4xbf16> to vector<16x16x4xbf16>
    %57 = vector.extract_strided_slice %54 {offsets = [0, 2, 0], sizes = [16, 16, 4], strides = [1, 1, 1]} : vector<16x18x4xbf16> to vector<16x16x4xbf16>
    %58 = tpu.concatenate %55, %56, %57 in 2 : vector<16x16x4xbf16>, vector<16x16x4xbf16>, vector<16x16x4xbf16> -> vector<16x16x12xbf16>
    %59 = vector.shape_cast %58 : vector<16x16x12xbf16> to vector<256x12xbf16>
    %c2 = arith.constant 2 : index
    %c0_18 = arith.constant 0 : index
    %c0_19 = arith.constant 0 : index
    %60 = vector.load %arg4[%c2, %c0_18, %c0_19] : memref<3x12x4xbf16, #tpu.memory_space<vmem>>, vector<1x12x4xbf16>
    %61 = vector.shape_cast %60 : vector<1x12x4xbf16> to vector<12x4xbf16>
    %cst_20 = arith.constant dense<0.000000e+00> : vector<256x4xf32>
    %62 = tpu.matmul %59, %61, %cst_20 {dimension_numbers = #tpu.dot_dimension_numbers<[1], [0], [0], [1], [0, 0, 1, 1], [], []>} : vector<256x12xbf16>, vector<12x4xbf16>, vector<256x4xf32> -> vector<256x4xf32>
    %63 = arith.addf %53, %62 : vector<256x4xf32>
    %c0_21 = arith.constant 0 : index
    %c0_22 = arith.constant 0 : index
    %64 = vector.load %arg5[%c0_21, %c0_22] : memref<1x4xf32, #tpu.memory_space<vmem>>, vector<1x4xf32>
    %65 = vector.shape_cast %64 : vector<1x4xf32> to vector<4xf32>
    %66 = vector.shape_cast %65 : vector<4xf32> to vector<1x4xf32>
    %67 = vector.broadcast %66 : vector<1x4xf32> to vector<256x4xf32>
    %68 = arith.addf %63, %67 : vector<256x4xf32>
    %69 = vector.shape_cast %68 : vector<256x4xf32> to vector<1x16x16x4xf32>
    %70 = arith.truncf %69 : vector<1x16x16x4xf32> to vector<1x16x16x4xbf16>
    %c0_23 = arith.constant 0 : index
    %c0_24 = arith.constant 0 : index
    %c0_25 = arith.constant 0 : index
    %c0_26 = arith.constant 0 : index
    %71 = vector.load %arg6[%c0_23, %c0_24, %c0_25, %c0_26] : memref<1x16x16x4xbf16, #tpu.memory_space<vmem>>, vector<1x16x16x4xbf16>
    tpu.vector_store %arg6[%c0_23, %c0_24, %c0_25, %c0_26], %70 {strides = array<i32>} : memref<1x16x16x4xbf16, #tpu.memory_space<vmem>>, vector<1x16x16x4xbf16>,
    %cst_27 = arith.constant dense<0.000000e+00> : vector<4xf32>
    %72 = vector.multi_reduction <add>, %68, %cst_27 [0] : vector<256x4xf32> to vector<4xf32>
    %73 = vector.shape_cast %72 : vector<4xf32> to vector<1x4xf32>
    %c0_28 = arith.constant 0 : index
    %c0_29 = arith.constant 0 : index
    %c0_30 = arith.constant 0 : index
    %74 = vector.load %arg7[%c0_28, %c0_29, %c0_30] : memref<1x1x4xf32, #tpu.memory_space<vmem>>, vector<1x1x4xf32>
    %75 = vector.shape_cast %74 : vector<1x1x4xf32> to vector<1x4xf32>
    %76 = vector.shape_cast %73 : vector<1x4xf32> to vector<1x1x4xf32>
    tpu.vector_store %arg7[%c0_28, %c0_29, %c0_30], %76 {strides = array<i32>} : memref<1x1x4xf32, #tpu.memory_space<vmem>>, vector<1x1x4xf32>,
    %77 = arith.mulf %68, %68 : vector<256x4xf32>
    %cst_31 = arith.constant dense<0.000000e+00> : vector<4xf32>
    %78 = vector.multi_reduction <add>, %77, %cst_31 [0] : vector<256x4xf32> to vector<4xf32>
    %79 = vector.shape_cast %78 : vector<4xf32> to vector<1x4xf32>
    %c0_32 = arith.constant 0 : index
    %c0_33 = arith.constant 0 : index
    %c0_34 = arith.constant 0 : index
    %80 = vector.load %arg8[%c0_32, %c0_33, %c0_34] : memref<1x1x4xf32, #tpu.memory_space<vmem>>, vector<1x1x4xf32>
    %81 = vector.shape_cast %80 : vector<1x1x4xf32> to vector<1x4xf32>
    %82 = vector.shape_cast %79 : vector<1x4xf32> to vector<1x1x4xf32>
    tpu.vector_store %arg8[%c0_32, %c0_33, %c0_34], %82 {strides = array<i32>} : memref<1x1x4xf32, #tpu.memory_space<vmem>>, vector<1x1x4xf32>,
    return
  }
  func.func @transform_0(%arg0: i32) -> (i32, i32, i32, i32) {
    %c0_i32 = arith.constant 0 : i32
    %c0_i32_0 = arith.constant 0 : i32
    %c0_i32_1 = arith.constant 0 : i32
    %c0_i32_2 = arith.constant 0 : i32
    return %arg0, %c0_i32, %c0_i32_0, %c0_i32_1 : i32, i32, i32, i32
  }
  func.func @transform_1(%arg0: i32) -> (i32, i32) {
    %c0_i32 = arith.constant 0 : i32
    %c0_i32_0 = arith.constant 0 : i32
    %c0_i32_1 = arith.constant 0 : i32
    return %c0_i32, %c0_i32_0 : i32, i32
  }
  func.func @transform_2(%arg0: i32) -> (i32, i32) {
    %c0_i32 = arith.constant 0 : i32
    %c0_i32_0 = arith.constant 0 : i32
    %c0_i32_1 = arith.constant 0 : i32
    return %c0_i32, %c0_i32_0 : i32, i32
  }
  func.func @transform_3(%arg0: i32) -> (i32, i32, i32) {
    %c0_i32 = arith.constant 0 : i32
    %c0_i32_0 = arith.constant 0 : i32
    %c0_i32_1 = arith.constant 0 : i32
    %c0_i32_2 = arith.constant 0 : i32
    return %c0_i32, %c0_i32_0, %c0_i32_1 : i32, i32, i32
  }
  func.func @transform_4(%arg0: i32) -> (i32, i32) {
    %c0_i32 = arith.constant 0 : i32
    %c0_i32_0 = arith.constant 0 : i32
    %c0_i32_1 = arith.constant 0 : i32
    return %c0_i32, %c0_i32_0 : i32, i32
  }
  func.func @transform_5(%arg0: i32) -> (i32, i32, i32, i32) {
    %c0_i32 = arith.constant 0 : i32
    %c0_i32_0 = arith.constant 0 : i32
    %c0_i32_1 = arith.constant 0 : i32
    %c0_i32_2 = arith.constant 0 : i32
    return %arg0, %c0_i32, %c0_i32_0, %c0_i32_1 : i32, i32, i32, i32
  }
  func.func @transform_6(%arg0: i32) -> (i32, i32, i32) {
    %c0_i32 = arith.constant 0 : i32
    %c0_i32_0 = arith.constant 0 : i32
    %c0_i32_1 = arith.constant 0 : i32
    return %arg0, %c0_i32, %c0_i32_0 : i32, i32, i32
  }
  func.func @transform_7(%arg0: i32) -> (i32, i32, i32) {
    %c0_i32 = arith.constant 0 : i32
    %c0_i32_0 = arith.constant 0 : i32
    %c0_i32_1 = arith.constant 0 : i32
    return %arg0, %c0_i32, %c0_i32_0 : i32, i32, i32
  }
}

module attributes {stable_mosaic.version = 11 : i64} {
  func.func @_bn_relu_kernel(%arg0: i32, %arg1: memref<1x16x16x4xbf16, #tpu.memory_space<vmem>>, %arg2: memref<1x4xf32, #tpu.memory_space<vmem>>, %arg3: memref<1x4xf32, #tpu.memory_space<vmem>>, %arg4: memref<1x16x16x4xf32, #tpu.memory_space<vmem>>) attributes {dimension_semantics = [#tpu.dimension_semantics<parallel>], iteration_bounds = array<i64: 2>, scalar_prefetch = 0 : i64, scratch_operands = 0 : i64, tpu.core_type = #tpu.core_type<tc>, window_params = [{transform_indices = @transform_0, window_bounds = array<i64: 1, 16, 16, 4>}, {pipeline_mode = #tpu.pipeline_mode<synchronous>, transform_indices = @transform_1, window_bounds = array<i64: 1, 4>}, {pipeline_mode = #tpu.pipeline_mode<synchronous>, transform_indices = @transform_2, window_bounds = array<i64: 1, 4>}, {transform_indices = @transform_3, window_bounds = array<i64: 1, 16, 16, 4>}]} {
    %c0 = arith.constant 0 : index
    %c0_0 = arith.constant 0 : index
    %c0_1 = arith.constant 0 : index
    %c0_2 = arith.constant 0 : index
    %0 = vector.load %arg1[%c0, %c0_0, %c0_1, %c0_2] : memref<1x16x16x4xbf16, #tpu.memory_space<vmem>>, vector<1x16x16x4xbf16>
    %1 = arith.extf %0 : vector<1x16x16x4xbf16> to vector<1x16x16x4xf32>
    %c0_3 = arith.constant 0 : index
    %c0_4 = arith.constant 0 : index
    %2 = vector.load %arg2[%c0_3, %c0_4] : memref<1x4xf32, #tpu.memory_space<vmem>>, vector<1x4xf32>
    %3 = vector.shape_cast %2 : vector<1x4xf32> to vector<4xf32>
    %4 = vector.shape_cast %3 : vector<4xf32> to vector<1x1x1x4xf32>
    %5 = vector.broadcast %4 : vector<1x1x1x4xf32> to vector<1x16x16x4xf32>
    %6 = arith.mulf %1, %5 : vector<1x16x16x4xf32>
    %c0_5 = arith.constant 0 : index
    %c0_6 = arith.constant 0 : index
    %7 = vector.load %arg3[%c0_5, %c0_6] : memref<1x4xf32, #tpu.memory_space<vmem>>, vector<1x4xf32>
    %8 = vector.shape_cast %7 : vector<1x4xf32> to vector<4xf32>
    %9 = vector.shape_cast %8 : vector<4xf32> to vector<1x1x1x4xf32>
    %10 = vector.broadcast %9 : vector<1x1x1x4xf32> to vector<1x16x16x4xf32>
    %11 = arith.addf %6, %10 : vector<1x16x16x4xf32>
    %cst = arith.constant 0.000000e+00 : f32
    %12 = vector.broadcast %cst : f32 to vector<1x16x16x4xf32>
    %13 = arith.maximumf %11, %12 : vector<1x16x16x4xf32>
    %c0_7 = arith.constant 0 : index
    %c0_8 = arith.constant 0 : index
    %c0_9 = arith.constant 0 : index
    %c0_10 = arith.constant 0 : index
    %14 = vector.load %arg4[%c0_7, %c0_8, %c0_9, %c0_10] : memref<1x16x16x4xf32, #tpu.memory_space<vmem>>, vector<1x16x16x4xf32>
    tpu.vector_store %arg4[%c0_7, %c0_8, %c0_9, %c0_10], %13 {strides = array<i32>} : memref<1x16x16x4xf32, #tpu.memory_space<vmem>>, vector<1x16x16x4xf32>,
    return
  }
  func.func @transform_0(%arg0: i32) -> (i32, i32, i32, i32) {
    %c0_i32 = arith.constant 0 : i32
    %c0_i32_0 = arith.constant 0 : i32
    %c0_i32_1 = arith.constant 0 : i32
    %c0_i32_2 = arith.constant 0 : i32
    return %arg0, %c0_i32, %c0_i32_0, %c0_i32_1 : i32, i32, i32, i32
  }
  func.func @transform_1(%arg0: i32) -> (i32, i32) {
    %c0_i32 = arith.constant 0 : i32
    %c0_i32_0 = arith.constant 0 : i32
    %c0_i32_1 = arith.constant 0 : i32
    return %c0_i32, %c0_i32_0 : i32, i32
  }
  func.func @transform_2(%arg0: i32) -> (i32, i32) {
    %c0_i32 = arith.constant 0 : i32
    %c0_i32_0 = arith.constant 0 : i32
    %c0_i32_1 = arith.constant 0 : i32
    return %c0_i32, %c0_i32_0 : i32, i32
  }
  func.func @transform_3(%arg0: i32) -> (i32, i32, i32, i32) {
    %c0_i32 = arith.constant 0 : i32
    %c0_i32_0 = arith.constant 0 : i32
    %c0_i32_1 = arith.constant 0 : i32
    %c0_i32_2 = arith.constant 0 : i32
    return %arg0, %c0_i32, %c0_i32_0, %c0_i32_1 : i32, i32, i32, i32
  }
}

module attributes {stable_mosaic.version = 11 : i64} {
  func.func @_conv1_kernel(%arg0: i32, %arg1: memref<1x16x16x4xbf16, #tpu.memory_space<vmem>>, %arg2: memref<1x8x8x4xf32, #tpu.memory_space<vmem>>, %arg3: memref<324x64xf32, #tpu.memory_space<vmem>>, %arg4: memref<3x12x4xbf16, #tpu.memory_space<vmem>>, %arg5: memref<3x12x4xbf16, #tpu.memory_space<vmem>>, %arg6: memref<1x4xf32, #tpu.memory_space<vmem>>, %arg7: memref<1x18x18x4xbf16, #tpu.memory_space<vmem>>, %arg8: memref<1x1x4xf32, #tpu.memory_space<vmem>>, %arg9: memref<1x1x4xf32, #tpu.memory_space<vmem>>) attributes {dimension_semantics = [#tpu.dimension_semantics<parallel>], iteration_bounds = array<i64: 2>, scalar_prefetch = 0 : i64, scratch_operands = 0 : i64, tpu.core_type = #tpu.core_type<tc>, window_params = [{transform_indices = @transform_0, window_bounds = array<i64: 1, 16, 16, 4>}, {transform_indices = @transform_1, window_bounds = array<i64: 1, 8, 8, 4>}, {pipeline_mode = #tpu.pipeline_mode<synchronous>, transform_indices = @transform_2, window_bounds = array<i64: 324, 64>}, {pipeline_mode = #tpu.pipeline_mode<synchronous>, transform_indices = @transform_3, window_bounds = array<i64: 3, 12, 4>}, {pipeline_mode = #tpu.pipeline_mode<synchronous>, transform_indices = @transform_4, window_bounds = array<i64: 3, 12, 4>}, {pipeline_mode = #tpu.pipeline_mode<synchronous>, transform_indices = @transform_5, window_bounds = array<i64: 1, 4>}, {transform_indices = @transform_6, window_bounds = array<i64: 1, 18, 18, 4>}, {transform_indices = @transform_7, window_bounds = array<i64: 1, 1, 4>}, {transform_indices = @transform_8, window_bounds = array<i64: 1, 1, 4>}]} {
    %c0 = arith.constant 0 : index
    %c0_0 = arith.constant 0 : index
    %c0_1 = arith.constant 0 : index
    %c0_2 = arith.constant 0 : index
    %0 = vector.load %arg2[%c0, %c0_0, %c0_1, %c0_2] : memref<1x8x8x4xf32, #tpu.memory_space<vmem>>, vector<1x8x8x4xf32>
    %1 = vector.shape_cast %0 : vector<1x8x8x4xf32> to vector<64x4xf32>
    %c0_3 = arith.constant 0 : index
    %c0_4 = arith.constant 0 : index
    %2 = vector.load %arg3[%c0_3, %c0_4] : memref<324x64xf32, #tpu.memory_space<vmem>>, vector<324x64xf32>
    %cst = arith.constant dense<0.000000e+00> : vector<324x4xf32>
    %3 = tpu.matmul %2, %1, %cst {dimension_numbers = #tpu.dot_dimension_numbers<[1], [0], [0], [1], [0, 0, 1, 1], [], []>} : vector<324x64xf32>, vector<64x4xf32>, vector<324x4xf32> -> vector<324x4xf32>
    %4 = vector.shape_cast %3 : vector<324x4xf32> to vector<18x18x4xf32>
    %5 = arith.truncf %4 : vector<18x18x4xf32> to vector<18x18x4xbf16>
    %c0_5 = arith.constant 0 : index
    %c0_6 = arith.constant 0 : index
    %c0_7 = arith.constant 0 : index
    %c0_8 = arith.constant 0 : index
    %6 = vector.load %arg1[%c0_5, %c0_6, %c0_7, %c0_8] : memref<1x16x16x4xbf16, #tpu.memory_space<vmem>>, vector<1x16x16x4xbf16>
    %7 = vector.shape_cast %6 : vector<1x16x16x4xbf16> to vector<16x16x4xbf16>
    %cst_9 = arith.constant 0.000000e+00 : bf16
    %8 = vector.broadcast %cst_9 : bf16 to vector<1x16x4xbf16>
    %cst_10 = arith.constant 0.000000e+00 : bf16
    %9 = vector.broadcast %cst_10 : bf16 to vector<18x1x4xbf16>
    %10 = tpu.concatenate %8, %7, %8 in 0 : vector<1x16x4xbf16>, vector<16x16x4xbf16>, vector<1x16x4xbf16> -> vector<18x16x4xbf16>
    %11 = tpu.concatenate %9, %10, %9 in 1 : vector<18x1x4xbf16>, vector<18x16x4xbf16>, vector<18x1x4xbf16> -> vector<18x18x4xbf16>
    %cst_11 = arith.constant 0.000000e+00 : f32
    %12 = vector.broadcast %cst_11 : f32 to vector<256x4xf32>
    %13 = vector.extract_strided_slice %11 {offsets = [0, 0, 0], sizes = [16, 18, 4], strides = [1, 1, 1]} : vector<18x18x4xbf16> to vector<16x18x4xbf16>
    %14 = vector.extract_strided_slice %5 {offsets = [0, 0, 0], sizes = [16, 18, 4], strides = [1, 1, 1]} : vector<18x18x4xbf16> to vector<16x18x4xbf16>
    %15 = vector.extract_strided_slice %13 {offsets = [0, 0, 0], sizes = [16, 16, 4], strides = [1, 1, 1]} : vector<16x18x4xbf16> to vector<16x16x4xbf16>
    %16 = vector.extract_strided_slice %13 {offsets = [0, 1, 0], sizes = [16, 16, 4], strides = [1, 1, 1]} : vector<16x18x4xbf16> to vector<16x16x4xbf16>
    %17 = vector.extract_strided_slice %13 {offsets = [0, 2, 0], sizes = [16, 16, 4], strides = [1, 1, 1]} : vector<16x18x4xbf16> to vector<16x16x4xbf16>
    %18 = tpu.concatenate %15, %16, %17 in 2 : vector<16x16x4xbf16>, vector<16x16x4xbf16>, vector<16x16x4xbf16> -> vector<16x16x12xbf16>
    %19 = vector.shape_cast %18 : vector<16x16x12xbf16> to vector<256x12xbf16>
    %20 = vector.extract_strided_slice %14 {offsets = [0, 0, 0], sizes = [16, 16, 4], strides = [1, 1, 1]} : vector<16x18x4xbf16> to vector<16x16x4xbf16>
    %21 = vector.extract_strided_slice %14 {offsets = [0, 1, 0], sizes = [16, 16, 4], strides = [1, 1, 1]} : vector<16x18x4xbf16> to vector<16x16x4xbf16>
    %22 = vector.extract_strided_slice %14 {offsets = [0, 2, 0], sizes = [16, 16, 4], strides = [1, 1, 1]} : vector<16x18x4xbf16> to vector<16x16x4xbf16>
    %23 = tpu.concatenate %20, %21, %22 in 2 : vector<16x16x4xbf16>, vector<16x16x4xbf16>, vector<16x16x4xbf16> -> vector<16x16x12xbf16>
    %24 = vector.shape_cast %23 : vector<16x16x12xbf16> to vector<256x12xbf16>
    %c0_12 = arith.constant 0 : index
    %c0_13 = arith.constant 0 : index
    %c0_14 = arith.constant 0 : index
    %25 = vector.load %arg4[%c0_12, %c0_13, %c0_14] : memref<3x12x4xbf16, #tpu.memory_space<vmem>>, vector<1x12x4xbf16>
    %26 = vector.shape_cast %25 : vector<1x12x4xbf16> to vector<12x4xbf16>
    %cst_15 = arith.constant dense<0.000000e+00> : vector<256x4xf32>
    %27 = tpu.matmul %19, %26, %cst_15 {dimension_numbers = #tpu.dot_dimension_numbers<[1], [0], [0], [1], [0, 0, 1, 1], [], []>} : vector<256x12xbf16>, vector<12x4xbf16>, vector<256x4xf32> -> vector<256x4xf32>
    %28 = arith.addf %12, %27 : vector<256x4xf32>
    %c0_16 = arith.constant 0 : index
    %c0_17 = arith.constant 0 : index
    %c0_18 = arith.constant 0 : index
    %29 = vector.load %arg5[%c0_16, %c0_17, %c0_18] : memref<3x12x4xbf16, #tpu.memory_space<vmem>>, vector<1x12x4xbf16>
    %30 = vector.shape_cast %29 : vector<1x12x4xbf16> to vector<12x4xbf16>
    %cst_19 = arith.constant dense<0.000000e+00> : vector<256x4xf32>
    %31 = tpu.matmul %24, %30, %cst_19 {dimension_numbers = #tpu.dot_dimension_numbers<[1], [0], [0], [1], [0, 0, 1, 1], [], []>} : vector<256x12xbf16>, vector<12x4xbf16>, vector<256x4xf32> -> vector<256x4xf32>
    %32 = arith.addf %28, %31 : vector<256x4xf32>
    %33 = vector.extract_strided_slice %11 {offsets = [1, 0, 0], sizes = [16, 18, 4], strides = [1, 1, 1]} : vector<18x18x4xbf16> to vector<16x18x4xbf16>
    %34 = vector.extract_strided_slice %5 {offsets = [1, 0, 0], sizes = [16, 18, 4], strides = [1, 1, 1]} : vector<18x18x4xbf16> to vector<16x18x4xbf16>
    %35 = vector.extract_strided_slice %33 {offsets = [0, 0, 0], sizes = [16, 16, 4], strides = [1, 1, 1]} : vector<16x18x4xbf16> to vector<16x16x4xbf16>
    %36 = vector.extract_strided_slice %33 {offsets = [0, 1, 0], sizes = [16, 16, 4], strides = [1, 1, 1]} : vector<16x18x4xbf16> to vector<16x16x4xbf16>
    %37 = vector.extract_strided_slice %33 {offsets = [0, 2, 0], sizes = [16, 16, 4], strides = [1, 1, 1]} : vector<16x18x4xbf16> to vector<16x16x4xbf16>
    %38 = tpu.concatenate %35, %36, %37 in 2 : vector<16x16x4xbf16>, vector<16x16x4xbf16>, vector<16x16x4xbf16> -> vector<16x16x12xbf16>
    %39 = vector.shape_cast %38 : vector<16x16x12xbf16> to vector<256x12xbf16>
    %40 = vector.extract_strided_slice %34 {offsets = [0, 0, 0], sizes = [16, 16, 4], strides = [1, 1, 1]} : vector<16x18x4xbf16> to vector<16x16x4xbf16>
    %41 = vector.extract_strided_slice %34 {offsets = [0, 1, 0], sizes = [16, 16, 4], strides = [1, 1, 1]} : vector<16x18x4xbf16> to vector<16x16x4xbf16>
    %42 = vector.extract_strided_slice %34 {offsets = [0, 2, 0], sizes = [16, 16, 4], strides = [1, 1, 1]} : vector<16x18x4xbf16> to vector<16x16x4xbf16>
    %43 = tpu.concatenate %40, %41, %42 in 2 : vector<16x16x4xbf16>, vector<16x16x4xbf16>, vector<16x16x4xbf16> -> vector<16x16x12xbf16>
    %44 = vector.shape_cast %43 : vector<16x16x12xbf16> to vector<256x12xbf16>
    %c1 = arith.constant 1 : index
    %c0_20 = arith.constant 0 : index
    %c0_21 = arith.constant 0 : index
    %45 = vector.load %arg4[%c1, %c0_20, %c0_21] : memref<3x12x4xbf16, #tpu.memory_space<vmem>>, vector<1x12x4xbf16>
    %46 = vector.shape_cast %45 : vector<1x12x4xbf16> to vector<12x4xbf16>
    %cst_22 = arith.constant dense<0.000000e+00> : vector<256x4xf32>
    %47 = tpu.matmul %39, %46, %cst_22 {dimension_numbers = #tpu.dot_dimension_numbers<[1], [0], [0], [1], [0, 0, 1, 1], [], []>} : vector<256x12xbf16>, vector<12x4xbf16>, vector<256x4xf32> -> vector<256x4xf32>
    %48 = arith.addf %32, %47 : vector<256x4xf32>
    %c1_23 = arith.constant 1 : index
    %c0_24 = arith.constant 0 : index
    %c0_25 = arith.constant 0 : index
    %49 = vector.load %arg5[%c1_23, %c0_24, %c0_25] : memref<3x12x4xbf16, #tpu.memory_space<vmem>>, vector<1x12x4xbf16>
    %50 = vector.shape_cast %49 : vector<1x12x4xbf16> to vector<12x4xbf16>
    %cst_26 = arith.constant dense<0.000000e+00> : vector<256x4xf32>
    %51 = tpu.matmul %44, %50, %cst_26 {dimension_numbers = #tpu.dot_dimension_numbers<[1], [0], [0], [1], [0, 0, 1, 1], [], []>} : vector<256x12xbf16>, vector<12x4xbf16>, vector<256x4xf32> -> vector<256x4xf32>
    %52 = arith.addf %48, %51 : vector<256x4xf32>
    %53 = vector.extract_strided_slice %11 {offsets = [2, 0, 0], sizes = [16, 18, 4], strides = [1, 1, 1]} : vector<18x18x4xbf16> to vector<16x18x4xbf16>
    %54 = vector.extract_strided_slice %5 {offsets = [2, 0, 0], sizes = [16, 18, 4], strides = [1, 1, 1]} : vector<18x18x4xbf16> to vector<16x18x4xbf16>
    %55 = vector.extract_strided_slice %53 {offsets = [0, 0, 0], sizes = [16, 16, 4], strides = [1, 1, 1]} : vector<16x18x4xbf16> to vector<16x16x4xbf16>
    %56 = vector.extract_strided_slice %53 {offsets = [0, 1, 0], sizes = [16, 16, 4], strides = [1, 1, 1]} : vector<16x18x4xbf16> to vector<16x16x4xbf16>
    %57 = vector.extract_strided_slice %53 {offsets = [0, 2, 0], sizes = [16, 16, 4], strides = [1, 1, 1]} : vector<16x18x4xbf16> to vector<16x16x4xbf16>
    %58 = tpu.concatenate %55, %56, %57 in 2 : vector<16x16x4xbf16>, vector<16x16x4xbf16>, vector<16x16x4xbf16> -> vector<16x16x12xbf16>
    %59 = vector.shape_cast %58 : vector<16x16x12xbf16> to vector<256x12xbf16>
    %60 = vector.extract_strided_slice %54 {offsets = [0, 0, 0], sizes = [16, 16, 4], strides = [1, 1, 1]} : vector<16x18x4xbf16> to vector<16x16x4xbf16>
    %61 = vector.extract_strided_slice %54 {offsets = [0, 1, 0], sizes = [16, 16, 4], strides = [1, 1, 1]} : vector<16x18x4xbf16> to vector<16x16x4xbf16>
    %62 = vector.extract_strided_slice %54 {offsets = [0, 2, 0], sizes = [16, 16, 4], strides = [1, 1, 1]} : vector<16x18x4xbf16> to vector<16x16x4xbf16>
    %63 = tpu.concatenate %60, %61, %62 in 2 : vector<16x16x4xbf16>, vector<16x16x4xbf16>, vector<16x16x4xbf16> -> vector<16x16x12xbf16>
    %64 = vector.shape_cast %63 : vector<16x16x12xbf16> to vector<256x12xbf16>
    %c2 = arith.constant 2 : index
    %c0_27 = arith.constant 0 : index
    %c0_28 = arith.constant 0 : index
    %65 = vector.load %arg4[%c2, %c0_27, %c0_28] : memref<3x12x4xbf16, #tpu.memory_space<vmem>>, vector<1x12x4xbf16>
    %66 = vector.shape_cast %65 : vector<1x12x4xbf16> to vector<12x4xbf16>
    %cst_29 = arith.constant dense<0.000000e+00> : vector<256x4xf32>
    %67 = tpu.matmul %59, %66, %cst_29 {dimension_numbers = #tpu.dot_dimension_numbers<[1], [0], [0], [1], [0, 0, 1, 1], [], []>} : vector<256x12xbf16>, vector<12x4xbf16>, vector<256x4xf32> -> vector<256x4xf32>
    %68 = arith.addf %52, %67 : vector<256x4xf32>
    %c2_30 = arith.constant 2 : index
    %c0_31 = arith.constant 0 : index
    %c0_32 = arith.constant 0 : index
    %69 = vector.load %arg5[%c2_30, %c0_31, %c0_32] : memref<3x12x4xbf16, #tpu.memory_space<vmem>>, vector<1x12x4xbf16>
    %70 = vector.shape_cast %69 : vector<1x12x4xbf16> to vector<12x4xbf16>
    %cst_33 = arith.constant dense<0.000000e+00> : vector<256x4xf32>
    %71 = tpu.matmul %64, %70, %cst_33 {dimension_numbers = #tpu.dot_dimension_numbers<[1], [0], [0], [1], [0, 0, 1, 1], [], []>} : vector<256x12xbf16>, vector<12x4xbf16>, vector<256x4xf32> -> vector<256x4xf32>
    %72 = arith.addf %68, %71 : vector<256x4xf32>
    %c0_34 = arith.constant 0 : index
    %c0_35 = arith.constant 0 : index
    %73 = vector.load %arg6[%c0_34, %c0_35] : memref<1x4xf32, #tpu.memory_space<vmem>>, vector<1x4xf32>
    %74 = vector.shape_cast %73 : vector<1x4xf32> to vector<4xf32>
    %75 = vector.shape_cast %74 : vector<4xf32> to vector<1x4xf32>
    %76 = vector.broadcast %75 : vector<1x4xf32> to vector<256x4xf32>
    %77 = arith.addf %72, %76 : vector<256x4xf32>
    %78 = vector.shape_cast %77 : vector<256x4xf32> to vector<16x16x4xf32>
    %cst_36 = arith.constant 0.000000e+00 : f32
    %79 = vector.broadcast %cst_36 : f32 to vector<1x16x4xf32>
    %cst_37 = arith.constant 0.000000e+00 : f32
    %80 = vector.broadcast %cst_37 : f32 to vector<18x1x4xf32>
    %81 = tpu.concatenate %79, %78, %79 in 0 : vector<1x16x4xf32>, vector<16x16x4xf32>, vector<1x16x4xf32> -> vector<18x16x4xf32>
    %82 = tpu.concatenate %80, %81, %80 in 1 : vector<18x1x4xf32>, vector<18x16x4xf32>, vector<18x1x4xf32> -> vector<18x18x4xf32>
    %83 = vector.shape_cast %82 : vector<18x18x4xf32> to vector<1x18x18x4xf32>
    %84 = arith.truncf %83 : vector<1x18x18x4xf32> to vector<1x18x18x4xbf16>
    %c0_38 = arith.constant 0 : index
    %c0_39 = arith.constant 0 : index
    %c0_40 = arith.constant 0 : index
    %c0_41 = arith.constant 0 : index
    %85 = vector.load %arg7[%c0_38, %c0_39, %c0_40, %c0_41] : memref<1x18x18x4xbf16, #tpu.memory_space<vmem>>, vector<1x18x18x4xbf16>
    tpu.vector_store %arg7[%c0_38, %c0_39, %c0_40, %c0_41], %84 {strides = array<i32>} : memref<1x18x18x4xbf16, #tpu.memory_space<vmem>>, vector<1x18x18x4xbf16>,
    %cst_42 = arith.constant dense<0.000000e+00> : vector<4xf32>
    %86 = vector.multi_reduction <add>, %77, %cst_42 [0] : vector<256x4xf32> to vector<4xf32>
    %87 = vector.shape_cast %86 : vector<4xf32> to vector<1x4xf32>
    %c0_43 = arith.constant 0 : index
    %c0_44 = arith.constant 0 : index
    %c0_45 = arith.constant 0 : index
    %88 = vector.load %arg8[%c0_43, %c0_44, %c0_45] : memref<1x1x4xf32, #tpu.memory_space<vmem>>, vector<1x1x4xf32>
    %89 = vector.shape_cast %88 : vector<1x1x4xf32> to vector<1x4xf32>
    %90 = vector.shape_cast %87 : vector<1x4xf32> to vector<1x1x4xf32>
    tpu.vector_store %arg8[%c0_43, %c0_44, %c0_45], %90 {strides = array<i32>} : memref<1x1x4xf32, #tpu.memory_space<vmem>>, vector<1x1x4xf32>,
    %91 = arith.mulf %77, %77 : vector<256x4xf32>
    %cst_46 = arith.constant dense<0.000000e+00> : vector<4xf32>
    %92 = vector.multi_reduction <add>, %91, %cst_46 [0] : vector<256x4xf32> to vector<4xf32>
    %93 = vector.shape_cast %92 : vector<4xf32> to vector<1x4xf32>
    %c0_47 = arith.constant 0 : index
    %c0_48 = arith.constant 0 : index
    %c0_49 = arith.constant 0 : index
    %94 = vector.load %arg9[%c0_47, %c0_48, %c0_49] : memref<1x1x4xf32, #tpu.memory_space<vmem>>, vector<1x1x4xf32>
    %95 = vector.shape_cast %94 : vector<1x1x4xf32> to vector<1x4xf32>
    %96 = vector.shape_cast %93 : vector<1x4xf32> to vector<1x1x4xf32>
    tpu.vector_store %arg9[%c0_47, %c0_48, %c0_49], %96 {strides = array<i32>} : memref<1x1x4xf32, #tpu.memory_space<vmem>>, vector<1x1x4xf32>,
    return
  }
  func.func @transform_0(%arg0: i32) -> (i32, i32, i32, i32) {
    %c0_i32 = arith.constant 0 : i32
    %c0_i32_0 = arith.constant 0 : i32
    %c0_i32_1 = arith.constant 0 : i32
    %c0_i32_2 = arith.constant 0 : i32
    return %arg0, %c0_i32, %c0_i32_0, %c0_i32_1 : i32, i32, i32, i32
  }
  func.func @transform_1(%arg0: i32) -> (i32, i32, i32, i32) {
    %c0_i32 = arith.constant 0 : i32
    %c0_i32_0 = arith.constant 0 : i32
    %c0_i32_1 = arith.constant 0 : i32
    %c0_i32_2 = arith.constant 0 : i32
    return %arg0, %c0_i32, %c0_i32_0, %c0_i32_1 : i32, i32, i32, i32
  }
  func.func @transform_2(%arg0: i32) -> (i32, i32) {
    %c0_i32 = arith.constant 0 : i32
    %c0_i32_0 = arith.constant 0 : i32
    %c0_i32_1 = arith.constant 0 : i32
    return %c0_i32, %c0_i32_0 : i32, i32
  }
  func.func @transform_3(%arg0: i32) -> (i32, i32, i32) {
    %c0_i32 = arith.constant 0 : i32
    %c0_i32_0 = arith.constant 0 : i32
    %c0_i32_1 = arith.constant 0 : i32
    %c0_i32_2 = arith.constant 0 : i32
    return %c0_i32, %c0_i32_0, %c0_i32_1 : i32, i32, i32
  }
  func.func @transform_4(%arg0: i32) -> (i32, i32, i32) {
    %c0_i32 = arith.constant 0 : i32
    %c0_i32_0 = arith.constant 0 : i32
    %c0_i32_1 = arith.constant 0 : i32
    %c0_i32_2 = arith.constant 0 : i32
    return %c0_i32, %c0_i32_0, %c0_i32_1 : i32, i32, i32
  }
  func.func @transform_5(%arg0: i32) -> (i32, i32) {
    %c0_i32 = arith.constant 0 : i32
    %c0_i32_0 = arith.constant 0 : i32
    %c0_i32_1 = arith.constant 0 : i32
    return %c0_i32, %c0_i32_0 : i32, i32
  }
  func.func @transform_6(%arg0: i32) -> (i32, i32, i32, i32) {
    %c0_i32 = arith.constant 0 : i32
    %c0_i32_0 = arith.constant 0 : i32
    %c0_i32_1 = arith.constant 0 : i32
    %c0_i32_2 = arith.constant 0 : i32
    return %arg0, %c0_i32, %c0_i32_0, %c0_i32_1 : i32, i32, i32, i32
  }
  func.func @transform_7(%arg0: i32) -> (i32, i32, i32) {
    %c0_i32 = arith.constant 0 : i32
    %c0_i32_0 = arith.constant 0 : i32
    %c0_i32_1 = arith.constant 0 : i32
    return %arg0, %c0_i32, %c0_i32_0 : i32, i32, i32
  }
  func.func @transform_8(%arg0: i32) -> (i32, i32, i32) {
    %c0_i32 = arith.constant 0 : i32
    %c0_i32_0 = arith.constant 0 : i32
    %c0_i32_1 = arith.constant 0 : i32
    return %arg0, %c0_i32, %c0_i32_0 : i32, i32, i32
  }
}

</mosaic_0001>

<bundles_post_ra>
// kernel: up_forward.5
= control target key start
LH: loop header
LB: loop body
LE: loop exit
PB: predicated region body
PF: predicated region fallthrough
CT: control target
= control target key end

     0   :  { %s563_s12 = smov 0   ;;  %s742_s0 = inlined_call_operand.vmem [shape: bf16[2,16,16,4], index: 0, kind: input, shape index: {}]   ;;  %s743_s1 = inlined_call_operand.vmem [shape: f32[1,4], index: 1, kind: input, shape index: {}]   ;;  %s744_s2 = inlined_call_operand.vmem [shape: f32[1,4], index: 2, kind: input, shape index: {}]   ;;  %s745_s3 = inlined_call_operand.vmem [shape: f32[2,16,16,4], index: 3, kind: output, shape index: {}]  }
   0x1 LB: > { %s433_s13 = sadd.s32 4294967295, %s541_s12   ;;  %p437_p0 = scmp.ge.s32.totalorder %s541_s12, 1  ;;  %s541_s12 = sphi %s563_s12, %s13_s12  }
   0x2   : > { %p137_p1 = scmp.lt.s32.totalorder %s541_s12, 3 }
   0x4   : > { %p138_p2 = pnand %p437_p0, %p137_p1 }
   0x5   : > { %p161_p3 = scmp.lt.s32.totalorder (!%p138_p2), %s433_s13, 1 }
   0x6   : > { %141 = sbr.rel (%p138_p2) target bundleno = 51 (0x33), region = 32 }
   0xb   : > { %s747_s13 = smov (!%p161_p3, %s433_s13), 1  ;;  %v582_v0 = vld [vmem:[%s743_s1] ss:$0 sm:$0xff]  ;;  %vm345_vm0 = vcmask 31744  }
   0xc   : > { %s446_s14 = sshll.u32 %s747_s13, 7  ;;  %v591_v9 = vld [vmem:[%s744_s2] ss:$0 sm:$0xff]  ;;  %s447_s22 = sshll.u32 %s747_s13, 8 }
   0xd   : > { %s577_s17 = scalar_lea.vmem %s742_s0, %s446_s14  ;;  %s609_s25 = scalar_lea.vmem %s745_s3, %s447_s22 }
   0xe   : > { %v449_v1 = vld [vmem:[%s577_s17] sm:$0xff]   ;;  %v512_v2 = vld [vmem:[%s577_s17 + $0x8] sm:$0xff]   ;;  %v513_v3 = vld [vmem:[%s577_s17 + $0x10] sm:$0xff]  }
   0xf   : > { %v450_v4 = vunpack.c.l.bf16 %v449_v1  ;;  %v451_v5 = vunpack.c.h.bf16 %v449_v1  ;;  %v454_v6 = vunpack.c.l.bf16 %v512_v2  ;;  %v455_v7 = vunpack.c.h.bf16 %v512_v2  ;;  %v514_v8 = vld [vmem:[%s577_s17 + $0x18] sm:$0xff]   ;;  %v515_v30 = vld [vmem:[%s577_s17 + $0x20] sm:$0xff]   ;;  %v516_v31 = vld [vmem:[%s577_s17 + $0x28] sm:$0xff]  }
  0x10   : > { %v458_v10 = vunpack.c.l.bf16 %v513_v3  ;;  %v459_v11 = vunpack.c.h.bf16 %v513_v3  ;;  %v462_v12 = vunpack.c.l.bf16 %v514_v8  ;;  %v463_v13 = vunpack.c.h.bf16 %v514_v8  ;;  %v517_v36 = vld [vmem:[%s577_s17 + $0x30] sm:$0xff]   ;;  %v518_v37 = vld [vmem:[%s577_s17 + $0x38] sm:$0xff]   ;;  %v519_v3 = vld [vmem:[%s577_s17 + $0x40] sm:$0xff]  }
  0x11   : > { %v242_v14 = vmul.f32 %v450_v4, %v582_v0  ;;  %v243_v15 = vmul.f32 %v451_v5, %v582_v0  ;;  %v244_v16 = vmul.f32 %v454_v6, %v582_v0  ;;  %v245_v17 = vmul.f32 %v455_v7, %v582_v0  ;;  %v520_v4 = vld [vmem:[%s577_s17 + $0x48] sm:$0xff]  }
  0x12   : > { %v246_v18 = vmul.f32 %v458_v10, %v582_v0  ;;  %v247_v19 = vmul.f32 %v459_v11, %v582_v0  ;;  %v248_v20 = vmul.f32 %v462_v12, %v582_v0  ;;  %v249_v21 = vmul.f32 %v463_v13, %v582_v0  ;;  %v521_v10 = vld [vmem:[%s577_s17 + $0x50] sm:$0xff]   ;;  %v522_v11 = vld [vmem:[%s577_s17 + $0x58] sm:$0xff]  }
  0x13   : > { %v281_v22 = vadd.f32 %v591_v9, %v242_v14  ;;  %v282_v23 = vadd.f32 %v591_v9, %v243_v15  ;;  %v283_v24 = vadd.f32 %v591_v9, %v244_v16  ;;  %v284_v25 = vadd.f32 %v591_v9, %v245_v17 }
  0x14   : > { %v285_v26 = vadd.f32 %v591_v9, %v246_v18  ;;  %v286_v27 = vadd.f32 %v591_v9, %v247_v19  ;;  %v287_v28 = vadd.f32 %v591_v9, %v248_v20  ;;  %v288_v29 = vadd.f32 %v591_v9, %v249_v21 }
  0x15   : > { %v313_v32 = vmax.f32 %v281_v22, 0.0  ;;  %v314_v33 = vmax.f32 %v282_v23, 0.0  ;;  %v315_v34 = vmax.f32 %v283_v24, 0.0  ;;  %v316_v35 = vmax.f32 %v284_v25, 0.0 }
  0x16   : > { %v317_v38 = vmax.f32 %v285_v26, 0.0  ;;  %v318_v39 = vmax.f32 %v286_v27, 0.0  ;;  %v319_v40 = vmax.f32 %v287_v28, 0.0  ;;  %v320_v41 = vmax.f32 %v288_v29, 0.0 }
  0x17   : > { %346 = vst.msk [vmem:[%s609_s25] sm:$0xff] %vm345_vm0, %v313_v32  ;;  %347 = vst.msk [vmem:[%s609_s25 + $0x8] sm:$0xff] %vm345_vm0, %v314_v33  ;;  %v466_v42 = vunpack.c.l.bf16 %v515_v30  ;;  %v467_v43 = vunpack.c.h.bf16 %v515_v30  ;;  %v470_v44 = vunpack.c.l.bf16 %v516_v31  ;;  %v471_v45 = vunpack.c.h.bf16 %v516_v31 }
  0x18   : > { %348 = vst.msk [vmem:[%s609_s25 + $0x10] sm:$0xff] %vm345_vm0, %v315_v34  ;;  %349 = vst.msk [vmem:[%s609_s25 + $0x18] sm:$0xff] %vm345_vm0, %v316_v35  ;;  %v474_v46 = vunpack.c.l.bf16 %v517_v36  ;;  %v475_v47 = vunpack.c.h.bf16 %v517_v36  ;;  %v478_v48 = vunpack.c.l.bf16 %v518_v37  ;;  %v479_v49 = vunpack.c.h.bf16 %v518_v37 }
  0x19   : > { %350 = vst.msk [vmem:[%s609_s25 + $0x20] sm:$0xff] %vm345_vm0, %v317_v38  ;;  %351 = vst.msk [vmem:[%s609_s25 + $0x28] sm:$0xff] %vm345_vm0, %v318_v39  ;;  %v250_v50 = vmul.f32 %v466_v42, %v582_v0  ;;  %v251_v51 = vmul.f32 %v467_v43, %v582_v0  ;;  %v252_v52 = vmul.f32 %v470_v44, %v582_v0  ;;  %v482_v16 = vunpack.c.l.bf16 %v519_v3 }
  0x1a   : > { %352 = vst.msk [vmem:[%s609_s25 + $0x30] sm:$0xff] %vm345_vm0, %v319_v40  ;;  %353 = vst.msk [vmem:[%s609_s25 + $0x38] sm:$0xff] %vm345_vm0, %v320_v41  ;;  %v253_v53 = vmul.f32 %v471_v45, %v582_v0  ;;  %v254_v54 = vmul.f32 %v474_v46, %v582_v0  ;;  %v255_v55 = vmul.f32 %v475_v47, %v582_v0  ;;  %v483_v17 = vunpack.c.h.bf16 %v519_v3  ;;  %v523_v40 = vld [vmem:[%s577_s17 + $0x60] sm:$0xff]   ;;  %v524_v41 = vld [vmem:[%s577_s17 + $0x68] sm:$0xff]  }
  0x1b   : > { %v256_v56 = vmul.f32 %v478_v48, %v582_v0  ;;  %v257_v57 = vmul.f32 %v479_v49, %v582_v0  ;;  %v289_v58 = vadd.f32 %v591_v9, %v250_v50  ;;  %v290_v59 = vadd.f32 %v591_v9, %v251_v51  ;;  %v525_v46 = vld [vmem:[%s577_s17 + $0x70] sm:$0xff]   ;;  %v526_v47 = vld [vmem:[%s577_s17 + $0x78] sm:$0xff]  }
  0x1c   : > { %v291_v60 = vadd.f32 %v591_v9, %v252_v52  ;;  %v292_v61 = vadd.f32 %v591_v9, %v253_v53  ;;  %v293_v62 = vadd.f32 %v591_v9, %v254_v54  ;;  %v294_v63 = vadd.f32 %v591_v9, %v255_v55 }
  0x1d   : > { %v295_v1 = vadd.f32 %v591_v9, %v256_v56  ;;  %v296_v2 = vadd.f32 %v591_v9, %v257_v57  ;;  %v321_v5 = vmax.f32 %v289_v58, 0.0  ;;  %v322_v6 = vmax.f32 %v290_v59, 0.0 }
  0x1e   : > { %v323_v7 = vmax.f32 %v291_v60, 0.0  ;;  %v324_v8 = vmax.f32 %v292_v61, 0.0  ;;  %v325_v12 = vmax.f32 %v293_v62, 0.0  ;;  %v326_v13 = vmax.f32 %v294_v63, 0.0 }
  0x1f   : > { %v327_v14 = vmax.f32 %v295_v1, 0.0  ;;  %v328_v15 = vmax.f32 %v296_v2, 0.0  ;;  %354 = vst.msk [vmem:[%s609_s25 + $0x40] sm:$0xff] %vm345_vm0, %v321_v5  ;;  %355 = vst.msk [vmem:[%s609_s25 + $0x48] sm:$0xff] %vm345_vm0, %v322_v6  ;;  %v486_v18 = vunpack.c.l.bf16 %v520_v4  ;;  %v487_v19 = vunpack.c.h.bf16 %v520_v4 }
  0x20   : > { %356 = vst.msk [vmem:[%s609_s25 + $0x50] sm:$0xff] %vm345_vm0, %v323_v7  ;;  %357 = vst.msk [vmem:[%s609_s25 + $0x58] sm:$0xff] %vm345_vm0, %v324_v8  ;;  %v490_v20 = vunpack.c.l.bf16 %v521_v10  ;;  %v491_v21 = vunpack.c.h.bf16 %v521_v10  ;;  %v494_v22 = vunpack.c.l.bf16 %v522_v11  ;;  %v495_v23 = vunpack.c.h.bf16 %v522_v11 }
  0x21   : > { %358 = vst.msk [vmem:[%s609_s25 + $0x60] sm:$0xff] %vm345_vm0, %v325_v12  ;;  %359 = vst.msk [vmem:[%s609_s25 + $0x68] sm:$0xff] %vm345_vm0, %v326_v13  ;;  %v258_v24 = vmul.f32 %v482_v16, %v582_v0  ;;  %v259_v25 = vmul.f32 %v483_v17, %v582_v0  ;;  %v260_v26 = vmul.f32 %v486_v18, %v582_v0  ;;  %v498_v52 = vunpack.c.l.bf16 %v523_v40 }
  0x22   : > { %360 = vst.msk [vmem:[%s609_s25 + $0x70] sm:$0xff] %vm345_vm0, %v327_v14  ;;  %361 = vst.msk [vmem:[%s609_s25 + $0x78] sm:$0xff] %vm345_vm0, %v328_v15  ;;  %v261_v27 = vmul.f32 %v487_v19, %v582_v0  ;;  %v262_v28 = vmul.f32 %v490_v20, %v582_v0  ;;  %v263_v29 = vmul.f32 %v491_v21, %v582_v0  ;;  %v499_v53 = vunpack.c.h.bf16 %v523_v40 }
  0x23   : > { %v264_v30 = vmul.f32 %v494_v22, %v582_v0  ;;  %v265_v31 = vmul.f32 %v495_v23, %v582_v0  ;;  %v297_v32 = vadd.f32 %v591_v9, %v258_v24  ;;  %v298_v33 = vadd.f32 %v591_v9, %v259_v25 }
  0x24   : > { %v299_v34 = vadd.f32 %v591_v9, %v260_v26  ;;  %v300_v35 = vadd.f32 %v591_v9, %v261_v27  ;;  %v301_v36 = vadd.f32 %v591_v9, %v262_v28  ;;  %v302_v37 = vadd.f32 %v591_v9, %v263_v29 }
  0x25   : > { %v303_v38 = vadd.f32 %v591_v9, %v264_v30  ;;  %v304_v39 = vadd.f32 %v591_v9, %v265_v31  ;;  %v329_v42 = vmax.f32 %v297_v32, 0.0  ;;  %v330_v43 = vmax.f32 %v298_v33, 0.0 }
  0x26   : > { %v331_v44 = vmax.f32 %v299_v34, 0.0  ;;  %v332_v45 = vmax.f32 %v300_v35, 0.0  ;;  %v333_v48 = vmax.f32 %v301_v36, 0.0  ;;  %v334_v49 = vmax.f32 %v302_v37, 0.0 }
  0x27   : > { %v335_v50 = vmax.f32 %v303_v38, 0.0  ;;  %v336_v51 = vmax.f32 %v304_v39, 0.0  ;;  %362 = vst.msk [vmem:[%s609_s25 + $0x80] sm:$0xff] %vm345_vm0, %v329_v42  ;;  %363 = vst.msk [vmem:[%s609_s25 + $0x88] sm:$0xff] %vm345_vm0, %v330_v43  ;;  %v502_v54 = vunpack.c.l.bf16 %v524_v41  ;;  %v503_v55 = vunpack.c.h.bf16 %v524_v41 }
  0x28   : > { %364 = vst.msk [vmem:[%s609_s25 + $0x90] sm:$0xff] %vm345_vm0, %v331_v44  ;;  %365 = vst.msk [vmem:[%s609_s25 + $0x98] sm:$0xff] %vm345_vm0, %v332_v45  ;;  %v506_v56 = vunpack.c.l.bf16 %v525_v46  ;;  %v507_v57 = vunpack.c.h.bf16 %v525_v46  ;;  %v510_v58 = vunpack.c.l.bf16 %v526_v47  ;;  %v511_v59 = vunpack.c.h.bf16 %v526_v47 }
  0x29   : > { %366 = vst.msk [vmem:[%s609_s25 + $0xa0] sm:$0xff] %vm345_vm0, %v333_v48  ;;  %367 = vst.msk [vmem:[%s609_s25 + $0xa8] sm:$0xff] %vm345_vm0, %v334_v49  ;;  %v266_v60 = vmul.f32 %v498_v52, %v582_v0  ;;  %v267_v61 = vmul.f32 %v499_v53, %v582_v0  ;;  %v268_v62 = vmul.f32 %v502_v54, %v582_v0 }
  0x2a   : > { %368 = vst.msk [vmem:[%s609_s25 + $0xb0] sm:$0xff] %vm345_vm0, %v335_v50  ;;  %369 = vst.msk [vmem:[%s609_s25 + $0xb8] sm:$0xff] %vm345_vm0, %v336_v51  ;;  %v269_v63 = vmul.f32 %v503_v55, %v582_v0  ;;  %v270_v1 = vmul.f32 %v506_v56, %v582_v0  ;;  %v271_v2 = vmul.f32 %v507_v57, %v582_v0 }
  0x2b   : > { %v272_v3 = vmul.f32 %v510_v58, %v582_v0  ;;  %v273_v4 = vmul.f32 %v511_v59, %v582_v0  ;;  %v305_v5 = vadd.f32 %v591_v9, %v266_v60  ;;  %v306_v6 = vadd.f32 %v591_v9, %v267_v61 }
  0x2c   : > { %v307_v7 = vadd.f32 %v591_v9, %v268_v62  ;;  %v308_v8 = vadd.f32 %v591_v9, %v269_v63  ;;  %v309_v10 = vadd.f32 %v591_v9, %v270_v1  ;;  %v310_v11 = vadd.f32 %v591_v9, %v271_v2 }
  0x2d   : > { %v311_v0 = vadd.f32 %v591_v9, %v272_v3  ;;  %v312_v12 = vadd.f32 %v591_v9, %v273_v4  ;;  %v337_v13 = vmax.f32 %v305_v5, 0.0  ;;  %v338_v14 = vmax.f32 %v306_v6, 0.0 }
  0x2e   : > { %v339_v15 = vmax.f32 %v307_v7, 0.0  ;;  %v340_v16 = vmax.f32 %v308_v8, 0.0  ;;  %v341_v17 = vmax.f32 %v309_v10, 0.0  ;;  %v342_v18 = vmax.f32 %v310_v11, 0.0 }
  0x2f   : > { %v343_v19 = vmax.f32 %v311_v0, 0.0  ;;  %v344_v20 = vmax.f32 %v312_v12, 0.0  ;;  %370 = vst.msk [vmem:[%s609_s25 + $0xc0] sm:$0xff] %vm345_vm0, %v337_v13  ;;  %371 = vst.msk [vmem:[%s609_s25 + $0xc8] sm:$0xff] %vm345_vm0, %v338_v14 }
  0x30   : > { %372 = vst.msk [vmem:[%s609_s25 + $0xd0] sm:$0xff] %vm345_vm0, %v339_v15  ;;  %373 = vst.msk [vmem:[%s609_s25 + $0xd8] sm:$0xff] %vm345_vm0, %v340_v16 }
  0x31   : > { %374 = vst.msk [vmem:[%s609_s25 + $0xe0] sm:$0xff] %vm345_vm0, %v341_v17  ;;  %375 = vst.msk [vmem:[%s609_s25 + $0xe8] sm:$0xff] %vm345_vm0, %v342_v18 }
  0x32   : > { %376 = vst.msk [vmem:[%s609_s25 + $0xf0] sm:$0xff] %vm345_vm0, %v343_v19  ;;  %377 = vst.msk [vmem:[%s609_s25 + $0xf8] sm:$0xff] %vm345_vm0, %v344_v20 }
  0x33 PF: > { %s13_s12 = sadd.s32 1, %s541_s12  }
  0x34   : > { %p10_p4 = scmp.ge.s32.totalorder %s13_s12, 4  }
  0x36   :  { %12 = sbr.rel (!%p10_p4) target bundleno = 1 (0x1), region = 62 }

// kernel: up_forward.4
= control target key start
LH: loop header
LB: loop body
LE: loop exit
PB: predicated region body
PF: predicated region fallthrough
CT: control target
= control target key end

     0   :  { %s2622_s24 = smov 0   ;;  %s3430_s0 = inlined_call_operand.vmem [shape: bf16[2,18,18,4], index: 0, kind: input, shape index: {}]   ;;  %s3431_s1 = inlined_call_operand.vmem [shape: f32[1,4], index: 1, kind: input, shape index: {}]   ;;  %s3432_s2 = inlined_call_operand.vmem [shape: f32[1,4], index: 2, kind: input, shape index: {}]   ;;  %s3433_s3 = inlined_call_operand.vmem [shape: bf16[3,12,4], index: 3, kind: input, shape index: {}]   ;;  %s3434_s4 = inlined_call_operand.vmem [shape: f32[1,4], index: 4, kind: input, shape index: {}]   ;;  %s3435_s5 = inlined_call_operand.vmem [shape: bf16[2,16,16,4], index: 5, kind: output, shape index: {0}]   ;;  %s3436_s6 = inlined_call_operand.vmem [shape: f32[2,1,4], index: 6, kind: output, shape index: {1}]   ;;  %s3437_s7 = inlined_call_operand.vmem [shape: f32[2,1,4], index: 7, kind: output, shape index: {2}]  }
   0x1 LB: > { %s2222_s25 = sadd.s32 4294967295, %s2576_s24   ;;  %p2226_p0 = scmp.ge.s32.totalorder %s2576_s24, 1  ;;  %s2576_s24 = sphi %s2622_s24, %s18_s24  }
   0x2   : > { %p242_p1 = scmp.lt.s32.totalorder %s2576_s24, 3 }
   0x4   : > { %p243_p2 = pnand %p2226_p0, %p242_p1 }
   0x5   : > { %p280_p3 = scmp.lt.s32.totalorder (!%p243_p2), %s2222_s25, 1  ;;  %s2578_s11 = smov (!%p243_p2), 8  }
   0x6   : > { %246 = sbr.rel (%p243_p2) target bundleno = 542 (0x21e), region = 40  ;;  %s2579_s12 = smov (!%p243_p2), 4  }
   0xb   : > { %v581_v0 = vlaneseq  ;;  %s3439_s25 = smov (!%p280_p3, %s2222_s25), 1  ;;  %v2646_v3 = vld [vmem:[%s3431_s1] ss:$0 sm:$0xff]  ;;  %vm962_vm2 = vcmask 1046528   ;;  %vm705_vm3 = vsmask.f32 7424 }
   0xc   : > { %s2554_s26 = smul.u32 216, %s3439_s25  ;;  %v2659_v14 = vld [vmem:[%s3432_s2] ss:$0 sm:$0xff]  ;;  %vm1177_vm4 = vcmask 1045504   ;;  %vm1043_vm5 = vcmask 31744   ;;  %vm1076_vm6 = vcmask 64512   ;;  %s295_s9 = scalar_lea.vmem %s3437_s7, %s3439_s25 }
   0xd   : > { %v2632_v1 = vshrl.u32 %v581_v0, 7  ;;  %vm1144_vm7 = vcmask 97280   ;;  %s2322_s21 = sshll.u32 %s3439_s25, 7  ;;  %vm1911_vm8 = vcmask 27648   ;;  %vm2013_vm9 = vcmask 24576  }
   0xe   : > { %s2641_s29 = scalar_lea.vmem %s3430_s0, %s2554_s26  ;;  %s3226_s26 = scalar_lea.vmem %s3435_s5, %s2322_s21 }
   0xf   : > { %v2636_v2 = vadd.s32 16, %v2632_v1  ;;  %v2391_v4 = vld [vmem:[%s2641_s29 + $0x78] sm:$0xff]   ;;  %v329_v5 = vld [vmem:[%s2641_s29 + $0x80] sm:$0x1]  ;;  %vm585_vm0 = vcmp.ge.s32.totalorder %v2632_v1, 1  ;;  %v324_v6 = vld [vmem:[%s2641_s29 + $0x6c] sm:$0xff]  }
  0x10   : > { %v2373_v7 = vunpack.c.l.bf16 %v2391_v4  ;;  %v2374_v8 = vunpack.c.h.bf16 %v2391_v4  ;;  %v383_v9 = vunpack.c.l.bf16 %v329_v5  ;;  %v326_v10 = vld [vmem:[%s2641_s29 + $0x74] sm:$0x1]  ;;  %v378_v11 = vunpack.c.l.bf16 %v324_v6  ;;  %v2387_v12 = vld [vmem:[%s2641_s29 + $0x18] sm:$0xff]   ;;  %v305_v13 = vld [vmem:[%s2641_s29 + $0x20] sm:$0x1] }
  0x11   : > { %vm596_vm1 = vcmp.le.s32.totalorder %v2636_v2, 16  ;;  %v379_v15 = vunpack.c.h.bf16 %v324_v6  ;;  %v380_v16 = vunpack.c.l.bf16 %v326_v10  ;;  %v2357_v17 = vunpack.c.l.bf16 %v2387_v12  ;;  %v300_v47 = vld [vmem:[%s2641_s29 + $0xc] sm:$0xff]   ;;  %v302_v56 = vld [vmem:[%s2641_s29 + $0x14] sm:$0x1]  ;;  %v330_v61 = vld [vmem:[%s2641_s29 + $0x84] sm:$0xff]  }
  0x12   : > { %v2358_v18 = vunpack.c.h.bf16 %v2387_v12  ;;  %v442_v19 = vmul.f32 %v2373_v7, %v2646_v3  ;;  %v443_v20 = vmul.f32 %v2374_v8, %v2646_v3  ;;  %v444_v21 = vmul.f32 %v2646_v3, %v383_v9  ;;  %v332_v9 = vld [vmem:[%s2641_s29 + $0x8c] sm:$0x1] }
  0x13   : > { %v439_v22 = vmul.f32 %v2646_v3, %v378_v11  ;;  %v440_v23 = vmul.f32 %v2646_v3, %v379_v15  ;;  %v441_v24 = vmul.f32 %v2646_v3, %v380_v16  ;;  %v359_v25 = vunpack.c.l.bf16 %v305_v13  ;;  %v2392_v15 = vld [vmem:[%s2641_s29 + $0x90] sm:$0xff]  }
  0x14   : > { %v418_v26 = vmul.f32 %v2357_v17, %v2646_v3  ;;  %v503_v27 = vadd.f32 %v2659_v14, %v442_v19  ;;  %v504_v28 = vadd.f32 %v2659_v14, %v443_v20  ;;  %v505_v29 = vadd.f32 %v2659_v14, %v444_v21 }
  0x15   : > { %v500_v30 = vadd.f32 %v2659_v14, %v439_v22  ;;  %v501_v31 = vadd.f32 %v2659_v14, %v440_v23  ;;  %v502_v32 = vadd.f32 %v2659_v14, %v441_v24  ;;  %v419_v33 = vmul.f32 %v2358_v18, %v2646_v3  ;;  %v335_v24 = vld [vmem:[%s2641_s29 + $0x98] sm:$0x1] }
  0x16   : > { %v420_v34 = vmul.f32 %v2646_v3, %v359_v25  ;;  %v557_v35 = vmax.f32 %v503_v27, 0.0  ;;  %v558_v36 = vmax.f32 %v504_v28, 0.0  ;;  %v559_v37 = vmax.f32 %v505_v29, 0.0 }
  0x17   : > { %v554_v38 = vmax.f32 %v500_v30, 0.0  ;;  %v555_v39 = vmax.f32 %v501_v31, 0.0  ;;  %v556_v40 = vmax.f32 %v502_v32, 0.0  ;;  %v479_v41 = vadd.f32 %v2659_v14, %v418_v26 }
  0x18   : > { %v480_v42 = vadd.f32 %v2659_v14, %v419_v33  ;;  %v645_v43 = vsel %vm585_vm0, %v557_v35, 0.0  ;;  %v647_v44 = vsel %vm596_vm1, %v559_v37, 0.0  ;;  %v481_v46 = vadd.f32 %v2659_v14, %v420_v34 }
  0x19   : > { %v642_v45 = vsel %vm585_vm0, %v554_v38, 0.0  ;;  %v2686_v48 = vpack.c.bf16 %v558_v36, %v645_v43  ;;  %v2688_v49 = vpack.c.bf16 %v647_v44, %v647_v44  ;;  %v644_v50 = vsel %vm596_vm1, %v556_v40, 0.0 }
  0x1a   : > { %v2692_v51 = vpack.c.bf16 %v555_v39, %v642_v45  ;;  %v2694_v52 = vpack.c.bf16 %v644_v50, %v644_v50  ;;  %v533_v53 = vmax.f32 %v479_v41, 0.0  ;;  %v534_v54 = vmax.f32 %v480_v42, 0.0 }
  0x1b   : > { %v535_v55 = vmax.f32 %v481_v46, 0.0  ;;  %v993_v57 = vrot.slane %v2686_v48, 1  ;;  %v994_v58 = vrot.slane %v2688_v49, 1  ;;  %v354_v60 = vunpack.c.l.bf16 %v300_v47 }
  0x1c   : > { %v990_v59 = vrot.slane %v2692_v51, 1  ;;  %v991_v62 = vrot.slane %v2694_v52, 1  ;;  %v621_v63 = vsel %vm585_vm0, %v533_v53, 0.0  ;;  %v355_v4 = vunpack.c.h.bf16 %v300_v47 }
  0x1d   : > { %v623_v0 = vsel %vm596_vm1, %v535_v55, 0.0  ;;  %v995_v5 = vsel %vm962_vm2, %v993_v57, %v994_v58  ;;  %v2707_v6 = vpack.c.bf16 %v534_v54, %v621_v63  ;;  %v356_v8 = vunpack.c.l.bf16 %v302_v56 }
  0x1e   : > { %v2709_v7 = vpack.c.bf16 %v623_v0, %v623_v0  ;;  %1031 = vrot.lane.b32.xlu0 %v995_v5, %s2578_s11  ;;  %v992_v10 = vsel %vm962_vm2, %v990_v59, %v991_v62  ;;  %v415_v11 = vmul.f32 %v2646_v3, %v354_v60  ;;  %v416_v12 = vmul.f32 %v2646_v3, %v355_v4 }
  0x1f   : > { %v384_v13 = vunpack.c.l.bf16 %v330_v61  ;;  %1029 = vrot.lane.b32.xlu1 %v992_v10, %s2578_s11  ;;  %v969_v16 = vrot.slane %v2707_v6, 1  ;;  %v417_v18 = vmul.f32 %v2646_v3, %v356_v8  ;;  %v385_v19 = vunpack.c.h.bf16 %v330_v61 }
  0x20   : > { %v970_v17 = vrot.slane %v2709_v7, 1  ;;  %v476_v20 = vadd.f32 %v2659_v14, %v415_v11  ;;  %v477_v21 = vadd.f32 %v2659_v14, %v416_v12  ;;  %v386_v22 = vunpack.c.l.bf16 %v332_v9 }
  0x21   : > { %v445_v23 = vmul.f32 %v2646_v3, %v384_v13  ;;  %v478_v26 = vadd.f32 %v2659_v14, %v417_v18  ;;  %v446_v27 = vmul.f32 %v2646_v3, %v385_v19  ;;  %v2377_v28 = vunpack.c.l.bf16 %v2392_v15 }
  0x22   : > { %v971_v25 = vsel %vm962_vm2, %v969_v16, %v970_v17  ;;  %v530_v29 = vmax.f32 %v476_v20, 0.0  ;;  %v531_v30 = vmax.f32 %v477_v21, 0.0  ;;  %v447_v31 = vmul.f32 %v2646_v3, %v386_v22 }
  0x23   : > { %v506_v32 = vadd.f32 %v2659_v14, %v445_v23  ;;  %1015 = vrot.lane.b32.xlu1 %v971_v25, %s2578_s11  ;;  %v532_v33 = vmax.f32 %v478_v26, 0.0  ;;  %v507_v34 = vadd.f32 %v2659_v14, %v446_v27  ;;  %v2378_v35 = vunpack.c.h.bf16 %v2392_v15 }
  0x24   : > { %v389_v36 = vunpack.c.l.bf16 %v335_v24  ;;  %v618_v37 = vsel %vm585_vm0, %v530_v29, 0.0  ;;  %v508_v38 = vadd.f32 %v2659_v14, %v447_v31  ;;  %v448_v40 = vmul.f32 %v2377_v28, %v2646_v3 }
  0x25   : > { %v560_v39 = vmax.f32 %v506_v32, 0.0  ;;  %v620_v41 = vsel %vm596_vm1, %v532_v33, 0.0  ;;  %v2738_v42 = vpack.c.bf16 %v531_v30, %v618_v37  ;;  %v561_v43 = vmax.f32 %v507_v34, 0.0  ;;  %v306_v34 = vld [vmem:[%s2641_s29 + $0x24] sm:$0xff]  }
  0x26   : > { %v449_v44 = vmul.f32 %v2378_v35, %v2646_v3  ;;  %v672_v45 = vpack.c.bf16 %v620_v41, %v620_v41  ;;  %v562_v46 = vmax.f32 %v508_v38, 0.0  ;;  %v450_v50 = vmul.f32 %v2646_v3, %v389_v36 }
  0x27   : > { %v648_v47 = vsel %vm585_vm0, %v560_v39, 0.0  ;;  %v966_v53 = vrot.slane %v2738_v42, 1  ;;  %v719_v55 = vshrl.u32 %v2738_v42, 16  ;;  %v721_v56 = vshll.u32 %v2738_v42, 16 }
  0x28   : > { %v2745_v54 = vpack.c.bf16 %v561_v43, %v648_v47  ;;  %v967_v57 = vrot.slane %v672_v45, 1  ;;  %v650_v58 = vsel %vm596_vm1, %v562_v46, 0.0  ;;  %v726_v59 = vshll.u32 %v672_v45, 16  ;;  %v308_v43 = vld [vmem:[%s2641_s29 + $0x2c] sm:$0x1] }
  0x29   : > { %v509_v60 = vadd.f32 %v2659_v14, %v448_v40  ;;  %v2752_v61 = vpack.c.bf16 %v650_v58, %v650_v58  ;;  %v723_v63 = vrot.slane %v721_v56, 1  ;;  %v510_v0 = vadd.f32 %v2659_v14, %v449_v44 }
  0x2a   : > { %v996_v62 = vrot.slane %v2745_v54, 1  ;;  %v968_v4 = vsel %vm962_vm2, %v966_v53, %v967_v57  ;;  %v728_v5 = vrot.slane %v726_v59, 1  ;;  %v511_v8 = vadd.f32 %v2659_v14, %v450_v50  ;;  %v2388_v57 = vld [vmem:[%s2641_s29 + $0x30] sm:$0xff]  }
  0x2b   : > { %v563_v9 = vmax.f32 %v509_v60, 0.0  ;;  %1013 = vrot.lane.b32.xlu0 %v968_v4, %s2578_s11  ;;  %v997_v10 = vrot.slane %v2752_v61, 1  ;;  %v724_v11 = vor.u32 %v723_v63, %v719_v55  ;;  %v564_v12 = vmax.f32 %v510_v0, 0.0 }
  0x2c   : > { %v731_v13 = vshrl.u32 %v2707_v6, 16  ;;  %v565_v15 = vmax.f32 %v511_v8, 0.0  ;;  %v733_v17 = vshll.u32 %v2707_v6, 16  ;;  %v738_v18 = vshll.u32 %v2709_v7, 16 }
  0x2d   : > { %v651_v16 = vsel %vm585_vm0, %v563_v9, 0.0  ;;  %v998_v19 = vsel %vm962_vm2, %v996_v62, %v997_v10  ;;  %v729_v20 = vsel %vm705_vm3, %v724_v11, %v728_v5  ;;  %v815_v22 = vshrl.u32 %v2692_v51, 16  ;;  %v311_v5 = vld [vmem:[%s2641_s29 + $0x38] sm:$0x1] }
  0x2e   : > { %v2767_v21 = vpack.c.bf16 %v564_v12, %v651_v16  ;;  %900 = vrot.lane.b32.xlu1 %v729_v20, %s2579_s12  ;;  %v653_v23 = vsel %vm596_vm1, %v565_v15, 0.0  ;;  %v735_v24 = vrot.slane %v733_v17, 1  ;;  %v740_v25 = vrot.slane %v738_v18, 1  ;;  %v336_v12 = vld [vmem:[%s2641_s29 + $0x9c] sm:$0xff]  }
  0x2f   : > { %v817_v26 = vshll.u32 %v2692_v51, 16  ;;  %1033 = vrot.lane.b32.xlu0 %v998_v19, %s2578_s11  ;;  %v694_v7 = vpack.c.bf16 %v653_v23, %v653_v23  ;;  %v822_v28 = vshll.u32 %v2694_v52, 16  ;;  %v827_v33 = vshrl.u32 %v2686_v48, 16 }
  0x30   : > { %v999_v27 = vrot.slane %v2767_v21, 1  ;;  %v851_v29 = vshrl.u32 %v2767_v21, 16  ;;  %v736_v30 = vor.u32 %v735_v24, %v731_v13  ;;  %v853_v32 = vshll.u32 %v2767_v21, 16 }
  0x31   : > { %v819_v31 = vrot.slane %v817_v26, 1  ;;  %v1000_v35 = vrot.slane %v694_v7, 1  ;;  %v824_v36 = vrot.slane %v822_v28, 1  ;;  %v858_v37 = vshll.u32 %v694_v7, 16 }
  0x32   : > { %v829_v38 = vshll.u32 %v2686_v48, 16  ;;  %v741_v39 = vsel %vm705_vm3, %v736_v30, %v740_v25  ;;  %v855_v41 = vrot.slane %v853_v32, 1  ;;  %v834_v52 = vshll.u32 %v2688_v49, 16  ;;  %v338_v25 = vld [vmem:[%s2641_s29 + $0xa4] sm:$0x1] }
  0x33   : > { %v820_v40 = vor.u32 %v819_v31, %v815_v22  ;;  %v1001_v44 = vsel %vm962_vm2, %v999_v27, %v1000_v35  ;;  %902 = vrot.lane.b32.xlu1 %v741_v39, %s2579_s12  ;;  %v860_v45 = vrot.slane %v858_v37, 1  ;;  %v360_v47 = vunpack.c.l.bf16 %v306_v34 }
  0x34   : > { %v831_v46 = vrot.slane %v829_v38, 1  ;;  %1035 = vrot.lane.b32.xlu0 %v1001_v44, %s2578_s11  ;;  %v856_v53 = vor.u32 %v855_v41, %v851_v29  ;;  %v836_v55 = vrot.slane %v834_v52, 1  ;;  %v361_v56 = vunpack.c.h.bf16 %v306_v34 }
  0x35   : > { %v825_v50 = vsel %vm705_vm3, %v820_v40, %v824_v36  ;;  %v362_v49 = vunpack.c.l.bf16 %v308_v43  ;;  %v421_v59 = vmul.f32 %v2646_v3, %v360_v47  ;;  %v839_v60 = vshrl.u32 %v2745_v54, 16 }
  0x36   : > { %v832_v58 = vor.u32 %v831_v46, %v827_v33  ;;  %v861_v62 = vsel %vm705_vm3, %v856_v53, %v860_v45  ;;  %v422_v63 = vmul.f32 %v2646_v3, %v361_v56  ;;  %v841_v0 = vshll.u32 %v2745_v54, 16 }
  0x37   : > { %v846_v4 = vshll.u32 %v2752_v61, 16  ;;  %922 = vrot.lane.b32.xlu1 %v861_v62, %s2579_s12  ;;  %v423_v9 = vmul.f32 %v2646_v3, %v362_v49  ;;  %v482_v10 = vadd.f32 %v2659_v14, %v421_v59  ;;  %v2361_v11 = vunpack.c.l.bf16 %v2388_v57 }
  0x38   : > { %v837_v8 = vsel %vm705_vm3, %v832_v58, %v836_v55  ;;  %916 = vrot.lane.b32.xlu0 %v825_v50, %s2579_s12  ;;  %v483_v13 = vadd.f32 %v2659_v14, %v422_v63  ;;  %v843_v15 = vrot.slane %v841_v0, 1  ;;  %v2362_v17 = vunpack.c.h.bf16 %v2388_v57  ;;  %v2393_v63 = vld [vmem:[%s2641_s29 + $0xa8] sm:$0xff]  }
  0x39   : > { %v848_v16 = vrot.slane %v846_v4, 1  ;;  %v484_v61 = vadd.f32 %v2659_v14, %v423_v9  ;;  %v536_v18 = vmax.f32 %v482_v10, 0.0  ;;  %v365_v19 = vunpack.c.l.bf16 %v311_v5 }
  0x3a   : > { %v424_v20 = vmul.f32 %v2361_v11, %v2646_v3  ;;  %v537_v22 = vmax.f32 %v483_v13, 0.0  ;;  %v844_v23 = vor.u32 %v843_v15, %v839_v60  ;;  %v425_v24 = vmul.f32 %v2362_v17, %v2646_v3  ;;  %v341_v13 = vld [vmem:[%s2641_s29 + $0xb0] sm:$0x1] }
  0x3b   : > { %v390_v26 = vunpack.c.l.bf16 %v336_v12  ;;  %v538_v7 = vmax.f32 %v484_v61, 0.0  ;;  %v624_v27 = vsel %vm585_vm0, %v536_v18, 0.0  ;;  %v426_v28 = vmul.f32 %v2646_v3, %v365_v19  ;;  %v312_v18 = vld [vmem:[%s2641_s29 + $0x3c] sm:$0xff]  }
  0x3c   : > { %v485_v29 = vadd.f32 %v2659_v14, %v424_v20  ;;  %918 = vrot.lane.b32.xlu0 %v837_v8, %s2579_s12  ;;  %v2813_v30 = vpack.c.bf16 %v537_v22, %v624_v27  ;;  %v849_v31 = vsel %vm705_vm3, %v844_v23, %v848_v16  ;;  %v486_v32 = vadd.f32 %v2659_v14, %v425_v24 }
  0x3d   : > { %v391_v33 = vunpack.c.h.bf16 %v336_v12  ;;  %v626_v34 = vsel %vm596_vm1, %v538_v7, 0.0  ;;  %v487_v35 = vadd.f32 %v2659_v14, %v426_v28  ;;  %v392_v37 = vunpack.c.l.bf16 %v338_v25 }
  0x3e   : > { %v539_v36 = vmax.f32 %v485_v29, 0.0  ;;  %v676_v38 = vpack.c.bf16 %v626_v34, %v626_v34  ;;  %v743_v39 = vshrl.u32 %v2813_v30, 16  ;;  %v745_v40 = vshll.u32 %v2813_v30, 16 }
  0x3f   : > { %v540_v41 = vmax.f32 %v486_v32, 0.0  ;;  %v541_v52 = vmax.f32 %v487_v35, 0.0  ;;  %v972_v44 = vrot.slane %v2813_v30, 1  ;;  %v451_v45 = vmul.f32 %v2646_v3, %v390_v26 }
  0x40   : > { %v627_v43 = vsel %vm585_vm0, %v539_v36, 0.0  ;;  %v747_v46 = vrot.slane %v745_v40, 1  ;;  %v750_v47 = vshll.u32 %v676_v38, 16  ;;  %920 = vrot.lane.b32.xlu0 %v849_v31, %s2579_s12  ;;  %v973_v53 = vrot.slane %v676_v38, 1  ;;  %v314_v36 = vld [vmem:[%s2641_s29 + $0x44] sm:$0x1] }
  0x41   : > { %v2827_v50 = vpack.c.bf16 %v540_v41, %v627_v43  ;;  %v629_v55 = vsel %vm596_vm1, %v541_v52, 0.0  ;;  %v452_v56 = vmul.f32 %v2646_v3, %v391_v33  ;;  %v453_v57 = vmul.f32 %v2646_v3, %v392_v37 }
  0x42   : > { %v512_v58 = vadd.f32 %v2659_v14, %v451_v45  ;;  %v748_v49 = vor.u32 %v747_v46, %v743_v39  ;;  %v752_v59 = vrot.slane %v750_v47, 1  ;;  %v678_v60 = vpack.c.bf16 %v629_v55, %v629_v55  ;;  %v2389_v55 = vld [vmem:[%s2641_s29 + $0x48] sm:$0xff]  }
  0x43   : > { %v755_v62 = vshrl.u32 %v2827_v50, 16  ;;  %v757_v0 = vshll.u32 %v2827_v50, 16  ;;  %v974_v4 = vsel %vm962_vm2, %v972_v44, %v973_v53  ;;  %v975_v5 = vrot.slane %v2827_v50, 1 }
  0x44   : > { %v513_v8 = vadd.f32 %v2659_v14, %v452_v56  ;;  %v753_v9 = vsel %vm705_vm3, %v748_v49, %v752_v59  ;;  %v762_v10 = vshll.u32 %v678_v60, 16  ;;  %1017 = vrot.lane.b32.xlu0 %v974_v4, %s2578_s11  ;;  %v976_v11 = vrot.slane %v678_v60, 1 }
  0x45   : > { %v514_v12 = vadd.f32 %v2659_v14, %v453_v57  ;;  %904 = vrot.lane.b32.xlu1 %v753_v9, %s2579_s12  ;;  %v759_v15 = vrot.slane %v757_v0, 1  ;;  %v566_v16 = vmax.f32 %v512_v58, 0.0  ;;  %v2381_v61 = vunpack.c.l.bf16 %v2393_v63  ;;  %v317_v9 = vld [vmem:[%s2641_s29 + $0x50] sm:$0x1] }
  0x46   : > { %v567_v17 = vmax.f32 %v513_v8, 0.0  ;;  %v764_v19 = vrot.slane %v762_v10, 1  ;;  %v977_v20 = vsel %vm962_vm2, %v975_v5, %v976_v11  ;;  %v2382_v23 = vunpack.c.h.bf16 %v2393_v63 }
  0x47   : > { %v568_v22 = vmax.f32 %v514_v12, 0.0  ;;  %v760_v24 = vor.u32 %v759_v15, %v755_v62  ;;  %v654_v25 = vsel %vm585_vm0, %v566_v16, 0.0  ;;  %v395_v26 = vunpack.c.l.bf16 %v341_v13 }
  0x48   : > { %v454_v7 = vmul.f32 %v2381_v61, %v2646_v3  ;;  %v2852_v28 = vpack.c.bf16 %v567_v17, %v654_v25  ;;  %v455_v29 = vmul.f32 %v2382_v23, %v2646_v3  ;;  %v366_v31 = vunpack.c.l.bf16 %v312_v18 }
  0x49   : > { %v656_v27 = vsel %vm596_vm1, %v568_v22, 0.0  ;;  %v765_v32 = vsel %vm705_vm3, %v760_v24, %v764_v19  ;;  %v456_v34 = vmul.f32 %v2646_v3, %v395_v26  ;;  %v367_v47 = vunpack.c.h.bf16 %v312_v18 }
  0x4a   : > { %v696_v33 = vpack.c.bf16 %v656_v27, %v656_v27  ;;  %v515_v35 = vadd.f32 %v2659_v14, %v454_v7  ;;  %906 = vrot.lane.b32.xlu1 %v765_v32, %s2579_s12  ;;  %v863_v37 = vshrl.u32 %v2852_v28, 16  ;;  %v865_v38 = vshll.u32 %v2852_v28, 16  ;;  %v342_v32 = vld [vmem:[%s2641_s29 + $0xb4] sm:$0xff]  }
  0x4b   : > { %v516_v39 = vadd.f32 %v2659_v14, %v455_v29  ;;  %v1002_v40 = vrot.slane %v2852_v28, 1  ;;  %v517_v52 = vadd.f32 %v2659_v14, %v456_v34  ;;  %v368_v53 = vunpack.c.l.bf16 %v314_v36 }
  0x4c   : > { %v870_v41 = vshll.u32 %v696_v33, 16  ;;  %v569_v43 = vmax.f32 %v515_v35, 0.0  ;;  %v1003_v44 = vrot.slane %v696_v33, 1  ;;  %v867_v45 = vrot.slane %v865_v38, 1 }
  0x4d   : > { %v570_v46 = vmax.f32 %v516_v39, 0.0  ;;  %v571_v57 = vmax.f32 %v517_v52, 0.0  ;;  %v427_v62 = vmul.f32 %v2646_v3, %v366_v31  ;;  %v428_v63 = vmul.f32 %v2646_v3, %v367_v47 }
  0x4e   : > { %v872_v56 = vrot.slane %v870_v41, 1  ;;  %v657_v58 = vsel %vm585_vm0, %v569_v43, 0.0  ;;  %v1004_v49 = vsel %vm962_vm2, %v1002_v40, %v1003_v44  ;;  %1019 = vrot.lane.b32.xlu1 %v977_v20, %s2578_s11  ;;  %v868_v59 = vor.u32 %v867_v45, %v863_v37  ;;  %v344_v43 = vld [vmem:[%s2641_s29 + $0xbc] sm:$0x1] }
  0x4f   : > { %v2870_v60 = vpack.c.bf16 %v570_v46, %v657_v58  ;;  %v659_v0 = vsel %vm596_vm1, %v571_v57, 0.0  ;;  %v429_v4 = vmul.f32 %v2646_v3, %v368_v53  ;;  %v2365_v5 = vunpack.c.l.bf16 %v2389_v55 }
  0x50   : > { %v2366_v8 = vunpack.c.h.bf16 %v2389_v55  ;;  %v873_v10 = vsel %vm705_vm3, %v868_v59, %v872_v56  ;;  %v698_v11 = vpack.c.bf16 %v659_v0, %v659_v0  ;;  %v488_v15 = vadd.f32 %v2659_v14, %v427_v62 }
  0x51   : > { %v875_v12 = vshrl.u32 %v2870_v60, 16  ;;  %v877_v13 = vshll.u32 %v2870_v60, 16  ;;  %924 = vrot.lane.b32.xlu0 %v873_v10, %s2579_s12  ;;  %v489_v16 = vadd.f32 %v2659_v14, %v428_v63  ;;  %v490_v17 = vadd.f32 %v2659_v14, %v429_v4 }
  0x52   : > { %v1005_v61 = vrot.slane %v2870_v60, 1  ;;  %v882_v19 = vshll.u32 %v698_v11, 16  ;;  %v1006_v20 = vrot.slane %v698_v11, 1  ;;  %v371_v22 = vunpack.c.l.bf16 %v317_v9 }
  0x53   : > { %v879_v18 = vrot.slane %v877_v13, 1  ;;  %v542_v23 = vmax.f32 %v488_v15, 0.0  ;;  %v543_v24 = vmax.f32 %v489_v16, 0.0  ;;  %v544_v25 = vmax.f32 %v490_v17, 0.0  ;;  %v2394_v15 = vld [vmem:[%s2641_s29 + $0xc0] sm:$0xff]  }
  0x54   : > { %v430_v26 = vmul.f32 %v2365_v5, %v2646_v3  ;;  %v884_v27 = vrot.slane %v882_v19, 1  ;;  %v1007_v29 = vsel %vm962_vm2, %v1005_v61, %v1006_v20  ;;  %v431_v31 = vmul.f32 %v2366_v8, %v2646_v3 }
  0x55   : > { %v880_v7 = vor.u32 %v879_v18, %v875_v12  ;;  %1037 = vrot.lane.b32.xlu0 %v1004_v49, %s2578_s11  ;;  %v630_v33 = vsel %vm585_vm0, %v542_v23, 0.0  ;;  %v632_v34 = vsel %vm596_vm1, %v544_v25, 0.0  ;;  %v432_v35 = vmul.f32 %v2646_v3, %v371_v22 }
  0x56   : > { %v491_v36 = vadd.f32 %v2659_v14, %v430_v26  ;;  %v2898_v38 = vpack.c.bf16 %v543_v24, %v630_v33  ;;  %v680_v39 = vpack.c.bf16 %v632_v34, %v632_v34  ;;  %v492_v40 = vadd.f32 %v2659_v14, %v431_v31  ;;  %v347_v24 = vld [vmem:[%s2641_s29 + $0xc8] sm:$0x1] }
  0x57   : > { %v885_v37 = vsel %vm705_vm3, %v880_v7, %v884_v27  ;;  %v493_v41 = vadd.f32 %v2659_v14, %v432_v35  ;;  %v396_v44 = vunpack.c.l.bf16 %v342_v32  ;;  %v397_v45 = vunpack.c.h.bf16 %v342_v32 }
  0x58   : > { %926 = vrot.lane.b32.xlu1 %v885_v37, %s2579_s12  ;;  %v545_v52 = vmax.f32 %v491_v36, 0.0  ;;  %v767_v46 = vshrl.u32 %v2898_v38, 16  ;;  %v769_v47 = vshll.u32 %v2898_v38, 16  ;;  %v774_v53 = vshll.u32 %v680_v39, 16 }
  0x59   : > { %v546_v55 = vmax.f32 %v492_v40, 0.0  ;;  %1039 = vrot.lane.b32.xlu0 %v1007_v29, %s2578_s11  ;;  %v547_v56 = vmax.f32 %v493_v41, 0.0  ;;  %v978_v58 = vrot.slane %v2898_v38, 1  ;;  %v979_v49 = vrot.slane %v680_v39, 1  ;;  %v318_v29 = vld [vmem:[%s2641_s29 + $0x54] sm:$0xff]  }
  0x5a   : > { %v633_v57 = vsel %vm585_vm0, %v545_v52, 0.0  ;;  %v771_v59 = vrot.slane %v769_v47, 1  ;;  %v776_v62 = vrot.slane %v774_v53, 1  ;;  %v398_v0 = vunpack.c.l.bf16 %v344_v43  ;;  %v320_v43 = vld [vmem:[%s2641_s29 + $0x5c] sm:$0x1] }
  0x5b   : > { %v2910_v63 = vpack.c.bf16 %v546_v55, %v633_v57  ;;  %v635_v4 = vsel %vm596_vm1, %v547_v56, 0.0  ;;  %v980_v5 = vsel %vm962_vm2, %v978_v58, %v979_v49  ;;  %v457_v8 = vmul.f32 %v2646_v3, %v396_v44 }
  0x5c   : > { %v458_v9 = vmul.f32 %v2646_v3, %v397_v45  ;;  %v772_v10 = vor.u32 %v771_v59, %v767_v46  ;;  %v682_v11 = vpack.c.bf16 %v635_v4, %v635_v4  ;;  %v459_v17 = vmul.f32 %v2646_v3, %v398_v0 }
  0x5d   : > { %v779_v12 = vshrl.u32 %v2910_v63, 16  ;;  %v781_v13 = vshll.u32 %v2910_v63, 16  ;;  %1021 = vrot.lane.b32.xlu0 %v980_v5, %s2578_s11  ;;  %v981_v16 = vrot.slane %v2910_v63, 1  ;;  %v518_v61 = vadd.f32 %v2659_v14, %v457_v8 }
  0x5e   : > { %v519_v18 = vadd.f32 %v2659_v14, %v458_v9  ;;  %v777_v19 = vsel %vm705_vm3, %v772_v10, %v776_v62  ;;  %v786_v22 = vshll.u32 %v682_v11, 16  ;;  %v982_v23 = vrot.slane %v682_v11, 1 }
  0x5f   : > { %v783_v20 = vrot.slane %v781_v13, 1  ;;  %908 = vrot.lane.b32.xlu1 %v777_v19, %s2579_s12  ;;  %v520_v25 = vadd.f32 %v2659_v14, %v459_v17  ;;  %v572_v26 = vmax.f32 %v518_v61, 0.0  ;;  %v2385_v27 = vunpack.c.l.bf16 %v2394_v15 }
  0x60   : > { %v573_v7 = vmax.f32 %v519_v18, 0.0  ;;  %v788_v32 = vrot.slane %v786_v22, 1  ;;  %v983_v33 = vsel %vm962_vm2, %v981_v16, %v982_v23  ;;  %v2386_v34 = vunpack.c.h.bf16 %v2394_v15  ;;  %v2390_v15 = vld [vmem:[%s2641_s29 + $0x60] sm:$0xff]  }
  0x61   : > { %v784_v31 = vor.u32 %v783_v20, %v779_v12  ;;  %v574_v35 = vmax.f32 %v520_v25, 0.0  ;;  %v660_v36 = vsel %vm585_vm0, %v572_v26, 0.0  ;;  %v401_v37 = vunpack.c.l.bf16 %v347_v24 }
  0x62   : > { %v460_v39 = vmul.f32 %v2385_v27, %v2646_v3  ;;  %v2935_v41 = vpack.c.bf16 %v573_v7, %v660_v36  ;;  %v461_v52 = vmul.f32 %v2386_v34, %v2646_v3  ;;  %v372_v44 = vunpack.c.l.bf16 %v318_v29  ;;  %v323_v27 = vld [vmem:[%s2641_s29 + $0x68] sm:$0x1]  ;;  %s292_s29 = scalar_lea.vmem %s3436_s6, %s3439_s25 }
  0x63   : > { %v789_v40 = vsel %vm705_vm3, %v784_v31, %v788_v32  ;;  %v662_v45 = vsel %vm596_vm1, %v574_v35, 0.0  ;;  %v462_v46 = vmul.f32 %v2646_v3, %v401_v37  ;;  %v373_v53 = vunpack.c.h.bf16 %v318_v29 }
  0x64   : > { %910 = vrot.lane.b32.xlu1 %v789_v40, %s2579_s12  ;;  %v521_v47 = vadd.f32 %v2659_v14, %v460_v39  ;;  %v700_v55 = vpack.c.bf16 %v662_v45, %v662_v45  ;;  %v887_v56 = vshrl.u32 %v2935_v41, 16  ;;  %v889_v57 = vshll.u32 %v2935_v41, 16 }
  0x65   : > { %v1008_v58 = vrot.slane %v2935_v41, 1  ;;  %v522_v49 = vadd.f32 %v2659_v14, %v461_v52  ;;  %v523_v59 = vadd.f32 %v2659_v14, %v462_v46  ;;  %v374_v0 = vunpack.c.l.bf16 %v320_v43 }
  0x66   : > { %v575_v62 = vmax.f32 %v521_v47, 0.0  ;;  %v891_v4 = vrot.slane %v889_v57, 1  ;;  %v894_v5 = vshll.u32 %v700_v55, 16  ;;  %v1009_v8 = vrot.slane %v700_v55, 1 }
  0x67   : > { %v433_v9 = vmul.f32 %v2646_v3, %v372_v44  ;;  %v576_v10 = vmax.f32 %v522_v49, 0.0  ;;  %v577_v11 = vmax.f32 %v523_v59, 0.0  ;;  %v434_v13 = vmul.f32 %v2646_v3, %v373_v53 }
  0x68   : > { %1023 = vrot.lane.b32.xlu1 %v983_v33, %s2578_s11  ;;  %v663_v12 = vsel %vm585_vm0, %v575_v62, 0.0  ;;  %v892_v16 = vor.u32 %v891_v4, %v887_v56  ;;  %v896_v17 = vrot.slane %v894_v5, 1  ;;  %v1010_v61 = vsel %vm962_vm2, %v1008_v58, %v1009_v8  ;;  %v2567_v62 = vld [vmem:[%s3433_s3 + $0x8] sm:$0x3f]  }
  0x69   : > { %v435_v18 = vmul.f32 %v2646_v3, %v374_v0  ;;  %v665_v19 = vsel %vm596_vm1, %v577_v11, 0.0  ;;  %v2959_v20 = vpack.c.bf16 %v576_v10, %v663_v12  ;;  %v494_v22 = vadd.f32 %v2659_v14, %v433_v9  ;;  %2550 = vmatprep.subr.msk.bf16.mxu0 %vm1177_vm4, %v2567_v62  ;;  %2551 = vmatprep.subr.msk.bf16.mxu1 %vm1177_vm4, %v2567_v62 }
  0x6a   : > { %v495_v23 = vadd.f32 %v2659_v14, %v434_v13  ;;  %v897_v24 = vsel %vm705_vm3, %v892_v16, %v896_v17  ;;  %v702_v25 = vpack.c.bf16 %v665_v19, %v665_v19  ;;  %v2369_v7 = vunpack.c.l.bf16 %v2390_v15 }
  0x6b   : > { %v496_v26 = vadd.f32 %v2659_v14, %v435_v18  ;;  %928 = vrot.lane.b32.xlu0 %v897_v24, %s2579_s12  ;;  %v1112_v29 = vshrl.u32 %v2959_v20, 16  ;;  %v1114_v31 = vshll.u32 %v2959_v20, 16  ;;  %v548_v32 = vmax.f32 %v494_v22, 0.0 }
  0x6c   : > { %1041 = vrot.lane.b32.xlu1 %v1010_v61, %s2578_s11  ;;  %v549_v33 = vmax.f32 %v495_v23, 0.0  ;;  %v1119_v34 = vshll.u32 %v702_v25, 16  ;;  %v1127_v36 = vrot.slane %v2959_v20, 1  ;;  %v1128_v37 = vrot.slane %v702_v25, 1  ;;  %v2568_v61 = vld [vmem:[%s3433_s3] sm:$0x3f]  }
  0x6d   : > { %v550_v35 = vmax.f32 %v496_v26, 0.0  ;;  %v1116_v39 = vrot.slane %v1114_v31, 1  ;;  %v636_v40 = vsel %vm585_vm0, %v548_v32, 0.0  ;;  %v2370_v52 = vunpack.c.h.bf16 %v2390_v15 }
  0x6e   : > { %v377_v43 = vunpack.c.l.bf16 %v323_v27  ;;  %v1121_v44 = vrot.slane %v1119_v34, 1  ;;  %v2975_v46 = vpack.c.bf16 %v549_v33, %v636_v40  ;;  %v436_v55 = vmul.f32 %v2369_v7, %v2646_v3 }
  0x6f   : > { %v638_v45 = vsel %vm596_vm1, %v550_v35, 0.0  ;;  %v1117_v47 = vor.u32 %v1116_v39, %v1112_v29  ;;  %v437_v56 = vmul.f32 %v2370_v52, %v2646_v3  ;;  %v1129_v49 = vsel %vm962_vm2, %v1127_v36, %v1128_v37 }
  0x70   : > { %v684_v53 = vpack.c.bf16 %v638_v45, %v638_v45  ;;  %v791_v57 = vshrl.u32 %v2975_v46, 16  ;;  %v793_v58 = vshll.u32 %v2975_v46, 16  ;;  %v438_v59 = vmul.f32 %v2646_v3, %v377_v43 }
  0x71   : > { %v1122_v0 = vsel %vm705_vm3, %v1117_v47, %v1121_v44  ;;  %v497_v5 = vadd.f32 %v2659_v14, %v436_v55  ;;  %v498_v8 = vadd.f32 %v2659_v14, %v437_v56  ;;  %v984_v11 = vrot.slane %v2975_v46, 1 }
  0x72   : > { %v798_v4 = vshll.u32 %v684_v53, 16  ;;  %1123 = vrot.lane.b32.xlu0 %v1122_v0, %s2579_s12  ;;  %v795_v9 = vrot.slane %v793_v58, 1  ;;  %v499_v10 = vadd.f32 %v2659_v14, %v438_v59  ;;  %v985_v12 = vrot.slane %v684_v53, 1  ;;  %v2569_v14 = vld [vmem:[%s3433_s3 + $0x10] sm:$0x3f]  }
  0x73   : > { %v551_v13 = vmax.f32 %v497_v5, 0.0  ;;  %v552_v15 = vmax.f32 %v498_v8, 0.0  ;;  %v1179_v19 = vsel %vm1177_vm4, %v2567_v62, 0  ;;  %v2580_v29 = vmov 0  }
  0x74   : > { %v800_v3 = vrot.slane %v798_v4, 1  ;;  %v796_v16 = vor.u32 %v795_v9, %v791_v57  ;;  %v553_v17 = vmax.f32 %v499_v10, 0.0  ;;  %2447 = vmatpush3.bf16.msra.mxu0 %v1179_v19  ;;  %v986_v26 = vsel %vm962_vm2, %v984_v11, %v985_v12  ;;  %2549 = vmatpush3.bf16.msra.mxu1 %v1179_v19 }
  0x75   : > { %v639_v18 = vsel %vm585_vm0, %v551_v13, 0.0  ;;  %2552 = vmatprep.subr.msk.bf16.mxu1 %vm1177_vm4, %v2568_v61  ;;  %2553 = vmatprep.subr.msk.bf16.mxu0 %vm1177_vm4, %v2569_v14  ;;  %v711_v31 = vrot.slane %v2580_v29, 1  ;;  %v2581_v39 = vmov 0.0|0.0   ;;  %v1549_v59 = vsel %vm1177_vm4, %v2569_v14, 0 }
  0x76   : > { %v801_v22 = vsel %vm705_vm3, %v796_v16, %v800_v3  ;;  %1130 = vrot.lane.b32.xlu0 %v1129_v49, %s2578_s11  ;;  %v641_v23 = vsel %vm596_vm1, %v553_v17, 0.0  ;;  %v3007_v24 = vpack.c.bf16 %v552_v15, %v639_v18  ;;  %v963_v40 = vrot.slane %v2581_v39, 1 }
  0x77   : > { %912 = vrot.lane.b32.xlu1 %v801_v22, %s2579_s12  ;;  %v686_v25 = vpack.c.bf16 %v641_v23, %v641_v23  ;;  %v1350_v8 = vsel %vm1177_vm4, %v2568_v61, 0 }
  0x78   : > { %v803_v1 = vshrl.u32 %v3007_v24, 16  ;;  %v805_v7 = vshll.u32 %v3007_v24, 16  ;;  %v987_v34 = vrot.slane %v3007_v24, 1 }
  0x79   : > { %v810_v27 = vshll.u32 %v686_v25, 16  ;;  %v988_v35 = vrot.slane %v686_v25, 1 }
  0x7a   : > { %v807_v2 = vrot.slane %v805_v7, 1  ;;  %1025 = vrot.lane.b32.xlu0 %v986_v26, %s2578_s11 }
  0x7b   : > { %v812_v32 = vrot.slane %v810_v27, 1  ;;  %v989_v37 = vsel %vm962_vm2, %v987_v34, %v988_v35 }
  0x7c   : > { %v808_v33 = vor.u32 %v807_v2, %v803_v1 }
  0x7e   : > { %v813_v36 = vsel %vm705_vm3, %v808_v33, %v812_v32  ;;  %898 = vrot.lane.b32.xlu0 %v711_v31, %s2579_s12 }
  0x7f   : > { %914 = vrot.lane.b32.xlu1 %v813_v36, %s2579_s12 }
  0x82   : > { %1525 = vrot.lane.b32.xlu0 %v711_v31, %s2579_s12 }
  0x83   : > { %1027 = vrot.lane.b32.xlu1 %v989_v37, %s2578_s11 }
  0x87   : > { %1011 = vrot.lane.b32.xlu1 %v963_v40, %s2578_s11 }
  0x8b   : > { %1532 = vrot.lane.b32.xlu1 %v963_v40, %s2578_s11 }
  0x90   : > { %v1032_v43 = vpop.permute.xlu0 %1031 }
  0x91   : > { %v1030_v52 = vpop.permute.xlu1 %1029 }
  0x95   : > { %v1016_v44 = vpop.permute.xlu1 %1015 }
  0x9d   : > { %v1014_v45 = vpop.permute.xlu0 %1013 }
  0xa0   : > { %v901_v47 = vpop.permute.xlu1 %900 }
  0xa1   : > { %v1034_v53 = vpop.permute.xlu0 %1033  ;;  %v1047_v55 = vsel %vm1043_vm5, %v2738_v42, %v901_v47 }
  0xa2   : > { %v3028_v56 = vsel %vm1076_vm6, %v1047_v55, %v1014_v45 }
  0xa3   : > { %2448 = vmatprep.mubr.msk.bf16.mxu0 %vm1144_vm7, %v3028_v56 }
  0xa5   : > { %v903_v57 = vpop.permute.xlu1 %902 }
  0xa6   : > { %v1036_v58 = vpop.permute.xlu0 %1035  ;;  %v1049_v49 = vsel %vm1043_vm5, %v2707_v6, %v903_v57 }
  0xa7   : > { %v3036_v62 = vsel %vm1076_vm6, %v1049_v49, %v1016_v44 }
  0xa8   : > { %2449 = vmatmul.mubr.msk.bf16.vlgmr.msra.gmra.mxu0 %vm1144_vm7, %v3036_v62 }
  0xa9   : > { %2515 = vmatpush3.bf16.msra.mxu0 %v1549_v59  ;;  %v923_v10 = vpop.permute.xlu1 %922 }
  0xaa   : > { %v917_v42 = vpop.permute.xlu0 %916 }
  0xab   : > { %v1063_v0 = vsel %vm1043_vm5, %v2692_v51, %v917_v42 }
  0xac   : > { %v3043_v4 = vsel %vm1076_vm6, %v1063_v0, %v1030_v52 }
  0xad   : > { %2464 = vmatprep.mubr.msk.bf16.mxu1 %vm1144_vm7, %v3043_v4 }
  0xae   : > { %v919_v6 = vpop.permute.xlu0 %918 }
  0xaf   : > { %v1065_v5 = vsel %vm1043_vm5, %v2686_v48, %v919_v6  ;;  %v1069_v48 = vsel %vm1043_vm5, %v2767_v21, %v923_v10 }
  0xb0   : > { %v3051_v9 = vsel %vm1076_vm6, %v1065_v5, %v1032_v43  ;;  %v3067_v16 = vsel %vm1076_vm6, %v1069_v48, %v1036_v58 }
  0xb1   : > { %2465 = vmatmul.mubr.msk.bf16.vlgmr.msra.gmra.mxu1 %vm1144_vm7, %v3051_v9 }
  0xb2   : > { %v921_v51 = vpop.permute.xlu0 %920  ;;  %2481 = vmatpush3.bf16.msra.mxu1 %v1350_v8 }
  0xb3   : > { %v1067_v11 = vsel %vm1043_vm5, %v2745_v54, %v921_v51 }
  0xb4   : > { %v3058_v12 = vsel %vm1076_vm6, %v1067_v11, %v1034_v53 }
  0xb5   : > { %2468 = vmatprep.mubr.msk.bf16.mxu1 %vm1144_vm7, %v3058_v12 }
  0xb6   : > { %v1018_v3 = vpop.permute.xlu0 %1017 }
  0xb7   : > { %v905_v13 = vpop.permute.xlu1 %904 }
  0xb8   : > { %v1051_v15 = vsel %vm1043_vm5, %v2813_v30, %v905_v13 }
  0xb9   : > { %v1084_v17 = vsel %vm1076_vm6, %v1051_v15, %v1018_v3  ;;  %2469 = vmatmul.mubr.msk.bf16.gmra.mxu1 %vm1144_vm7, %v3067_v16 }
  0xba   : > { %2452 = vmatprep.mubr.msk.bf16.mxu0 %vm1144_vm7, %v1084_v17 }
  0xbc   : > { %v907_v54 = vpop.permute.xlu1 %906 }
  0xbd   : > { %v1053_v21 = vsel %vm1043_vm5, %v2827_v50, %v907_v54 }
  0xc0   : > { %v1020_v61 = vpop.permute.xlu1 %1019 }
  0xc1   : > { %v1086_v14 = vsel %vm1076_vm6, %v1053_v21, %v1020_v61 }
  0xc2   : > { %2453 = vmatmul.mubr.msk.bf16.gmra.mxu0 %vm1144_vm7, %v1086_v14 }
  0xc3   : > { %v925_v30 = vpop.permute.xlu0 %924 }
  0xc4   : > { %v1071_v18 = vsel %vm1043_vm5, %v2852_v28, %v925_v30 }
  0xc7   : > { %v1038_v19 = vpop.permute.xlu0 %1037 }
  0xc8   : > { %v3080_v22 = vsel %vm1076_vm6, %v1071_v18, %v1038_v19 }
  0xc9   : > { %2472 = vmatprep.mubr.msk.bf16.mxu1 %vm1144_vm7, %v3080_v22 }
  0xca   : > { %v927_v23 = vpop.permute.xlu1 %926 }
  0xcb   : > { %v1073_v50 = vsel %vm1043_vm5, %v2870_v60, %v927_v23  ;;  %v1040_v25 = vpop.permute.xlu0 %1039 }
  0xcc   : > { %v3087_v26 = vsel %vm1076_vm6, %v1073_v50, %v1040_v25 }
  0xcd   : > { %2473 = vmatmul.mubr.msk.bf16.gmra.mxu1 %vm1144_vm7, %v3087_v26 }
  0xcf   : > { %v1022_v1 = vpop.permute.xlu0 %1021 }
  0xd1   : > { %v909_v28 = vpop.permute.xlu1 %908 }
  0xd2   : > { %v1055_v7 = vsel %vm1043_vm5, %v2898_v38, %v909_v28 }
  0xd3   : > { %v1088_v27 = vsel %vm1076_vm6, %v1055_v7, %v1022_v1 }
  0xd4   : > { %2456 = vmatprep.mubr.msk.bf16.mxu0 %vm1144_vm7, %v1088_v27 }
  0xd6   : > { %v911_v2 = vpop.permute.xlu1 %910 }
  0xd7   : > { %v1057_v60 = vsel %vm1043_vm5, %v2910_v63, %v911_v2 }
  0xda   : > { %v1024_v29 = vpop.permute.xlu1 %1023 }
  0xdb   : > { %v1090_v31 = vsel %vm1076_vm6, %v1057_v60, %v1024_v29  ;;  %v3219_v60 = vld [vmem:[%s3434_s4] ss:$0 sm:$0xff] }
  0xdc   : > { %2457 = vmatmul.mubr.msk.bf16.gmra.mxu0 %vm1144_vm7, %v1090_v31 }
  0xdd   : > { %v929_v32 = vpop.permute.xlu0 %928 }
  0xde   : > { %v1042_v33 = vpop.permute.xlu1 %1041  ;;  %v1075_v34 = vsel %vm1043_vm5, %v2935_v41, %v929_v32 }
  0xdf   : > { %v1108_v38 = vsel %vm1076_vm6, %v1075_v34, %v1042_v33 }
  0xe0   : > { %2476 = vmatprep.mubr.msk.bf16.mxu1 %vm1144_vm7, %v1108_v38 }
  0xe4   : > { %v1124_v35 = vpop.permute.xlu0 %1123 }
  0xe5   : > { %v1133_v36 = vsel %vm1043_vm5, %v2959_v20, %v1124_v35 }
  0xe8   : > { %v1131_v37 = vpop.permute.xlu0 %1130 }
  0xe9   : > { %v913_v63 = vpop.permute.xlu1 %912  ;;  %v1135_v39 = vsel %vm1076_vm6, %v1133_v36, %v1131_v37 }
  0xea   : > { %2477 = vmatmul.mubr.msk.bf16.gmra.mxu1 %vm1144_vm7, %v1135_v39  ;;  %v1059_v40 = vsel %vm1043_vm5, %v2975_v46, %v913_v63 }
  0xec   : > { %v1026_v52 = vpop.permute.xlu0 %1025 }
  0xed   : > { %v1092_v41 = vsel %vm1076_vm6, %v1059_v40, %v1026_v52 }
  0xee   : > { %2460 = vmatprep.mubr.msk.bf16.mxu0 %vm1144_vm7, %v1092_v41 }
  0xf0   : > { %v899_v44 = vpop.permute.xlu0 %898 }
  0xf1   : > { %v915_v43 = vpop.permute.xlu1 %914  ;;  %v1045_v53 = vsel %vm1043_vm5, 0.0|0.0, %v899_v44 }
  0xf2   : > { %v1061_v45 = vsel %vm1043_vm5, %v3007_v24, %v915_v43 }
  0xf4   : > { %v1526_v24 = vpop.permute.xlu0 %1525 }
  0xf5   : > { %v1028_v20 = vpop.permute.xlu1 %1027 }
  0xf6   : > { %v1094_v47 = vsel %vm1076_vm6, %v1061_v45, %v1028_v20 }
  0xf7   : > { %2461 = vmatmul.mubr.msk.bf16.gmra.mxu0 %vm1144_vm7, %v1094_v47 }
  0xf8   : > { %2516 = vmatprep.mubr.msk.bf16.mxu0 %vm1144_vm7, %v3036_v62 }
  0xf9   : > { %v1012_v46 = vpop.permute.xlu1 %1011 }
  0xfa   : > { %v1078_v55 = vsel %vm1076_vm6, %v1045_v53, %v1012_v46 }
  0xfb   : > { %2482 = vmatprep.mubr.msk.bf16.mxu1 %vm1144_vm7, %v1078_v55 }
  0xfc   : > { %2483 = vmatmul.mubr.msk.bf16.vlgmr.msra.gmra.mxu1 %vm1144_vm7, %v3028_v56  ;;  %v1535_v56 = vsel %vm1043_vm5, 0.0|0.0, %v1526_v24 }
  0xfd   : > { %2486 = vmatprep.mubr.msk.bf16.mxu1 %vm1144_vm7, %v3036_v62  ;;  %v1533_v57 = vpop.permute.xlu1 %1532 }
  0xfe   : > { %v1537_v58 = vsel %vm1076_vm6, %v1535_v56, %v1533_v57 }
  0xff   : > { %2517 = vmatmul.mubr.msk.bf16.vlgmr.msra.gmra.mxu0 %vm1144_vm7, %v1084_v17 }
 0x100   : > { %2520 = vmatprep.mubr.msk.bf16.mxu0 %vm1144_vm7, %v1086_v14 }
 0x104   : > { %2487 = vmatmul.mubr.msk.bf16.gmra.mxu1 %vm1144_vm7, %v1084_v17 }
 0x105   : > { %2490 = vmatprep.mubr.msk.bf16.mxu1 %vm1144_vm7, %v1086_v14 }
 0x107   : > { %2521 = vmatmul.mubr.msk.bf16.gmra.mxu0 %vm1144_vm7, %v1088_v27 }
 0x108   : > { %2524 = vmatprep.mubr.msk.bf16.mxu0 %vm1144_vm7, %v1090_v31 }
 0x10c   : > { %2491 = vmatmul.mubr.msk.bf16.gmra.mxu1 %vm1144_vm7, %v1088_v27 }
 0x10d   : > { %2494 = vmatprep.mubr.msk.bf16.mxu1 %vm1144_vm7, %v1090_v31 }
 0x10f   : > { %2525 = vmatmul.mubr.msk.bf16.gmra.mxu0 %vm1144_vm7, %v1092_v41 }
 0x110   : > { %2528 = vmatprep.mubr.msk.bf16.mxu0 %vm1144_vm7, %v1094_v47 }
 0x114   : > { %2495 = vmatmul.mubr.msk.bf16.gmra.mxu1 %vm1144_vm7, %v1092_v41 }
 0x115   : > { %2498 = vmatprep.mubr.msk.bf16.mxu1 %vm1144_vm7, %v1094_v47 }
 0x117   : > { %2529 = vmatmul.mubr.msk.bf16.gmra.mxu0 %vm1144_vm7, %v3043_v4 }
 0x118   : > { %2532 = vmatprep.mubr.msk.bf16.mxu0 %vm1144_vm7, %v3051_v9 }
 0x11c   : > { %2499 = vmatmul.mubr.msk.bf16.gmra.mxu1 %vm1144_vm7, %v3043_v4 }
 0x11d   : > { %2502 = vmatprep.mubr.msk.bf16.mxu1 %vm1144_vm7, %v3051_v9 }
 0x11f   : > { %2533 = vmatmul.mubr.msk.bf16.gmra.mxu0 %vm1144_vm7, %v3058_v12 }
 0x120   : > { %2536 = vmatprep.mubr.msk.bf16.mxu0 %vm1144_vm7, %v3067_v16 }
 0x124   : > { %2503 = vmatmul.mubr.msk.bf16.gmra.mxu1 %vm1144_vm7, %v3058_v12 }
 0x125   : > { %2506 = vmatprep.mubr.msk.bf16.mxu1 %vm1144_vm7, %v3067_v16 }
 0x127   : > { %2537 = vmatmul.mubr.msk.bf16.gmra.mxu0 %vm1144_vm7, %v3080_v22 }
 0x128   : > { %2540 = vmatprep.mubr.msk.bf16.mxu0 %vm1144_vm7, %v3087_v26 }
 0x12c   : > { %2507 = vmatmul.mubr.msk.bf16.gmra.mxu1 %vm1144_vm7, %v3080_v22 }
 0x12d   : > { %2510 = vmatprep.mubr.msk.bf16.mxu1 %vm1144_vm7, %v3087_v26 }
 0x12f   : > { %2541 = vmatmul.mubr.msk.bf16.gmra.mxu0 %vm1144_vm7, %v1108_v38 }
 0x130   : > { %2544 = vmatprep.mubr.msk.bf16.mxu0 %vm1144_vm7, %v1135_v39 }
 0x134   : > { %2511 = vmatmul.mubr.msk.bf16.gmra.mxu1 %vm1144_vm7, %v1108_v38 }
 0x137   : > { %2545 = vmatmul.mubr.msk.bf16.gmra.mxu0 %vm1144_vm7, %v1537_v58 }
 0x168   : > { %v2450_v42 = vpop.f32.mrf.mxu0 }
 0x16a   : > { %v1215_v4 = vpop.f32.mrf.mxu0 }
 0x16c   : > { %v2451_v5 = vpop.f32.mrf.mxu0 }
 0x16e   : > { %v1218_v9 = vpop.f32.mrf.mxu0 }
 0x171   : > { %v3166_v49 = vpop.f32.mrf.mxu1 }
 0x173   : > { %v3168_v59 = vpop.f32.mrf.mxu1 }
 0x175   : > { %v3170_v62 = vpop.f32.mrf.mxu1 }
 0x177   : > { %v3172_v0 = vpop.f32.mrf.mxu1 }
 0x179   : > { %v3174_v6 = vpop.f32.mrf.mxu1 }
 0x17b   : > { %v3176_v8 = vpop.f32.mrf.mxu1 }
 0x17d   : > { %v3178_v10 = vpop.f32.mrf.mxu1 }
 0x17f   : > { %v3180_v11 = vpop.f32.mrf.mxu1 }
 0x182   : > { %v2454_v51 = vpop.f32.mrf.mxu0 }
 0x184   : > { %v1231_v12 = vpop.f32.mrf.mxu0 }
 0x186   : > { %v2455_v3 = vpop.f32.mrf.mxu0 }
 0x188   : > { %v3186_v15 = vpop.f32.mrf.mxu0 }
 0x18d   : > { %v3182_v48 = vpop.f32.mrf.mxu1 }
 0x18f   : > { %v3184_v13 = vpop.f32.mrf.mxu1 }
 0x191   : > { %v3188_v16 = vpop.f32.mrf.mxu1 }
 0x193   : > { %v3192_v54 = vpop.f32.mrf.mxu1 }
 0x19c   : > { %v3190_v17 = vpop.f32.mrf.mxu0 }
 0x19e   : > { %v3194_v21 = vpop.f32.mrf.mxu0 }
 0x1a0   : > { %v3198_v14 = vpop.f32.mrf.mxu0 }
 0x1a2   : > { %v3202_v18 = vpop.f32.mrf.mxu0 }
 0x1aa   : > { %v3196_v61 = vpop.f32.mrf.mxu1 }
 0x1ac   : > { %v3200_v30 = vpop.f32.mrf.mxu1 }
 0x1ae   : > { %v3204_v19 = vpop.f32.mrf.mxu1 }
 0x1b0   : > { %v3210_v50 = vpop.f32.mrf.mxu1 }
 0x1b7   : > { %v3206_v22 = vpop.f32.mrf.mxu0 }
 0x1b9   : > { %v3208_v23 = vpop.f32.mrf.mxu0 }
 0x1bb   : > { %v3212_v25 = vpop.f32.mrf.mxu0 }
 0x1bc   : > { %v2484_v26 = vpop.f32.mrf.mxu1 }
 0x1bd   : > { %v1395_v1 = vadd.f32 %v2484_v26, %v2450_v42  ;;  %v3214_v28 = vpop.f32.mrf.mxu0 }
 0x1be   : > { %v1386_v7 = vpop.f32.mrf.mxu1 }
 0x1bf   : > { %v1387_v27 = vadd.f32 %v1386_v7, %v1215_v4  ;;  %v2518_v2 = vpop.f32.mrf.mxu0 }
 0x1c0   : > { %v1714_v29 = vadd.f32 %v2518_v2, %v1395_v1  ;;  %v2485_v31 = vpop.f32.mrf.mxu1 }
 0x1c1   : > { %v1398_v32 = vadd.f32 %v2485_v31, %v2451_v5  ;;  %v1585_v33 = vpop.f32.mrf.mxu0 }
 0x1c2   : > { %v1753_v34 = vadd.f32 %v3219_v60, %v1714_v29  ;;  %v1712_v38 = vadd.f32 %v1585_v33, %v1387_v27  ;;  %v1389_v35 = vpop.f32.mrf.mxu1 }
 0x1c3   : > { %v1390_v36 = vadd.f32 %v1389_v35, %v1218_v9  ;;  %v2519_v37 = vpop.f32.mrf.mxu0 }
 0x1c4   : > { %v2325_v63 = vpack.c.bf16 %v1753_v34, %v1753_v34  ;;  %v1751_v39 = vadd.f32 %v3219_v60, %v1712_v38  ;;  %v2488_v40 = vpop.f32.mrf.mxu1  ;;  %v1715_v52 = vadd.f32 %v2519_v37, %v1398_v32  ;;  %v2017_v55 = vmul.f32 %v1753_v34, %v1753_v34 }
 0x1c5   : > { %v1411_v41 = vadd.f32 %v2488_v40, %v2454_v51  ;;  %v1588_v43 = vpop.f32.mrf.mxu0  ;;  %v1947_v58 = vsel %vm1043_vm5, %v1753_v34, 0.0 }
 0x1c6   : > { %1914 = vst.msk [vmem:[%s3226_s26 + $0x8] sm:$0xf] %vm1911_vm8, %v2325_v63  ;;  %v2323_v44 = vpack.c.bf16 %v1751_v39, %v1751_v39  ;;  %v1402_v45 = vpop.f32.mrf.mxu1  ;;  %v1754_v20 = vadd.f32 %v3219_v60, %v1715_v52  ;;  %v1713_v47 = vadd.f32 %v1588_v43, %v1390_v36  ;;  %v2015_v24 = vmul.f32 %v1751_v39, %v1751_v39 }
 0x1c7   : > { %v1403_v53 = vadd.f32 %v1402_v45, %v1231_v12  ;;  %v2522_v46 = vpop.f32.mrf.mxu0  ;;  %v1944_v9 = vsel %vm1043_vm5, %v1751_v39, 0.0  ;;  %v2050_v32 = vsel %vm1043_vm5, %v2017_v55, 0.0 }
 0x1c8   : > { %1912 = vst.msk [vmem:[%s3226_s26] sm:$0xf] %vm1911_vm8, %v2323_v44  ;;  %v1718_v56 = vadd.f32 %v2522_v46, %v1411_v41  ;;  %v2489_v57 = vpop.f32.mrf.mxu1  ;;  %v2326_v42 = vpack.c.bf16 %v1754_v20, %v1754_v20  ;;  %v1752_v4 = vadd.f32 %v3219_v60, %v1713_v47  ;;  %v2018_v7 = vmul.f32 %v1754_v20, %v1754_v20 }
 0x1c9   : > { %v1601_v5 = vpop.f32.mrf.mxu0  ;;  %v1414_v12 = vadd.f32 %v2489_v57, %v2455_v3  ;;  %v2047_v33 = vsel %vm1043_vm5, %v2015_v24, 0.0  ;;  %v1949_v40 = vsel %vm1043_vm5, %v1754_v20, 0.0 }
 0x1ca   : > { %v3238_v51 = vadd.f32 %v3219_v60, %v1718_v56  ;;  %v1716_v26 = vadd.f32 %v1601_v5, %v1403_v53  ;;  %v1405_v1 = vpop.f32.mrf.mxu1  ;;  %1915 = vst.msk [vmem:[%s3226_s26 + $0xc] sm:$0xf] %vm1911_vm8, %v2326_v42  ;;  %v2324_v27 = vpack.c.bf16 %v1752_v4, %v1752_v4  ;;  %v1945_v2 = vsel %vm1043_vm5, %v1752_v4, 0.0 }
 0x1cb   : > { %v2016_v29 = vmul.f32 %v1752_v4, %v1752_v4  ;;  %v2523_v31 = vpop.f32.mrf.mxu0  ;;  %v1946_v34 = vadd.f32 %v1945_v2, %v1944_v9  ;;  %v1406_v37 = vadd.f32 %v1405_v1, %v3186_v15  ;;  %v2052_v45 = vsel %vm1043_vm5, %v2018_v7, 0.0 }
 0x1cc   : > { %v2329_v38 = vpack.c.bf16 %v3238_v51, %v3238_v51  ;;  %v2492_v3 = vpop.f32.mrf.mxu1  ;;  %1913 = vst.msk [vmem:[%s3226_s26 + $0x4] sm:$0xf] %vm1911_vm8, %v2324_v27  ;;  %v1755_v36 = vadd.f32 %v3219_v60, %v1716_v26  ;;  %v1719_v63 = vadd.f32 %v2523_v31, %v1414_v12 }
 0x1cd   : > { %v2048_v35 = vsel %vm1043_vm5, %v2016_v29, 0.0  ;;  %v1604_v39 = vpop.f32.mrf.mxu0  ;;  %v1948_v52 = vadd.f32 %v1947_v58, %v1946_v34  ;;  %v1427_v43 = vadd.f32 %v2492_v3, %v3190_v17  ;;  %v2021_v58 = vmul.f32 %v3238_v51, %v3238_v51 }
 0x1ce   : > { %v2049_v41 = vadd.f32 %v2048_v35, %v2047_v33  ;;  %1918 = vst.msk [vmem:[%s3226_s26 + $0x18] sm:$0xf] %vm1911_vm8, %v2329_v38  ;;  %v1418_v44 = vpop.f32.mrf.mxu1  ;;  %v2327_v47 = vpack.c.bf16 %v1755_v36, %v1755_v36  ;;  %v2019_v53 = vmul.f32 %v1755_v36, %v1755_v36  ;;  %v1758_v46 = vadd.f32 %v3219_v60, %v1719_v63 }
 0x1cf   : > { %v2526_v55 = vpop.f32.mrf.mxu0  ;;  %v1950_v24 = vadd.f32 %v1949_v40, %v1948_v52  ;;  %v1717_v56 = vadd.f32 %v1604_v39, %v1406_v37  ;;  %v1419_v20 = vadd.f32 %v1418_v44, %v3194_v21  ;;  %v1951_v17 = vsel %vm1043_vm5, %v1755_v36, 0.0 }
 0x1d0   : > { %v2051_v15 = vadd.f32 %v2050_v32, %v2049_v41  ;;  %v2493_v57 = vpop.f32.mrf.mxu1  ;;  %1916 = vst.msk [vmem:[%s3226_s26 + $0x10] sm:$0xf] %vm1911_vm8, %v2327_v47  ;;  %v2054_v42 = vsel %vm1043_vm5, %v2019_v53, 0.0  ;;  %v2330_v4 = vpack.c.bf16 %v1758_v46, %v1758_v46  ;;  %v1722_v1 = vadd.f32 %v2526_v55, %v1427_v43 }
 0x1d1   : > { %v1617_v5 = vpop.f32.mrf.mxu0  ;;  %v1952_v9 = vadd.f32 %v1951_v17, %v1950_v24  ;;  %v1756_v26 = vadd.f32 %v3219_v60, %v1717_v56  ;;  %v2022_v21 = vmul.f32 %v1758_v46, %v1758_v46  ;;  %v1430_v27 = vadd.f32 %v2493_v57, %v3198_v14 }
 0x1d2   : > { %v2053_v12 = vadd.f32 %v2052_v45, %v2051_v15  ;;  %v1421_v7 = vpop.f32.mrf.mxu1  ;;  %1919 = vst.msk [vmem:[%s3226_s26 + $0x1c] sm:$0xf] %vm1911_vm8, %v2330_v4  ;;  %v1720_v2 = vadd.f32 %v1617_v5, %v1419_v20  ;;  %v1761_v36 = vadd.f32 %v3219_v60, %v1722_v1  ;;  %v1955_v14 = vsel %vm1043_vm5, %v3238_v51, 0.0 }
 0x1d3   : > { %v1422_v29 = vadd.f32 %v1421_v7, %v3202_v18  ;;  %v2527_v31 = vpop.f32.mrf.mxu0  ;;  %v2328_v33 = vpack.c.bf16 %v1756_v26, %v1756_v26  ;;  %v1953_v34 = vsel %vm1043_vm5, %v1756_v26, 0.0  ;;  %v2020_v38 = vmul.f32 %v1756_v26, %v1756_v26 }
 0x1d4   : > { %v2055_v32 = vadd.f32 %v2054_v42, %v2053_v12  ;;  %v2496_v3 = vpop.f32.mrf.mxu1  ;;  %v1954_v35 = vadd.f32 %v1953_v34, %v1952_v9  ;;  %v1759_v37 = vadd.f32 %v3219_v60, %v1720_v2  ;;  %v1723_v63 = vadd.f32 %v2527_v31, %v1430_v27 }
 0x1d5   : > { %v1620_v39 = vpop.f32.mrf.mxu0  ;;  %1917 = vst.msk [vmem:[%s3226_s26 + $0x14] sm:$0xf] %vm1911_vm8, %v2328_v33  ;;  %v2056_v18 = vsel %vm1043_vm5, %v2020_v38, 0.0  ;;  %v1443_v40 = vadd.f32 %v2496_v3, %v3206_v22  ;;  %v2058_v43 = vsel %vm1043_vm5, %v2021_v58, 0.0  ;;  %v2333_v47 = vpack.c.bf16 %v1761_v36, %v1761_v36 }
 0x1d6   : > { %v1721_v52 = vadd.f32 %v1620_v39, %v1422_v29  ;;  %v1434_v41 = vpop.f32.mrf.mxu1  ;;  %v1956_v44 = vadd.f32 %v1955_v14, %v1954_v35  ;;  %v2057_v45 = vadd.f32 %v2056_v18, %v2055_v32  ;;  %v1957_v55 = vsel %vm1043_vm5, %v1758_v46, 0.0 }
 0x1d7   : > { %v2530_v53 = vpop.f32.mrf.mxu0  ;;  %v2060_v51 = vsel %vm1043_vm5, %v2022_v21, 0.0  ;;  %v2331_v15 = vpack.c.bf16 %v1759_v37, %v1759_v37  ;;  %v2023_v24 = vmul.f32 %v1759_v37, %v1759_v37  ;;  %1922 = vst.msk [vmem:[%s3226_s26 + $0x28] sm:$0xf] %vm1911_vm8, %v2333_v47  ;;  %v1762_v57 = vadd.f32 %v3219_v60, %v1723_v63 }
 0x1d8   : > { %v2497_v56 = vpop.f32.mrf.mxu1  ;;  %v2059_v20 = vadd.f32 %v2058_v43, %v2057_v45  ;;  %v1958_v22 = vadd.f32 %v1957_v55, %v1956_v44  ;;  %v1760_v58 = vadd.f32 %v3219_v60, %v1721_v52  ;;  %v1963_v42 = vsel %vm1043_vm5, %v1761_v36, 0.0 }
 0x1d9   : > { %v1633_v17 = vpop.f32.mrf.mxu0  ;;  %1920 = vst.msk [vmem:[%s3226_s26 + $0x20] sm:$0xf] %vm1911_vm8, %v2331_v15  ;;  %v1959_v46 = vsel %vm1043_vm5, %v1759_v37, 0.0  ;;  %v1435_v4 = vadd.f32 %v1434_v41, %v3208_v23  ;;  %v1726_v5 = vadd.f32 %v2530_v53, %v1443_v40  ;;  %v2025_v12 = vmul.f32 %v1761_v36, %v1761_v36 }
 0x1da   : > { %v1437_v9 = vpop.f32.mrf.mxu1  ;;  %v1960_v26 = vadd.f32 %v1959_v46, %v1958_v22  ;;  %v2061_v1 = vadd.f32 %v2060_v51, %v2059_v20  ;;  %v2334_v7 = vpack.c.bf16 %v1762_v57, %v1762_v57  ;;  %v2062_v27 = vsel %vm1043_vm5, %v2023_v24, 0.0 }
 0x1db   : > { %v2531_v21 = vpop.f32.mrf.mxu0  ;;  %v2332_v2 = vpack.c.bf16 %v1760_v58, %v1760_v58  ;;  %v1961_v29 = vsel %vm1043_vm5, %v1760_v58, 0.0  ;;  %v2024_v31 = vmul.f32 %v1760_v58, %v1760_v58  ;;  %v1765_v23 = vadd.f32 %v3219_v60, %v1726_v5 }
 0x1dc   : > { %v2500_v32 = vpop.f32.mrf.mxu1  ;;  %v2063_v33 = vadd.f32 %v2062_v27, %v2061_v1  ;;  %1923 = vst.msk [vmem:[%s3226_s26 + $0x2c] sm:$0xf] %vm1911_vm8, %v2334_v7  ;;  %v1962_v34 = vadd.f32 %v1961_v29, %v1960_v26  ;;  %v1446_v38 = vadd.f32 %v2497_v56, %v3212_v25  ;;  %v2026_v35 = vmul.f32 %v1762_v57, %v1762_v57 }
 0x1dd   : > { %v1636_v3 = vpop.f32.mrf.mxu0  ;;  %1921 = vst.msk [vmem:[%s3226_s26 + $0x24] sm:$0xf] %vm1911_vm8, %v2332_v2  ;;  %v2064_v36 = vsel %vm1043_vm5, %v2024_v31, 0.0  ;;  %v1724_v37 = vadd.f32 %v1633_v17, %v1435_v4  ;;  %v1438_v63 = vadd.f32 %v1437_v9, %v3214_v28  ;;  %v2066_v14 = vsel %vm1043_vm5, %v2025_v12, 0.0 }
 0x1de   : > { %v1450_v39 = vpop.f32.mrf.mxu1  ;;  %v1964_v18 = vadd.f32 %v1963_v42, %v1962_v34  ;;  %v2065_v40 = vadd.f32 %v2064_v36, %v2063_v33  ;;  %v2337_v52 = vpack.c.bf16 %v1765_v23, %v1765_v23  ;;  %v1965_v43 = vsel %vm1043_vm5, %v1762_v57, 0.0 }
 0x1df   : > { %v2534_v41 = vpop.f32.mrf.mxu0  ;;  %v1763_v25 = vadd.f32 %v3219_v60, %v1724_v37  ;;  %v1727_v44 = vadd.f32 %v2531_v21, %v1446_v38  ;;  %v1459_v45 = vadd.f32 %v2500_v32, %v3166_v49  ;;  %v1725_v55 = vadd.f32 %v1636_v3, %v1438_v63 }
 0x1e0   : > { %v2501_v47 = vpop.f32.mrf.mxu1  ;;  %v2067_v53 = vadd.f32 %v2066_v14, %v2065_v40  ;;  %1926 = vst.msk [vmem:[%s3226_s26 + $0x38] sm:$0xf] %vm1911_vm8, %v2337_v52  ;;  %v1966_v28 = vadd.f32 %v1965_v43, %v1964_v18  ;;  %v1451_v51 = vadd.f32 %v1450_v39, %v3168_v59  ;;  %v2068_v24 = vsel %vm1043_vm5, %v2026_v35, 0.0 }
 0x1e1   : > { %v1649_v15 = vpop.f32.mrf.mxu0  ;;  %v2335_v56 = vpack.c.bf16 %v1763_v25, %v1763_v25  ;;  %v1967_v20 = vsel %vm1043_vm5, %v1763_v25, 0.0  ;;  %v2027_v22 = vmul.f32 %v1763_v25, %v1763_v25  ;;  %v1766_v49 = vadd.f32 %v3219_v60, %v1727_v44 }
 0x1e2   : > { %v1453_v57 = vpop.f32.mrf.mxu1  ;;  %v1968_v58 = vadd.f32 %v1967_v20, %v1966_v28  ;;  %v2069_v17 = vadd.f32 %v2068_v24, %v2067_v53  ;;  %v1764_v42 = vadd.f32 %v3219_v60, %v1725_v55  ;;  %v2029_v4 = vmul.f32 %v1765_v23, %v1765_v23 }
 0x1e3   : > { %v2535_v46 = vpop.f32.mrf.mxu0  ;;  %1924 = vst.msk [vmem:[%s3226_s26 + $0x30] sm:$0xf] %vm1911_vm8, %v2335_v56  ;;  %v2070_v59 = vsel %vm1043_vm5, %v2027_v22, 0.0  ;;  %v1730_v5 = vadd.f32 %v2534_v41, %v1459_v45  ;;  %v1728_v9 = vadd.f32 %v1649_v15, %v1451_v51  ;;  %v2338_v1 = vpack.c.bf16 %v1766_v49, %v1766_v49 }
 0x1e4   : > { %v2504_v12 = vpop.f32.mrf.mxu1  ;;  %v2071_v26 = vadd.f32 %v2070_v59, %v2069_v17  ;;  %v2030_v7 = vmul.f32 %v1766_v49, %v1766_v49  ;;  %v1462_v21 = vadd.f32 %v2501_v47, %v3170_v62  ;;  %v2336_v2 = vpack.c.bf16 %v1764_v42, %v1764_v42 }
 0x1e5   : > { %v1652_v27 = vpop.f32.mrf.mxu0  ;;  %v1969_v29 = vsel %vm1043_vm5, %v1764_v42, 0.0  ;;  %v2028_v31 = vmul.f32 %v1764_v42, %v1764_v42  ;;  %v1769_v32 = vadd.f32 %v3219_v60, %v1730_v5  ;;  %v1971_v34 = vsel %vm1043_vm5, %v1765_v23, 0.0  ;;  %1927 = vst.msk [vmem:[%s3226_s26 + $0x3c] sm:$0xf] %vm1911_vm8, %v2338_v1 }
 0x1e6   : > { %v1466_v33 = vpop.f32.mrf.mxu1  ;;  %v1970_v38 = vadd.f32 %v1969_v29, %v1968_v58  ;;  %v1767_v3 = vadd.f32 %v3219_v60, %v1728_v9  ;;  %v1454_v35 = vadd.f32 %v1453_v57, %v3172_v0  ;;  %v2074_v62 = vsel %vm1043_vm5, %v2029_v4, 0.0  ;;  %1925 = vst.msk [vmem:[%s3226_s26 + $0x34] sm:$0xf] %vm1911_vm8, %v2336_v2 }
 0x1e7   : > { %v2538_v36 = vpop.f32.mrf.mxu0  ;;  %v1973_v37 = vsel %vm1043_vm5, %v1766_v49, 0.0  ;;  %v2072_v63 = vsel %vm1043_vm5, %v2028_v31, 0.0  ;;  %v2341_v39 = vpack.c.bf16 %v1769_v32, %v1769_v32  ;;  %v2076_v14 = vsel %vm1043_vm5, %v2030_v7, 0.0 }
 0x1e8   : > { %v2505_v23 = vpop.f32.mrf.mxu1  ;;  %v1972_v18 = vadd.f32 %v1971_v34, %v1970_v38  ;;  %v2073_v40 = vadd.f32 %v2072_v63, %v2071_v26  ;;  %v2339_v52 = vpack.c.bf16 %v1767_v3, %v1767_v3  ;;  %v2033_v0 = vmul.f32 %v1769_v32, %v1769_v32 }
 0x1e9   : > { %v1665_v41 = vpop.f32.mrf.mxu0  ;;  %1930 = vst.msk [vmem:[%s3226_s26 + $0x48] sm:$0xf] %vm1911_vm8, %v2341_v39  ;;  %v2031_v43 = vmul.f32 %v1767_v3, %v1767_v3  ;;  %v1731_v25 = vadd.f32 %v2535_v46, %v1462_v21  ;;  %v1475_v44 = vadd.f32 %v2504_v12, %v3174_v6  ;;  %v1729_v28 = vadd.f32 %v1652_v27, %v1454_v35 }
 0x1ea   : > { %v1469_v45 = vpop.f32.mrf.mxu1  ;;  %v2075_v47 = vadd.f32 %v2074_v62, %v2073_v40  ;;  %1928 = vst.msk [vmem:[%s3226_s26 + $0x40] sm:$0xf] %vm1911_vm8, %v2339_v52  ;;  %v1974_v53 = vadd.f32 %v1973_v37, %v1972_v18  ;;  %v1467_v55 = vadd.f32 %v1466_v33, %v3176_v8  ;;  %v1975_v15 = vsel %vm1043_vm5, %v1767_v3, 0.0 }
 0x1eb   : > { %v2539_v51 = vpop.f32.mrf.mxu0  ;;  %v2078_v24 = vsel %vm1043_vm5, %v2031_v43, 0.0  ;;  %v1770_v56 = vadd.f32 %v3219_v60, %v1731_v25  ;;  %v1734_v20 = vadd.f32 %v2538_v36, %v1475_v44  ;;  %v1768_v58 = vadd.f32 %v3219_v60, %v1729_v28 }
 0x1ec   : > { %v2508_v22 = vpop.f32.mrf.mxu1  ;;  %v1976_v57 = vadd.f32 %v1975_v15, %v1974_v53  ;;  %v2077_v6 = vadd.f32 %v2076_v14, %v2075_v47  ;;  %v1732_v17 = vadd.f32 %v1665_v41, %v1467_v55  ;;  %v1478_v4 = vadd.f32 %v2505_v23, %v3178_v10 }
 0x1ed   : > { %v1668_v49 = vpop.f32.mrf.mxu0  ;;  %v2342_v42 = vpack.c.bf16 %v1770_v56, %v1770_v56  ;;  %v2034_v46 = vmul.f32 %v1770_v56, %v1770_v56  ;;  %v1773_v8 = vadd.f32 %v3219_v60, %v1734_v20  ;;  %v2340_v9 = vpack.c.bf16 %v1768_v58, %v1768_v58 }
 0x1ee   : > { %v1482_v59 = vpop.f32.mrf.mxu1  ;;  %v2079_v5 = vadd.f32 %v2078_v24, %v2077_v6  ;;  %v1977_v12 = vsel %vm1043_vm5, %v1768_v58, 0.0  ;;  %v2032_v26 = vmul.f32 %v1768_v58, %v1768_v58  ;;  %v1979_v7 = vsel %vm1043_vm5, %v1769_v32, 0.0 }
 0x1ef   : > { %v2542_v1 = vpop.f32.mrf.mxu0  ;;  %1931 = vst.msk [vmem:[%s3226_s26 + $0x4c] sm:$0xf] %vm1911_vm8, %v2342_v42  ;;  %v1978_v21 = vadd.f32 %v1977_v12, %v1976_v57  ;;  %v2345_v27 = vpack.c.bf16 %v1773_v8, %v1773_v8  ;;  %v2082_v29 = vsel %vm1043_vm5, %v2033_v0, 0.0  ;;  %1929 = vst.msk [vmem:[%s3226_s26 + $0x44] sm:$0xf] %vm1911_vm8, %v2340_v9  ;;  %v1771_v31 = vadd.f32 %v3219_v60, %v1732_v17 }
 0x1f0   : > { %v2509_v2 = vpop.f32.mrf.mxu1  ;;  %v2080_v10 = vsel %vm1043_vm5, %v2032_v26, 0.0  ;;  %v1470_v33 = vadd.f32 %v1469_v45, %v3180_v11  ;;  %v1735_v32 = vadd.f32 %v2539_v51, %v1478_v4  ;;  %v1491_v35 = vadd.f32 %v2508_v22, %v3182_v48 }
 0x1f1   : > { %v1681_v34 = vpop.f32.mrf.mxu0  ;;  %v1980_v38 = vadd.f32 %v1979_v7, %v1978_v21  ;;  %v2081_v3 = vadd.f32 %v2080_v10, %v2079_v5  ;;  %1934 = vst.msk [vmem:[%s3226_s26 + $0x58] sm:$0xf] %vm1911_vm8, %v2345_v27  ;;  %v1981_v62 = vsel %vm1043_vm5, %v1770_v56, 0.0  ;;  %v2084_v37 = vsel %vm1043_vm5, %v2034_v46, 0.0 }
 0x1f2   : > { %v1485_v36 = vpop.f32.mrf.mxu1  ;;  %v2343_v63 = vpack.c.bf16 %v1771_v31, %v1771_v31  ;;  %v2035_v39 = vmul.f32 %v1771_v31, %v1771_v31  ;;  %v1774_v11 = vadd.f32 %v3219_v60, %v1735_v32  ;;  %v1733_v40 = vadd.f32 %v1668_v49, %v1470_v33 }
 0x1f3   : > { %v2543_v23 = vpop.f32.mrf.mxu0  ;;  %v2083_v14 = vadd.f32 %v2082_v29, %v2081_v3  ;;  %v1982_v18 = vadd.f32 %v1981_v62, %v1980_v38  ;;  %v1983_v41 = vsel %vm1043_vm5, %v1771_v31, 0.0  ;;  %v1483_v48 = vadd.f32 %v1482_v59, %v3184_v13 }
 0x1f4   : > { %v2512_v52 = vpop.f32.mrf.mxu1  ;;  %1932 = vst.msk [vmem:[%s3226_s26 + $0x50] sm:$0xf] %vm1911_vm8, %v2343_v63  ;;  %v1738_v0 = vadd.f32 %v2542_v1, %v1491_v35  ;;  %v1494_v43 = vadd.f32 %v2509_v2, %v3188_v16  ;;  %v2346_v47 = vpack.c.bf16 %v1774_v11, %v1774_v11  ;;  %v2086_v53 = vsel %vm1043_vm5, %v2035_v39, 0.0 }
 0x1f5   : > { %v1684_v25 = vpop.f32.mrf.mxu0  ;;  %v1984_v44 = vadd.f32 %v1983_v41, %v1982_v18  ;;  %v2085_v45 = vadd.f32 %v2084_v37, %v2083_v14  ;;  %v1772_v28 = vadd.f32 %v3219_v60, %v1733_v40  ;;  %v1736_v51 = vadd.f32 %v1681_v34, %v1483_v48 }
 0x1f6   : > { %v1777_v55 = vadd.f32 %v3219_v60, %v1738_v0  ;;  %v1498_v15 = vpop.f32.mrf.mxu1  ;;  %v2037_v56 = vmul.f32 %v1773_v8, %v1773_v8  ;;  %1935 = vst.msk [vmem:[%s3226_s26 + $0x5c] sm:$0xf] %vm1911_vm8, %v2346_v47  ;;  %v1486_v13 = vadd.f32 %v1485_v36, %v3192_v54  ;;  %v1739_v16 = vadd.f32 %v2543_v23, %v1494_v43 }
 0x1f7   : > { %v2546_v24 = vpop.f32.mrf.mxu0  ;;  %v2087_v20 = vadd.f32 %v2086_v53, %v2085_v45  ;;  %v1987_v22 = vsel %vm1043_vm5, %v1773_v8, 0.0  ;;  %v2344_v57 = vpack.c.bf16 %v1772_v28, %v1772_v28  ;;  %v1985_v6 = vsel %vm1043_vm5, %v1772_v28, 0.0 }
 0x1f8   : > { %v2036_v58 = vmul.f32 %v1772_v28, %v1772_v28  ;;  %v2038_v17 = vmul.f32 %v1774_v11, %v1774_v11  ;;  %v1986_v49 = vadd.f32 %v1985_v6, %v1984_v44  ;;  %v2349_v42 = vpack.c.bf16 %v1777_v55, %v1777_v55  ;;  %v2513_v9 = vpop.f32.mrf.mxu1 }
 0x1f9   : > { %v1507_v46 = vadd.f32 %v2512_v52, %v3196_v61  ;;  %v1697_v4 = vpop.f32.mrf.mxu0  ;;  %1933 = vst.msk [vmem:[%s3226_s26 + $0x54] sm:$0xf] %vm1911_vm8, %v2344_v57  ;;  %v1775_v54 = vadd.f32 %v3219_v60, %v1736_v51  ;;  %v1778_v5 = vadd.f32 %v3219_v60, %v1739_v16  ;;  %v1737_v8 = vadd.f32 %v1684_v25, %v1486_v13 }
 0x1fa   : > { %v2088_v59 = vsel %vm1043_vm5, %v2036_v58, 0.0  ;;  %v2090_v12 = vsel %vm1043_vm5, %v2037_v56, 0.0  ;;  %v1988_v26 = vadd.f32 %v1987_v22, %v1986_v49  ;;  %1938 = vst.msk [vmem:[%s3226_s26 + $0x68] sm:$0xf] %vm1911_vm8, %v2349_v42  ;;  %v1499_v61 = vadd.f32 %v1498_v15, %v3200_v30  ;;  %v1501_v35 = vpop.f32.mrf.mxu1 }
 0x1fb   : > { %v2089_v1 = vadd.f32 %v2088_v59, %v2087_v20  ;;  %v1989_v7 = vsel %vm1043_vm5, %v1774_v11, 0.0  ;;  %v2347_v21 = vpack.c.bf16 %v1775_v54, %v1775_v54  ;;  %v2039_v27 = vmul.f32 %v1775_v54, %v1775_v54  ;;  %v2547_v34 = vpop.f32.mrf.mxu0 }
 0x1fc   : > { %v2350_v2 = vpack.c.bf16 %v1778_v5, %v1778_v5  ;;  %v2092_v29 = vsel %vm1043_vm5, %v2038_v17, 0.0  ;;  %v2041_v31 = vmul.f32 %v1777_v55, %v1777_v55  ;;  %v1990_v33 = vadd.f32 %v1989_v7, %v1988_v26 }
 0x1fd   : > { %v2091_v10 = vadd.f32 %v2090_v12, %v2089_v1  ;;  %1936 = vst.msk [vmem:[%s3226_s26 + $0x60] sm:$0xf] %vm1911_vm8, %v2347_v21  ;;  %v1991_v38 = vsel %vm1043_vm5, %v1775_v54, 0.0  ;;  %v2094_v3 = vsel %vm1043_vm5, %v2039_v27, 0.0  ;;  %v1776_v30 = vadd.f32 %v3219_v60, %v1737_v8  ;;  %v1700_v48 = vpop.f32.mrf.mxu0 }
 0x1fe   : > { %1939 = vst.msk [vmem:[%s3226_s26 + $0x6c] sm:$0xf] %vm1911_vm8, %v2350_v2  ;;  %v1742_v32 = vadd.f32 %v2546_v24, %v1507_v46  ;;  %v1992_v36 = vadd.f32 %v1991_v38, %v1990_v33  ;;  %v1510_v37 = vadd.f32 %v2513_v9, %v3204_v19  ;;  %v1740_v63 = vadd.f32 %v1697_v4, %v1499_v61 }
 0x1ff   : > { %v2093_v62 = vadd.f32 %v2092_v29, %v2091_v10  ;;  %v2348_v39 = vpack.c.bf16 %v1776_v30, %v1776_v30  ;;  %v1993_v23 = vsel %vm1043_vm5, %v1776_v30, 0.0  ;;  %v2040_v14 = vmul.f32 %v1776_v30, %v1776_v30 }
 0x200   : > { %v1781_v18 = vadd.f32 %v3219_v60, %v1742_v32  ;;  %v1994_v40 = vadd.f32 %v1993_v23, %v1992_v36  ;;  %v1779_v52 = vadd.f32 %v3219_v60, %v1740_v63  ;;  %v1502_v41 = vadd.f32 %v1501_v35, %v3210_v50 }
 0x201   : > { %v2095_v11 = vadd.f32 %v2094_v3, %v2093_v62  ;;  %v1995_v0 = vsel %vm1043_vm5, %v1777_v55, 0.0  ;;  %v2042_v43 = vmul.f32 %v1778_v5, %v1778_v5  ;;  %1937 = vst.msk [vmem:[%s3226_s26 + $0x64] sm:$0xf] %vm1911_vm8, %v2348_v39  ;;  %v2096_v19 = vsel %vm1043_vm5, %v2040_v14, 0.0 }
 0x202   : > { %v2353_v25 = vpack.c.bf16 %v1781_v18, %v1781_v18  ;;  %v2098_v44 = vsel %vm1043_vm5, %v2041_v31, 0.0  ;;  %v1996_v45 = vadd.f32 %v1995_v0, %v1994_v40  ;;  %v2351_v53 = vpack.c.bf16 %v1779_v52, %v1779_v52 }
 0x203   : > { %v2097_v47 = vadd.f32 %v2096_v19, %v2095_v11  ;;  %v1997_v28 = vsel %vm1043_vm5, %v1778_v5, 0.0  ;;  %v2043_v50 = vmul.f32 %v1779_v52, %v1779_v52  ;;  %v1743_v51 = vadd.f32 %v2547_v34, %v1510_v37 }
 0x204   : > { %1942 = vst.msk [vmem:[%s3226_s26 + $0x78] sm:$0xf] %vm1911_vm8, %v2353_v25  ;;  %v1741_v15 = vadd.f32 %v1700_v48, %v1502_v41  ;;  %1940 = vst.msk [vmem:[%s3226_s26 + $0x70] sm:$0xf] %vm1911_vm8, %v2351_v53  ;;  %v1998_v55 = vadd.f32 %v1997_v28, %v1996_v45  ;;  %v2100_v56 = vsel %vm1043_vm5, %v2042_v43, 0.0  ;;  %v1999_v20 = vsel %vm1043_vm5, %v1779_v52, 0.0 }
 0x205   : > { %v2099_v24 = vadd.f32 %v2098_v44, %v2097_v47  ;;  %v1782_v13 = vadd.f32 %v3219_v60, %v1743_v51  ;;  %v2102_v6 = vsel %vm1043_vm5, %v2043_v50, 0.0  ;;  %v2045_v49 = vmul.f32 %v1781_v18, %v1781_v18 }
 0x206   : > { %v1780_v16 = vadd.f32 %v3219_v60, %v1741_v15  ;;  %v2000_v22 = vadd.f32 %v1999_v20, %v1998_v55  ;;  %v2003_v54 = vsel %vm1043_vm5, %v1781_v18, 0.0 }
 0x207   : > { %v2101_v57 = vadd.f32 %v2100_v56, %v2099_v24  ;;  %v2354_v58 = vpack.c.bf16 %v1782_v13, %v1782_v13  ;;  %v2046_v5 = vmul.f32 %v1782_v13, %v1782_v13  ;;  %v2106_v12 = vsel %vm1043_vm5, %v2045_v49, 0.0 }
 0x208   : > { %v2352_v17 = vpack.c.bf16 %v1780_v16, %v1780_v16  ;;  %v2001_v46 = vsel %vm1043_vm5, %v1780_v16, 0.0  ;;  %v2044_v4 = vmul.f32 %v1780_v16, %v1780_v16  ;;  %v2005_v26 = vsel %vm1043_vm5, %v1782_v13, 0.0 }
 0x209   : > { %v2103_v42 = vadd.f32 %v2102_v6, %v2101_v57  ;;  %1943 = vst.msk [vmem:[%s3226_s26 + $0x7c] sm:$0xf] %vm1911_vm8, %v2354_v58  ;;  %v2002_v59 = vadd.f32 %v2001_v46, %v2000_v22  ;;  %v2108_v7 = vsel %vm1043_vm5, %v2046_v5, 0.0 }
 0x20a   : > { %1941 = vst.msk [vmem:[%s3226_s26 + $0x74] sm:$0xf] %vm1911_vm8, %v2352_v17  ;;  %v2104_v60 = vsel %vm1043_vm5, %v2044_v4, 0.0 }
 0x20b   : > { %v2004_v8 = vadd.f32 %v2003_v54, %v2002_v59  ;;  %v2105_v9 = vadd.f32 %v2104_v60, %v2103_v42 }
 0x20d   : > { %v2006_v1 = vadd.f32 %v2005_v26, %v2004_v8  ;;  %v2107_v61 = vadd.f32 %v2106_v12, %v2105_v9 }
 0x20f   : > { %v2007_v21 = vrot.slane %v2006_v1, 4  ;;  %v2109_v27 = vadd.f32 %v2108_v7, %v2107_v61 }
 0x211   : > { %v2008_v2 = vadd.f32 %v2007_v21, %v2006_v1  ;;  %v2110_v29 = vrot.slane %v2109_v27, 4 }
 0x213   : > { %v2009_v10 = vrot.slane %v2008_v2, 2  ;;  %v2111_v31 = vadd.f32 %v2110_v29, %v2109_v27 }
 0x215   : > { %v2010_v33 = vadd.f32 %v2009_v10, %v2008_v2  ;;  %v2112_v34 = vrot.slane %v2111_v31, 2 }
 0x217   : > { %v2011_v38 = vrot.slane %v2010_v33, 1  ;;  %v2113_v3 = vadd.f32 %v2112_v34, %v2111_v31 }
 0x219   : > { %v2012_v30 = vadd.f32 %v2011_v38, %v2010_v33  ;;  %v2114_v32 = vrot.slane %v2113_v3, 1 }
 0x21b   : > { %2014 = vst.msk [vmem:[%s292_s29] sm:$0x1] %vm2013_vm9, %v2012_v30  ;;  %v2115_v35 = vadd.f32 %v2114_v32, %v2113_v3 }
 0x21d   : > { %2116 = vst.msk [vmem:[%s295_s9] sm:$0x1] %vm2013_vm9, %v2115_v35 }
 0x21e PF: > { %s18_s24 = sadd.s32 1, %s2576_s24  }
 0x21f   : > { %p15_p4 = scmp.ge.s32.totalorder %s18_s24, 4  }
 0x221   :  { %17 = sbr.rel (!%p15_p4) target bundleno = 1 (0x1), region = 96 }

// kernel: up_forward.3
= control target key start
LH: loop header
LB: loop body
LE: loop exit
PB: predicated region body
PF: predicated region fallthrough
CT: control target
= control target key end

     0   :  { %s6414_s27 = smov 0   ;;  %s8492_s0 = inlined_call_operand.vmem [shape: bf16[2,16,16,4], index: 0, kind: input, shape index: {}]   ;;  %s8493_s1 = inlined_call_operand.vmem [shape: f32[2,8,8,4], index: 1, kind: input, shape index: {}]   ;;  %s8494_s2 = inlined_call_operand.vmem [shape: f32[324,64], index: 2, kind: input, shape index: {}]   ;;  %s8495_s3 = inlined_call_operand.vmem [shape: bf16[3,12,4], index: 3, kind: input, shape index: {}]   ;;  %s8496_s4 = inlined_call_operand.vmem [shape: bf16[3,12,4], index: 4, kind: input, shape index: {}]   ;;  %s8497_s5 = inlined_call_operand.vmem [shape: f32[1,4], index: 5, kind: input, shape index: {}]   ;;  %s8498_s6 = inlined_call_operand.vmem [shape: bf16[2,18,18,4], index: 6, kind: output, shape index: {0}]   ;;  %s8499_s7 = inlined_call_operand.vmem [shape: f32[2,1,4], index: 7, kind: output, shape index: {1}]   ;;  %s8500_s8 = inlined_call_operand.vmem [shape: f32[2,1,4], index: 8, kind: output, shape index: {2}]  }
   0x1 LB: > { %s5528_s28 = sadd.s32 4294967295, %s6361_s27   ;;  %p5532_p0 = scmp.ge.s32.totalorder %s6361_s27, 1  ;;  %s6361_s27 = sphi %s6414_s27, %s19_s27  }
   0x2   : > { %p277_p1 = scmp.lt.s32.totalorder %s6361_s27, 3 }
   0x4   : > { %p278_p2 = pnand %p5532_p0, %p277_p1 }
   0x6   : > { %281 = sbr.rel (%p278_p2) target bundleno = 991 (0x3df), region = 44 }
   0xb   : > { %p322_p3 = scmp.lt.s32.totalorder %s5528_s28, 1  ;;  %v8501_v0 = vmov 0.0   ;;  %vm6364_vm0 = vmmov 0   ;;  %v352_v9 = vld [vmem:[%s8494_s2] sm:$0xff]  ;;  %vm393_vm1 = vcmask 523264   ;;  %v353_v10 = vld [vmem:[%s8494_s2 + $0x8] sm:$0xff]  ;;  %v832_v52 = vlaneseq }
   0xc   : > { %5963 = vmatprep.subr.mxu0 %v8501_v0  ;;  %5979 = vmatprep.mubr.msk.f32.mxu0 %vm6364_vm0, %v8501_v0  ;;  %v354_v11 = vld [vmem:[%s8494_s2 + $0x10] sm:$0xff]  ;;  %v355_v12 = vld [vmem:[%s8494_s2 + $0x18] sm:$0xff]  ;;  %v356_v13 = vld [vmem:[%s8494_s2 + $0x20] sm:$0xff]  ;;  %v6365_v50 = vmov 1983009808   ;;  %vm2903_vm2 = vcmask 1046528  }
   0xd   : > { %s8548_s28 = smov (!%p322_p3, %s5528_s28), 1  ;;  %v357_v14 = vld [vmem:[%s8494_s2 + $0x28] sm:$0xff]  ;;  %v358_v15 = vld [vmem:[%s8494_s2 + $0x30] sm:$0xff]  ;;  %v359_v16 = vld [vmem:[%s8494_s2 + $0x38] sm:$0xff]  ;;  %v830_v51 = vunpack.c.l.s4 %v6365_v50  ;;  %v833_v54 = vshrl.u32 %v832_v52, 7  ;;  %s6366_s21 = smov 8  }
   0xe   : > { %s5760_s29 = sshll.u32 %s8548_s28, 6  ;;  %s5759_s11 = sshll.u32 %s8548_s28, 7  ;;  %v360_v17 = vld [vmem:[%s8494_s2 + $0x40] sm:$0xff]  ;;  %v361_v18 = vld [vmem:[%s8494_s2 + $0x48] sm:$0xff]  ;;  %v362_v19 = vld [vmem:[%s8494_s2 + $0x50] sm:$0xff]  ;;  %vm3492_vm4 = vcmask 1045504  }
   0xf   : > { %s331_s10 = scalar_lea.vmem %s8493_s1, %s5760_s29  ;;  %s6438_s14 = scalar_lea.vmem %s8492_s0, %s5759_s11  ;;  %v363_v20 = vld [vmem:[%s8494_s2 + $0x58] sm:$0xff]  ;;  %v364_v21 = vld [vmem:[%s8494_s2 + $0x60] sm:$0xff]  ;;  %v365_v22 = vld [vmem:[%s8494_s2 + $0x68] sm:$0xff]  ;;  %v831_v53 = vunpack.c.0.s8 %v830_v51  ;;  %vm2646_vm3 = vsmask.f32 7424  ;;  %vm2609_vm5 = vcmask 1040384  }
  0x10   : > { %v351_v1 = vld [vmem:[%s331_s10 + $0x38] sm:$0xff]  ;;  %v350_v2 = vld [vmem:[%s331_s10 + $0x30] sm:$0xff]  ;;  %v349_v3 = vld [vmem:[%s331_s10 + $0x28] sm:$0xff]  ;;  %s6367_s24 = smov 4   ;;  %vm2610_vm6 = vsmask.f32 256  ;;  %s339_s9 = scalar_lea.vmem %s8499_s7, %s8548_s28 }
  0x11   : > { %5964 = vmatpush3.msra.mxu0 %v351_v1  ;;  %v348_v4 = vld [vmem:[%s331_s10 + $0x20] sm:$0xff]  ;;  %v347_v5 = vld [vmem:[%s331_s10 + $0x18] sm:$0xff]  ;;  %v346_v6 = vld [vmem:[%s331_s10 + $0x10] sm:$0xff]  ;;  %v6688_v55 = vsub.s32 %v831_v53, %v833_v54  ;;  %vm2984_vm8 = vcmask 31744   ;;  %vm3017_vm9 = vcmask 64512   ;;  %vm3459_vm10 = vcmask 97280   ;;  %s342_s12 = scalar_lea.vmem %s8500_s8, %s8548_s28 }
  0x12   : > { %5965 = vmatprep.subr.mxu0 %v8501_v0  ;;  %v345_v7 = vld [vmem:[%s331_s10 + $0x8] sm:$0xff]  ;;  %v344_v8 = vld [vmem:[%s331_s10] sm:$0xff]  ;;  %v366_v23 = vld [vmem:[%s8494_s2 + $0x70] sm:$0xff]  ;;  %vm5183_vm11 = vcmask 27648   ;;  %vm5186_vm12 = vcmask 24576  }
  0x13   : > { %5966 = vmatpush3.msra.mxu0 %v350_v2  ;;  %v367_v24 = vld [vmem:[%s8494_s2 + $0x78] sm:$0xff]  ;;  %v368_v25 = vld [vmem:[%s8494_s2 + $0x80] sm:$0xff]  ;;  %v369_v26 = vld [vmem:[%s8494_s2 + $0x88] sm:$0xff] }
  0x14   : > { %5967 = vmatprep.subr.mxu0 %v8501_v0  ;;  %v370_v27 = vld [vmem:[%s8494_s2 + $0x90] sm:$0xff]  ;;  %v371_v28 = vld [vmem:[%s8494_s2 + $0x98] sm:$0xff]  ;;  %v372_v29 = vld [vmem:[%s8494_s2 + $0xa0] sm:$0xff] }
  0x15   : > { %5968 = vmatpush3.msra.mxu0 %v349_v3  ;;  %v373_v30 = vld [vmem:[%s8494_s2 + $0xa8] sm:$0xff]  ;;  %v374_v31 = vld [vmem:[%s8494_s2 + $0xb0] sm:$0xff]  ;;  %v375_v32 = vld [vmem:[%s8494_s2 + $0xb8] sm:$0xff] }
  0x16   : > { %5969 = vmatprep.subr.mxu0 %v8501_v0  ;;  %v376_v33 = vld [vmem:[%s8494_s2 + $0xc0] sm:$0xff]  ;;  %v377_v34 = vld [vmem:[%s8494_s2 + $0xc8] sm:$0xff]  ;;  %v378_v35 = vld [vmem:[%s8494_s2 + $0xd0] sm:$0xff] }
  0x17   : > { %5970 = vmatpush3.msra.mxu0 %v348_v4  ;;  %v379_v36 = vld [vmem:[%s8494_s2 + $0xd8] sm:$0xff]  ;;  %v380_v37 = vld [vmem:[%s8494_s2 + $0xe0] sm:$0xff]  ;;  %v381_v38 = vld [vmem:[%s8494_s2 + $0xe8] sm:$0xff] }
  0x18   : > { %5971 = vmatprep.subr.mxu0 %v8501_v0  ;;  %v382_v39 = vld [vmem:[%s8494_s2 + $0xf0] sm:$0xff]  ;;  %v383_v40 = vld [vmem:[%s8494_s2 + $0xf8] sm:$0xff]  ;;  %v384_v41 = vld [vmem:[%s8494_s2 + $0x100] sm:$0xff] }
  0x19   : > { %5972 = vmatpush3.msra.mxu0 %v347_v5  ;;  %v385_v42 = vld [vmem:[%s8494_s2 + $0x108] sm:$0xff]  ;;  %v386_v43 = vld [vmem:[%s8494_s2 + $0x110] sm:$0xff]  ;;  %v387_v44 = vld [vmem:[%s8494_s2 + $0x118] sm:$0xff] }
  0x1a   : > { %5973 = vmatprep.subr.mxu0 %v8501_v0  ;;  %v388_v45 = vld [vmem:[%s8494_s2 + $0x120] sm:$0xff]  ;;  %v389_v46 = vld [vmem:[%s8494_s2 + $0x128] sm:$0xff]  ;;  %v390_v47 = vld [vmem:[%s8494_s2 + $0x130] sm:$0xff] }
  0x1b   : > { %5974 = vmatpush3.msra.mxu0 %v346_v6  ;;  %v391_v48 = vld [vmem:[%s8494_s2 + $0x138] sm:$0xff]  ;;  %v392_v49 = vld [vmem:[%s8494_s2 + $0x140] sm:$0xf]  ;;  %vm6800_vm7 = vmand %vm2609_vm5, %vm2610_vm6 }
  0x1c   : > { %5975 = vmatprep.subr.mxu0 %v8501_v0 }
  0x1d   : > { %5976 = vmatpush3.msra.mxu0 %v345_v7 }
  0x1e   : > { %5977 = vmatprep.subr.mxu0 %v8501_v0 }
  0x1f   : > { %5978 = vmatpush3.msra.mxu0 %v344_v8 }
  0x20   : > { %5980 = vmatmul.mubr.msk.f32.vlgmr.msra.gmra.mxu0 %vm393_vm1, %v352_v9 }
  0x21   : > { %5982 = vmatprep.mubr.msk.f32.mxu0 %vm6364_vm0, %v8501_v0 }
  0x24   : > { %5983 = vmatmul.mubr.msk.f32.gmra.mxu0 %vm393_vm1, %v353_v10 }
  0x25   : > { %5985 = vmatprep.mubr.msk.f32.mxu0 %vm6364_vm0, %v8501_v0 }
  0x28   : > { %5986 = vmatmul.mubr.msk.f32.gmra.mxu0 %vm393_vm1, %v354_v11 }
  0x29   : > { %5988 = vmatprep.mubr.msk.f32.mxu0 %vm6364_vm0, %v8501_v0 }
  0x2c   : > { %5989 = vmatmul.mubr.msk.f32.gmra.mxu0 %vm393_vm1, %v355_v12 }
  0x2d   : > { %5991 = vmatprep.mubr.msk.f32.mxu0 %vm6364_vm0, %v8501_v0 }
  0x30   : > { %5992 = vmatmul.mubr.msk.f32.gmra.mxu0 %vm393_vm1, %v356_v13 }
  0x31   : > { %5994 = vmatprep.mubr.msk.f32.mxu0 %vm6364_vm0, %v8501_v0 }
  0x34   : > { %5995 = vmatmul.mubr.msk.f32.gmra.mxu0 %vm393_vm1, %v357_v14 }
  0x35   : > { %5997 = vmatprep.mubr.msk.f32.mxu0 %vm6364_vm0, %v8501_v0 }
  0x38   : > { %5998 = vmatmul.mubr.msk.f32.gmra.mxu0 %vm393_vm1, %v358_v15 }
  0x39   : > { %6000 = vmatprep.mubr.msk.f32.mxu0 %vm6364_vm0, %v8501_v0 }
  0x3c   : > { %6001 = vmatmul.mubr.msk.f32.gmra.mxu0 %vm393_vm1, %v359_v16 }
  0x3d   : > { %6003 = vmatprep.mubr.msk.f32.mxu0 %vm6364_vm0, %v8501_v0 }
  0x40   : > { %6004 = vmatmul.mubr.msk.f32.gmra.mxu0 %vm393_vm1, %v360_v17 }
  0x41   : > { %6006 = vmatprep.mubr.msk.f32.mxu0 %vm6364_vm0, %v8501_v0 }
  0x44   : > { %6007 = vmatmul.mubr.msk.f32.gmra.mxu0 %vm393_vm1, %v361_v18 }
  0x45   : > { %6009 = vmatprep.mubr.msk.f32.mxu0 %vm6364_vm0, %v8501_v0 }
  0x48   : > { %6010 = vmatmul.mubr.msk.f32.gmra.mxu0 %vm393_vm1, %v362_v19 }
  0x49   : > { %6012 = vmatprep.mubr.msk.f32.mxu0 %vm6364_vm0, %v8501_v0 }
  0x4c   : > { %6013 = vmatmul.mubr.msk.f32.gmra.mxu0 %vm393_vm1, %v363_v20 }
  0x4d   : > { %6015 = vmatprep.mubr.msk.f32.mxu0 %vm6364_vm0, %v8501_v0 }
  0x50   : > { %6016 = vmatmul.mubr.msk.f32.gmra.mxu0 %vm393_vm1, %v364_v21 }
  0x51   : > { %6018 = vmatprep.mubr.msk.f32.mxu0 %vm6364_vm0, %v8501_v0 }
  0x54   : > { %6019 = vmatmul.mubr.msk.f32.gmra.mxu0 %vm393_vm1, %v365_v22 }
  0x55   : > { %6021 = vmatprep.mubr.msk.f32.mxu0 %vm6364_vm0, %v8501_v0 }
  0x58   : > { %6022 = vmatmul.mubr.msk.f32.gmra.mxu0 %vm393_vm1, %v366_v23 }
  0x59   : > { %6024 = vmatprep.mubr.msk.f32.mxu0 %vm6364_vm0, %v8501_v0 }
  0x5c   : > { %6025 = vmatmul.mubr.msk.f32.gmra.mxu0 %vm393_vm1, %v367_v24 }
  0x5d   : > { %6027 = vmatprep.mubr.msk.f32.mxu0 %vm6364_vm0, %v8501_v0 }
  0x60   : > { %6028 = vmatmul.mubr.msk.f32.gmra.mxu0 %vm393_vm1, %v368_v25 }
  0x61   : > { %6030 = vmatprep.mubr.msk.f32.mxu0 %vm6364_vm0, %v8501_v0 }
  0x64   : > { %6031 = vmatmul.mubr.msk.f32.gmra.mxu0 %vm393_vm1, %v369_v26 }
  0x65   : > { %6033 = vmatprep.mubr.msk.f32.mxu0 %vm6364_vm0, %v8501_v0 }
  0x68   : > { %6034 = vmatmul.mubr.msk.f32.gmra.mxu0 %vm393_vm1, %v370_v27 }
  0x69   : > { %6036 = vmatprep.mubr.msk.f32.mxu0 %vm6364_vm0, %v8501_v0 }
  0x6c   : > { %6037 = vmatmul.mubr.msk.f32.gmra.mxu0 %vm393_vm1, %v371_v28 }
  0x6d   : > { %6039 = vmatprep.mubr.msk.f32.mxu0 %vm6364_vm0, %v8501_v0 }
  0x70   : > { %6040 = vmatmul.mubr.msk.f32.gmra.mxu0 %vm393_vm1, %v372_v29 }
  0x71   : > { %6042 = vmatprep.mubr.msk.f32.mxu0 %vm6364_vm0, %v8501_v0 }
  0x74   : > { %6043 = vmatmul.mubr.msk.f32.gmra.mxu0 %vm393_vm1, %v373_v30 }
  0x75   : > { %6045 = vmatprep.mubr.msk.f32.mxu0 %vm6364_vm0, %v8501_v0 }
  0x78   : > { %6046 = vmatmul.mubr.msk.f32.gmra.mxu0 %vm393_vm1, %v374_v31 }
  0x79   : > { %6048 = vmatprep.mubr.msk.f32.mxu0 %vm6364_vm0, %v8501_v0 }
  0x7c   : > { %6049 = vmatmul.mubr.msk.f32.gmra.mxu0 %vm393_vm1, %v375_v32 }
  0x7d   : > { %6051 = vmatprep.mubr.msk.f32.mxu0 %vm6364_vm0, %v8501_v0 }
  0x80   : > { %6052 = vmatmul.mubr.msk.f32.gmra.mxu0 %vm393_vm1, %v376_v33 }
  0x81   : > { %6054 = vmatprep.mubr.msk.f32.mxu0 %vm6364_vm0, %v8501_v0 }
  0x84   : > { %6055 = vmatmul.mubr.msk.f32.gmra.mxu0 %vm393_vm1, %v377_v34 }
  0x85   : > { %6057 = vmatprep.mubr.msk.f32.mxu0 %vm6364_vm0, %v8501_v0 }
  0x88   : > { %6058 = vmatmul.mubr.msk.f32.gmra.mxu0 %vm393_vm1, %v378_v35 }
  0x89   : > { %6060 = vmatprep.mubr.msk.f32.mxu0 %vm6364_vm0, %v8501_v0 }
  0x8c   : > { %6061 = vmatmul.mubr.msk.f32.gmra.mxu0 %vm393_vm1, %v379_v36 }
  0x8d   : > { %6063 = vmatprep.mubr.msk.f32.mxu0 %vm6364_vm0, %v8501_v0 }
  0x90   : > { %6064 = vmatmul.mubr.msk.f32.gmra.mxu0 %vm393_vm1, %v380_v37 }
  0x91   : > { %6066 = vmatprep.mubr.msk.f32.mxu0 %vm6364_vm0, %v8501_v0 }
  0x94   : > { %6067 = vmatmul.mubr.msk.f32.gmra.mxu0 %vm393_vm1, %v381_v38 }
  0x95   : > { %6069 = vmatprep.mubr.msk.f32.mxu0 %vm6364_vm0, %v8501_v0 }
  0x98   : > { %6070 = vmatmul.mubr.msk.f32.gmra.mxu0 %vm393_vm1, %v382_v39 }
  0x99   : > { %6072 = vmatprep.mubr.msk.f32.mxu0 %vm6364_vm0, %v8501_v0 }
  0x9c   : > { %6073 = vmatmul.mubr.msk.f32.gmra.mxu0 %vm393_vm1, %v383_v40 }
  0x9d   : > { %6075 = vmatprep.mubr.msk.f32.mxu0 %vm6364_vm0, %v8501_v0 }
  0xa0   : > { %6076 = vmatmul.mubr.msk.f32.gmra.mxu0 %vm393_vm1, %v384_v41 }
  0xa1   : > { %6078 = vmatprep.mubr.msk.f32.mxu0 %vm6364_vm0, %v8501_v0 }
  0xa4   : > { %6079 = vmatmul.mubr.msk.f32.gmra.mxu0 %vm393_vm1, %v385_v42 }
  0xa5   : > { %6081 = vmatprep.mubr.msk.f32.mxu0 %vm6364_vm0, %v8501_v0 }
  0xa8   : > { %6082 = vmatmul.mubr.msk.f32.gmra.mxu0 %vm393_vm1, %v386_v43 }
  0xa9   : > { %6084 = vmatprep.mubr.msk.f32.mxu0 %vm6364_vm0, %v8501_v0 }
  0xac   : > { %6085 = vmatmul.mubr.msk.f32.gmra.mxu0 %vm393_vm1, %v387_v44 }
  0xad   : > { %6087 = vmatprep.mubr.msk.f32.mxu0 %vm6364_vm0, %v8501_v0 }
  0xb0   : > { %6088 = vmatmul.mubr.msk.f32.gmra.mxu0 %vm393_vm1, %v388_v45 }
  0xb1   : > { %6090 = vmatprep.mubr.msk.f32.mxu0 %vm6364_vm0, %v8501_v0 }
  0xb4   : > { %6091 = vmatmul.mubr.msk.f32.gmra.mxu0 %vm393_vm1, %v389_v46 }
  0xb5   : > { %6093 = vmatprep.mubr.msk.f32.mxu0 %vm6364_vm0, %v8501_v0 }
  0xb8   : > { %6094 = vmatmul.mubr.msk.f32.gmra.mxu0 %vm393_vm1, %v390_v47 }
  0xb9   : > { %6096 = vmatprep.mubr.msk.f32.mxu0 %vm6364_vm0, %v8501_v0 }
  0xbc   : > { %6097 = vmatmul.mubr.msk.f32.gmra.mxu0 %vm393_vm1, %v391_v48 }
  0xbd   : > { %6099 = vmatprep.mubr.msk.f32.mxu0 %vm6364_vm0, %v8501_v0 }
  0xc0   : > { %6100 = vmatmul.mubr.msk.f32.gmra.mxu0 %vm393_vm1, %v392_v49 }
  0xe0   : > { %v583_v56 = vpop.f32.mrf.mxu0 }
  0xe1   : > { %v828_v57 = vcombine.high %v583_v56, %v583_v56  ;;  %v835_v58 = vrot.slane %v583_v56, %v6688_v55 }
  0xe2   : > { %v5981_v59 = vpop.f32.mrf.mxu0 }
  0xe3   : > { %v842_v60 = vrot.slane %v828_v57, %v6688_v55  ;;  %v843_v61 = vcombine.high %v835_v58, %v835_v58 }
  0xe4   : > { %v588_v62 = vpop.f32.mrf.mxu0 }
  0xe5   : > { %v844_v63 = vcombine.high %v842_v60, %v842_v60  ;;  %v845_v1 = vcombine.high %v588_v62, %v588_v62  ;;  %v852_v2 = vrot.slane %v588_v62, %v6688_v55  ;;  %v1516_v7 = vcombine.low %v835_v58, %v843_v61 }
  0xe6   : > { %v5984_v3 = vpop.f32.mrf.mxu0 }
  0xe7   : > { %v1517_v4 = vcombine.low %v842_v60, %v844_v63  ;;  %v859_v5 = vrot.slane %v845_v1, %v6688_v55  ;;  %v860_v6 = vcombine.high %v852_v2, %v852_v2  ;;  %v1524_v17 = vrot.slane %v1516_v7, %v6688_v55  ;;  %v6330_v3 = vld [vmem:[%s8496_s4] sm:$0x3f]  }
  0xe8   : > { %v593_v8 = vpop.f32.mrf.mxu0  ;;  %6308 = vmatprep.subr.msk.bf16.mxu1 %vm3492_vm4, %v6330_v3 }
  0xe9   : > { %v861_v9 = vcombine.high %v859_v5, %v859_v5  ;;  %v1533_v10 = vcombine.low %v852_v2, %v860_v6  ;;  %v862_v11 = vcombine.high %v593_v8, %v593_v8  ;;  %v1531_v12 = vrot.slane %v1517_v4, %v6688_v55 }
  0xea   : > { %v869_v13 = vrot.slane %v593_v8, %v6688_v55  ;;  %v5987_v14 = vpop.f32.mrf.mxu0 }
  0xeb   : > { %v1534_v15 = vcombine.low %v859_v5, %v861_v9  ;;  %v876_v16 = vrot.slane %v862_v11, %v6688_v55  ;;  %v1541_v18 = vrot.slane %v1533_v10, %v6688_v55  ;;  %v1532_v26 = vcombine.low %v1524_v17, %v1531_v12 }
  0xec   : > { %v877_v19 = vcombine.high %v869_v13, %v869_v13  ;;  %v1556_v20 = vrot.slane %v869_v13, %v6688_v55  ;;  %v598_v21 = vpop.f32.mrf.mxu0 }
  0xed   : > { %v1548_v22 = vrot.slane %v1534_v15, %v6688_v55  ;;  %v878_v23 = vcombine.high %v876_v16, %v876_v16  ;;  %v879_v24 = vcombine.high %v598_v21, %v598_v21  ;;  %v886_v25 = vrot.slane %v598_v21, %v6688_v55 }
  0xee   : > { %v1557_v27 = vcombine.low %v877_v19, %v876_v16  ;;  %v2309_v28 = vpack.c.bf16 %v1556_v20, %v1556_v20  ;;  %v5990_v29 = vpop.f32.mrf.mxu0 }
  0xef   : > { %v1549_v30 = vcombine.low %v1541_v18, %v1548_v22  ;;  %v893_v31 = vrot.slane %v879_v24, %v6688_v55  ;;  %v894_v32 = vcombine.high %v886_v25, %v886_v25  ;;  %v1558_v33 = vcombine.low %v878_v23, %v886_v25 }
  0xf0   : > { %v603_v34 = vpop.f32.mrf.mxu0  ;;  %v3058_v35 = vshll.u32 %v2309_v28, 16  ;;  %v1565_v39 = vrot.slane %v1557_v27, %v6688_v55  ;;  %v3307_v43 = vrot.slane %v2309_v28, 1 }
  0xf1   : > { %v6703_v36 = vpack.c.bf16 %v1549_v30, %v1532_v26  ;;  %v1574_v37 = vcombine.low %v894_v32, %v893_v31  ;;  %v895_v38 = vcombine.high %v893_v31, %v893_v31  ;;  %v896_v40 = vcombine.high %v603_v34, %v603_v34 }
  0xf2   : > { %v903_v41 = vrot.slane %v603_v34, %v6688_v55  ;;  %v5993_v42 = vpop.f32.mrf.mxu0  ;;  %v1572_v44 = vrot.slane %v1558_v33, %v6688_v55  ;;  %v3060_v47 = vrot.slane %v3058_v35, 1 }
  0xf3   : > { %v1582_v45 = vrot.slane %v1574_v37, %v6688_v55  ;;  %v3306_v46 = vrot.slane %v6703_v36, 1  ;;  %v910_v48 = vrot.slane %v896_v40, %v6688_v55  ;;  %v3053_v52 = vshll.u32 %v6703_v36, 16 }
  0xf4   : > { %v911_v49 = vcombine.high %v903_v41, %v903_v41  ;;  %v1575_v50 = vcombine.low %v895_v38, %v903_v41  ;;  %v608_v51 = vpop.f32.mrf.mxu0  ;;  %v3051_v57 = vshrl.u32 %v6703_v36, 16  ;;  %v1573_v63 = vcombine.low %v1565_v39, %v1572_v44 }
  0xf5   : > { %v913_v53 = vcombine.high %v608_v51, %v608_v51  ;;  %v920_v54 = vrot.slane %v608_v51, %v6688_v55  ;;  %v3308_v56 = vsel %vm2903_vm2, %v3306_v46, %v3307_v43  ;;  %v912_v58 = vcombine.high %v910_v48, %v910_v48  ;;  %v6745_v46 = vld [vmem:[%s8496_s4 + $0x8] sm:$0x3f]  }
  0xf6   : > { %v1589_v59 = vrot.slane %v1575_v50, %v6688_v55  ;;  %v1597_v60 = vrot.slane %v911_v49, %v6688_v55  ;;  %3354 = vrot.lane.b32.xlu1 %v3308_v56, %s6366_s21  ;;  %v5996_v61 = vpop.f32.mrf.mxu0  ;;  %v3055_v62 = vrot.slane %v3053_v52, 1  ;;  %6311 = vmatprep.subr.msk.bf16.mxu0 %vm3492_vm4, %v6745_v46 }
  0xf7   : > { %v927_v1 = vrot.slane %v913_v53, %v6688_v55  ;;  %v928_v2 = vcombine.high %v920_v54, %v920_v54  ;;  %v1598_v5 = vcombine.low %v910_v48, %v912_v58 }
  0xf8   : > { %v1590_v4 = vcombine.low %v1582_v45, %v1589_v59  ;;  %v2311_v6 = vpack.c.bf16 %v1597_v60, %v1597_v60  ;;  %v613_v7 = vpop.f32.mrf.mxu0  ;;  %v3056_v8 = vor.u32 %v3055_v62, %v3051_v57  ;;  %v3494_v45 = vsel %vm3492_vm4, %v6330_v3, 0 }
  0xf9   : > { %v929_v9 = vcombine.high %v927_v1, %v927_v1  ;;  %v1599_v10 = vcombine.low %v920_v54, %v928_v2  ;;  %v930_v11 = vcombine.high %v613_v7, %v613_v7  ;;  %v937_v12 = vrot.slane %v613_v7, %v6688_v55  ;;  %6103 = vmatpush3.bf16.msra.mxu1 %v3494_v45 }
  0xfa   : > { %v1606_v13 = vrot.slane %v1598_v5, %v6688_v55  ;;  %v6725_v14 = vpack.c.bf16 %v1590_v4, %v1573_v63  ;;  %v3061_v15 = vsel %vm2646_vm3, %v3056_v8, %v3060_v47  ;;  %v5999_v16 = vpop.f32.mrf.mxu0  ;;  %v3310_v17 = vrot.slane %v2311_v6, 1 }
  0xfb   : > { %v1613_v18 = vrot.slane %v1599_v10, %v6688_v55  ;;  %v1615_v19 = vcombine.low %v927_v1, %v929_v9  ;;  %v944_v20 = vrot.slane %v930_v11, %v6688_v55  ;;  %v945_v21 = vcombine.high %v937_v12, %v937_v12  ;;  %3242 = vrot.lane.b32.xlu0 %v3061_v15, %s6367_s24 }
  0xfc   : > { %v618_v22 = vpop.f32.mrf.mxu0  ;;  %v3309_v23 = vrot.slane %v6725_v14, 1  ;;  %v3063_v24 = vshrl.u32 %v6725_v14, 16  ;;  %v3065_v25 = vshll.u32 %v6725_v14, 16  ;;  %v3070_v26 = vshll.u32 %v2311_v6, 16 }
  0xfd   : > { %v1614_v27 = vcombine.low %v1606_v13, %v1613_v18  ;;  %v1623_v28 = vrot.slane %v1615_v19, %v6688_v55  ;;  %v1616_v29 = vcombine.low %v937_v12, %v945_v21  ;;  %v1638_v30 = vrot.slane %v944_v20, %v6688_v55 }
  0xfe   : > { %v946_v31 = vcombine.high %v944_v20, %v944_v20  ;;  %v947_v32 = vcombine.high %v618_v22, %v618_v22  ;;  %v954_v33 = vrot.slane %v618_v22, %v6688_v55  ;;  %v3311_v34 = vsel %vm2903_vm2, %v3309_v23, %v3310_v17  ;;  %v6002_v35 = vpop.f32.mrf.mxu0 }
  0xff   : > { %v1630_v37 = vrot.slane %v1616_v29, %v6688_v55  ;;  %v2313_v38 = vpack.c.bf16 %v1638_v30, %v1638_v30  ;;  %3356 = vrot.lane.b32.xlu1 %v3311_v34, %s6366_s21  ;;  %v3067_v39 = vrot.slane %v3065_v25, 1  ;;  %v3072_v40 = vrot.slane %v3070_v26, 1 }
 0x100   : > { %v961_v41 = vrot.slane %v947_v32, %v6688_v55  ;;  %v962_v42 = vcombine.high %v954_v33, %v954_v33  ;;  %v1639_v43 = vcombine.low %v946_v31, %v954_v33  ;;  %v623_v44 = vpop.f32.mrf.mxu0 }
 0x101   : > { %v1631_v47 = vcombine.low %v1623_v28, %v1630_v37  ;;  %v964_v48 = vcombine.high %v623_v44, %v623_v44  ;;  %v971_v49 = vrot.slane %v623_v44, %v6688_v55  ;;  %v3068_v50 = vor.u32 %v3067_v39, %v3063_v24 }
 0x102   : > { %v1640_v51 = vcombine.low %v962_v42, %v961_v41  ;;  %v963_v52 = vcombine.high %v961_v41, %v961_v41  ;;  %v6005_v53 = vpop.f32.mrf.mxu0  ;;  %v3082_v54 = vshll.u32 %v2313_v38, 16  ;;  %v1647_v60 = vrot.slane %v1639_v43, %v6688_v55 }
 0x103   : > { %v6750_v56 = vpack.c.bf16 %v1631_v47, %v1614_v27  ;;  %v978_v57 = vrot.slane %v964_v48, %v6688_v55  ;;  %v979_v58 = vcombine.high %v971_v49, %v971_v49  ;;  %v3073_v59 = vsel %vm2646_vm3, %v3068_v50, %v3072_v40 }
 0x104   : > { %v1654_v61 = vrot.slane %v1640_v51, %v6688_v55  ;;  %v1656_v62 = vcombine.low %v963_v52, %v971_v49  ;;  %3244 = vrot.lane.b32.xlu0 %v3073_v59, %s6367_s24  ;;  %v628_v63 = vpop.f32.mrf.mxu0  ;;  %v3084_v8 = vrot.slane %v3082_v54, 1  ;;  %v3313_v9 = vrot.slane %v2313_v38, 1 }
 0x105   : > { %v980_v1 = vcombine.high %v978_v57, %v978_v57  ;;  %v1657_v2 = vcombine.low %v979_v58, %v978_v57  ;;  %v981_v3 = vcombine.high %v628_v63, %v628_v63  ;;  %v988_v4 = vrot.slane %v628_v63, %v6688_v55 }
 0x106   : > { %v1664_v5 = vrot.slane %v1656_v62, %v6688_v55  ;;  %v6008_v6 = vpop.f32.mrf.mxu0  ;;  %v3077_v7 = vshll.u32 %v6750_v56, 16  ;;  %v1655_v15 = vcombine.low %v1647_v60, %v1654_v61  ;;  %v3075_v17 = vshrl.u32 %v6750_v56, 16 }
 0x107   : > { %v1671_v10 = vrot.slane %v1657_v2, %v6688_v55  ;;  %v1679_v11 = vrot.slane %v980_v1, %v6688_v55  ;;  %v995_v12 = vrot.slane %v981_v3, %v6688_v55  ;;  %v996_v13 = vcombine.high %v988_v4, %v988_v4 }
 0x108   : > { %v633_v16 = vpop.f32.mrf.mxu0  ;;  %v3079_v18 = vrot.slane %v3077_v7, 1  ;;  %v3312_v19 = vrot.slane %v6750_v56, 1 }
 0x109   : > { %v1672_v20 = vcombine.low %v1664_v5, %v1671_v10  ;;  %v2315_v21 = vpack.c.bf16 %v1679_v11, %v1679_v11  ;;  %v997_v22 = vcombine.high %v995_v12, %v995_v12  ;;  %v1680_v23 = vcombine.low %v988_v4, %v996_v13 }
 0x10a   : > { %v998_v24 = vcombine.high %v633_v16, %v633_v16  ;;  %v1005_v25 = vrot.slane %v633_v16, %v6688_v55  ;;  %v6011_v26 = vpop.f32.mrf.mxu0  ;;  %v3080_v27 = vor.u32 %v3079_v18, %v3075_v17  ;;  %v3314_v30 = vsel %vm2903_vm2, %v3312_v19, %v3313_v9 }
 0x10b   : > { %v6766_v28 = vpack.c.bf16 %v1672_v20, %v1655_v15  ;;  %v1681_v29 = vcombine.low %v995_v12, %v997_v22  ;;  %v3094_v31 = vshll.u32 %v2315_v21, 16  ;;  %v1688_v32 = vrot.slane %v1680_v23, %v6688_v55 }
 0x10c   : > { %v1012_v33 = vrot.slane %v998_v24, %v6688_v55  ;;  %v1013_v34 = vcombine.high %v1005_v25, %v1005_v25  ;;  %v3085_v35 = vsel %vm2646_vm3, %v3080_v27, %v3084_v8  ;;  %v638_v37 = vpop.f32.mrf.mxu0  ;;  %v3316_v41 = vrot.slane %v2315_v21, 1 }
 0x10d   : > { %v1695_v38 = vrot.slane %v1681_v29, %v6688_v55  ;;  %3246 = vrot.lane.b32.xlu0 %v3085_v35, %s6367_s24  ;;  %v1015_v39 = vcombine.high %v638_v37, %v638_v37  ;;  %v1022_v40 = vrot.slane %v638_v37, %v6688_v55  ;;  %v3087_v45 = vshrl.u32 %v6766_v28, 16 }
 0x10e   : > { %v1014_v42 = vcombine.high %v1012_v33, %v1012_v33  ;;  %v1697_v43 = vcombine.low %v1005_v25, %v1013_v34  ;;  %v6014_v44 = vpop.f32.mrf.mxu0  ;;  %v3089_v47 = vshll.u32 %v6766_v28, 16  ;;  %v3096_v51 = vrot.slane %v3094_v31, 1 }
 0x10f   : > { %v1029_v48 = vrot.slane %v1015_v39, %v6688_v55  ;;  %v1030_v49 = vcombine.high %v1022_v40, %v1022_v40  ;;  %v1720_v50 = vrot.slane %v1022_v40, %v6688_v55  ;;  %v1696_v52 = vcombine.low %v1688_v32, %v1695_v38 }
 0x110   : > { %v1698_v53 = vcombine.low %v1012_v33, %v1014_v42  ;;  %v643_v54 = vpop.f32.mrf.mxu0  ;;  %v3091_v57 = vrot.slane %v3089_v47, 1  ;;  %v3315_v58 = vrot.slane %v6766_v28, 1  ;;  %v1705_v63 = vrot.slane %v1697_v43, %v6688_v55 }
 0x111   : > { %v1721_v59 = vcombine.low %v1030_v49, %v1029_v48  ;;  %v2317_v60 = vpack.c.bf16 %v1720_v50, %v1720_v50  ;;  %3358 = vrot.lane.b32.xlu0 %v3314_v30, %s6366_s21  ;;  %v1031_v61 = vcombine.high %v1029_v48, %v1029_v48  ;;  %v1032_v62 = vcombine.high %v643_v54, %v643_v54 }
 0x112   : > { %v1712_v1 = vrot.slane %v1698_v53, %v6688_v55  ;;  %v1039_v2 = vrot.slane %v643_v54, %v6688_v55  ;;  %v6017_v3 = vpop.f32.mrf.mxu0  ;;  %v3092_v4 = vor.u32 %v3091_v57, %v3087_v45  ;;  %v3317_v8 = vsel %vm2903_vm2, %v3315_v58, %v3316_v41 }
 0x113   : > { %v1729_v5 = vrot.slane %v1721_v59, %v6688_v55  ;;  %v3106_v6 = vshll.u32 %v2317_v60, 16  ;;  %v1046_v7 = vrot.slane %v1032_v62, %v6688_v55  ;;  %v3319_v18 = vrot.slane %v2317_v60, 1 }
 0x114   : > { %v1713_v9 = vcombine.low %v1705_v63, %v1712_v1  ;;  %v1047_v10 = vcombine.high %v1039_v2, %v1039_v2  ;;  %v1722_v11 = vcombine.low %v1031_v61, %v1039_v2  ;;  %v3097_v12 = vsel %vm2646_vm3, %v3092_v4, %v3096_v51  ;;  %v648_v13 = vpop.f32.mrf.mxu0 }
 0x115   : > { %3248 = vrot.lane.b32.xlu1 %v3097_v12, %s6367_s24  ;;  %v1048_v15 = vcombine.high %v1046_v7, %v1046_v7  ;;  %v1049_v16 = vcombine.high %v648_v13, %v648_v13  ;;  %v1056_v17 = vrot.slane %v648_v13, %v6688_v55  ;;  %v3108_v23 = vrot.slane %v3106_v6, 1 }
 0x116   : > { %v6790_v19 = vpack.c.bf16 %v1713_v9, %v1696_v52  ;;  %v1736_v20 = vrot.slane %v1722_v11, %v6688_v55  ;;  %v1738_v21 = vcombine.low %v1047_v10, %v1046_v7  ;;  %v6020_v22 = vpop.f32.mrf.mxu0  ;;  %v6368_v32 = vmov 0  }
 0x117   : > { %v1063_v24 = vrot.slane %v1049_v16, %v6688_v55  ;;  %v1064_v25 = vcombine.high %v1056_v17, %v1056_v17  ;;  %v1739_v26 = vcombine.low %v1048_v15, %v1056_v17  ;;  %v2459_v33 = vrot.slane %v6368_v32, 7 }
 0x118   : > { %v1737_v27 = vcombine.low %v1729_v5, %v1736_v20  ;;  %v1746_v29 = vrot.slane %v1738_v21, %v6688_v55  ;;  %v653_v30 = vpop.f32.mrf.mxu0  ;;  %v3101_v31 = vshll.u32 %v6790_v19, 16  ;;  %v3099_v42 = vshrl.u32 %v6790_v19, 16 }
 0x119   : > { %v1065_v34 = vcombine.high %v1063_v24, %v1063_v24  ;;  %v1753_v35 = vrot.slane %v1739_v26, %v6688_v55  ;;  %v1761_v37 = vrot.slane %v1064_v25, %v6688_v55  ;;  %3360 = vrot.lane.b32.xlu1 %v3317_v8, %s6366_s21  ;;  %v1066_v38 = vcombine.high %v653_v30, %v653_v30 }
 0x11a   : > { %v1073_v40 = vrot.slane %v653_v30, %v6688_v55  ;;  %v6023_v41 = vpop.f32.mrf.mxu0  ;;  %v3103_v43 = vrot.slane %v3101_v31, 1  ;;  %v3318_v44 = vrot.slane %v6790_v19, 1  ;;  %v6811_v54 = vsel %vm6800_vm7, 0, %v2459_v33 }
 0x11b   : > { %v1754_v45 = vcombine.low %v1746_v29, %v1753_v35  ;;  %v1762_v47 = vcombine.low %v1063_v24, %v1065_v34  ;;  %v2319_v48 = vpack.c.bf16 %v1761_v37, %v1761_v37  ;;  %v1080_v49 = vrot.slane %v1066_v38, %v6688_v55 }
 0x11c   : > { %v1081_v50 = vcombine.high %v1073_v40, %v1073_v40  ;;  %v658_v51 = vpop.f32.mrf.mxu0  ;;  %v3104_v52 = vor.u32 %v3103_v43, %v3099_v42  ;;  %v3320_v53 = vsel %vm2903_vm2, %v3318_v44, %v3319_v18  ;;  %v6817_v60 = vsel %vm6800_vm7, %v2459_v33, 0 }
 0x11d   : > { %v6813_v57 = vpack.c.bf16 %v1754_v45, %v1737_v27  ;;  %v1082_v58 = vcombine.high %v1080_v49, %v1080_v49  ;;  %v1083_v59 = vcombine.high %v658_v51, %v658_v51  ;;  %v1090_v62 = vrot.slane %v658_v51, %v6688_v55 }
 0x11e   : > { %v1763_v61 = vcombine.low %v1073_v40, %v1081_v50  ;;  %v3109_v63 = vsel %vm2646_vm3, %v3104_v52, %v3108_v23  ;;  %v6026_v1 = vpop.f32.mrf.mxu0  ;;  %v3118_v2 = vshll.u32 %v2319_v48, 16  ;;  %v1770_v3 = vrot.slane %v1762_v47, %v6688_v55 }
 0x11f   : > { %v1779_v4 = vcombine.low %v1080_v49, %v1082_v58  ;;  %v1097_v5 = vrot.slane %v1083_v59, %v6688_v55  ;;  %3250 = vrot.lane.b32.xlu0 %v3109_v63, %s6367_s24  ;;  %v3113_v6 = vshll.u32 %v6813_v57, 16  ;;  %v1098_v8 = vcombine.high %v1090_v62, %v1090_v62 }
 0x120   : > { %v1777_v7 = vrot.slane %v1763_v61, %v6688_v55  ;;  %v663_v9 = vpop.f32.mrf.mxu0  ;;  %v3111_v10 = vshrl.u32 %v6813_v57, 16  ;;  %v3120_v11 = vrot.slane %v3118_v2, 1  ;;  %v3321_v16 = vrot.slane %v6813_v57, 1 }
 0x121   : > { %v1802_v12 = vrot.slane %v1097_v5, %v6688_v55  ;;  %v1099_v13 = vcombine.high %v1097_v5, %v1097_v5  ;;  %v1100_v15 = vcombine.high %v663_v9, %v663_v9  ;;  %v1787_v17 = vrot.slane %v1779_v4, %v6688_v55 }
 0x122   : > { %v1780_v18 = vcombine.low %v1090_v62, %v1098_v8  ;;  %v1107_v20 = vrot.slane %v663_v9, %v6688_v55  ;;  %v6029_v21 = vpop.f32.mrf.mxu0  ;;  %v3115_v22 = vrot.slane %v3113_v6, 1  ;;  %v1778_v23 = vcombine.low %v1770_v3, %v1777_v7 }
 0x123   : > { %v6831_v24 = vpack.c.bf16 %v1802_v12, %v1802_v12  ;;  %v1114_v25 = vrot.slane %v1100_v15, %v6688_v55  ;;  %3362 = vrot.lane.b32.xlu0 %v3320_v53, %s6366_s21  ;;  %v3322_v26 = vrot.slane %v2319_v48, 1  ;;  %v2648_v37 = vshrl.u32 %v6811_v54, 16 }
 0x124   : > { %v1794_v27 = vrot.slane %v1780_v18, %v6688_v55  ;;  %v1115_v29 = vcombine.high %v1107_v20, %v1107_v20  ;;  %v1803_v30 = vcombine.low %v1099_v13, %v1107_v20  ;;  %v668_v31 = vpop.f32.mrf.mxu0  ;;  %v3116_v32 = vor.u32 %v3115_v22, %v3111_v10 }
 0x125   : > { %v1116_v33 = vcombine.high %v1114_v25, %v1114_v25  ;;  %v1117_v34 = vcombine.high %v668_v31, %v668_v31  ;;  %v1124_v35 = vrot.slane %v668_v31, %v6688_v55  ;;  %v3323_v43 = vsel %vm2903_vm2, %v3321_v16, %v3322_v26 }
 0x126   : > { %v1795_v38 = vcombine.low %v1787_v17, %v1794_v27  ;;  %v1804_v40 = vcombine.low %v1115_v29, %v1114_v25  ;;  %v3121_v41 = vsel %vm2646_vm3, %v3116_v32, %v3120_v11  ;;  %v6032_v42 = vpop.f32.mrf.mxu0  ;;  %v1811_v44 = vrot.slane %v1803_v30, %v6688_v55 }
 0x127   : > { %v1131_v45 = vrot.slane %v1117_v34, %v6688_v55  ;;  %v1132_v47 = vcombine.high %v1124_v35, %v1124_v35  ;;  %v1820_v48 = vcombine.low %v1116_v33, %v1124_v35  ;;  %3252 = vrot.lane.b32.xlu1 %v3121_v41, %s6367_s24  ;;  %v3130_v52 = vshll.u32 %v6831_v24, 16 }
 0x128   : > { %v6843_v49 = vpack.c.bf16 %v1795_v38, %v1778_v23  ;;  %v1818_v50 = vrot.slane %v1804_v40, %v6688_v55  ;;  %v673_v51 = vpop.f32.mrf.mxu0  ;;  %v3325_v53 = vrot.slane %v6831_v24, 1  ;;  %v2650_v62 = vshll.u32 %v6811_v54, 16 }
 0x129   : > { %v1133_v58 = vcombine.high %v1131_v45, %v1131_v45  ;;  %v1821_v59 = vcombine.low %v1132_v47, %v1131_v45  ;;  %v1134_v61 = vcombine.high %v673_v51, %v673_v51  ;;  %v1828_v1 = vrot.slane %v1820_v48, %v6688_v55 }
 0x12a   : > { %v1819_v63 = vcombine.low %v1811_v44, %v1818_v50  ;;  %v1141_v2 = vrot.slane %v673_v51, %v6688_v55  ;;  %v6035_v3 = vpop.f32.mrf.mxu0  ;;  %v3125_v4 = vshll.u32 %v6843_v49, 16  ;;  %v3123_v8 = vshrl.u32 %v6843_v49, 16 }
 0x12b   : > { %v1835_v5 = vrot.slane %v1821_v59, %v6688_v55  ;;  %v1843_v6 = vrot.slane %v1133_v58, %v6688_v55  ;;  %v1148_v7 = vrot.slane %v1134_v61, %v6688_v55  ;;  %3364 = vrot.lane.b32.xlu1 %v3323_v43, %s6366_s21  ;;  %v3132_v12 = vrot.slane %v3130_v52, 1 }
 0x12c   : > { %v1149_v9 = vcombine.high %v1141_v2, %v1141_v2  ;;  %v678_v10 = vpop.f32.mrf.mxu0  ;;  %v3127_v11 = vrot.slane %v3125_v4, 1  ;;  %v3324_v13 = vrot.slane %v6843_v49, 1  ;;  %v2652_v24 = vrot.slane %v2650_v62, 1 }
 0x12d   : > { %v1836_v15 = vcombine.low %v1828_v1, %v1835_v5  ;;  %v2323_v16 = vpack.c.bf16 %v1843_v6, %v1843_v6  ;;  %v1150_v17 = vcombine.high %v1148_v7, %v1148_v7  ;;  %v1151_v18 = vcombine.high %v678_v10, %v678_v10 }
 0x12e   : > { %v1844_v20 = vcombine.low %v1141_v2, %v1149_v9  ;;  %v1158_v21 = vrot.slane %v678_v10, %v6688_v55  ;;  %v6038_v22 = vpop.f32.mrf.mxu0  ;;  %v3128_v23 = vor.u32 %v3127_v11, %v3123_v8  ;;  %v3326_v34 = vsel %vm2903_vm2, %v3324_v13, %v3325_v53 }
 0x12f   : > { %v6859_v25 = vpack.c.bf16 %v1836_v15, %v1819_v63  ;;  %v1845_v26 = vcombine.low %v1148_v7, %v1150_v17  ;;  %v1165_v27 = vrot.slane %v1151_v18, %v6688_v55  ;;  %v3142_v29 = vshll.u32 %v2323_v16, 16 }
 0x130   : > { %v1852_v30 = vrot.slane %v1844_v20, %v6688_v55  ;;  %v1166_v31 = vcombine.high %v1158_v21, %v1158_v21  ;;  %v3133_v32 = vsel %vm2646_vm3, %v3128_v23, %v3132_v12  ;;  %v683_v33 = vpop.f32.mrf.mxu0  ;;  %v3328_v41 = vrot.slane %v2323_v16, 1 }
 0x131   : > { %v1167_v35 = vcombine.high %v1165_v27, %v1165_v27  ;;  %3254 = vrot.lane.b32.xlu0 %v3133_v32, %s6367_s24  ;;  %v1168_v38 = vcombine.high %v683_v33, %v683_v33  ;;  %v1175_v40 = vrot.slane %v683_v33, %v6688_v55  ;;  %v1859_v42 = vrot.slane %v1845_v26, %v6688_v55 }
 0x132   : > { %v1861_v43 = vcombine.low %v1158_v21, %v1166_v31  ;;  %v6041_v44 = vpop.f32.mrf.mxu0  ;;  %v3135_v45 = vshrl.u32 %v6859_v25, 16  ;;  %v3137_v47 = vshll.u32 %v6859_v25, 16  ;;  %v3144_v52 = vrot.slane %v3142_v29, 1 }
 0x133   : > { %v1862_v48 = vcombine.low %v1165_v27, %v1167_v35  ;;  %v1182_v50 = vrot.slane %v1168_v38, %v6688_v55  ;;  %v1183_v51 = vcombine.high %v1175_v40, %v1175_v40  ;;  %v1884_v58 = vrot.slane %v1175_v40, %v6688_v55 }
 0x134   : > { %v1869_v53 = vrot.slane %v1861_v43, %v6688_v55  ;;  %v688_v59 = vpop.f32.mrf.mxu0  ;;  %v3139_v61 = vrot.slane %v3137_v47, 1  ;;  %v3327_v62 = vrot.slane %v6859_v25, 1  ;;  %v1860_v4 = vcombine.low %v1852_v30, %v1859_v42 }
 0x135   : > { %v1876_v63 = vrot.slane %v1862_v48, %v6688_v55  ;;  %v1885_v1 = vcombine.low %v1183_v51, %v1182_v50  ;;  %3366 = vrot.lane.b32.xlu0 %v3326_v34, %s6366_s21  ;;  %v1184_v2 = vcombine.high %v1182_v50, %v1182_v50  ;;  %v1185_v3 = vcombine.high %v688_v59, %v688_v59 }
 0x136   : > { %v2325_v5 = vpack.c.bf16 %v1884_v58, %v1884_v58  ;;  %v1192_v6 = vrot.slane %v688_v59, %v6688_v55  ;;  %v6044_v7 = vpop.f32.mrf.mxu0  ;;  %v3140_v8 = vor.u32 %v3139_v61, %v3135_v45  ;;  %v3329_v12 = vsel %vm2903_vm2, %v3327_v62, %v3328_v41 }
 0x137   : > { %v1877_v9 = vcombine.low %v1869_v53, %v1876_v63  ;;  %v1893_v10 = vrot.slane %v1885_v1, %v6688_v55  ;;  %v1199_v11 = vrot.slane %v1185_v3, %v6688_v55  ;;  %v6888_v31 = vor.u32 %v2652_v24, %v2648_v37 }
 0x138   : > { %v3154_v13 = vshll.u32 %v2325_v5, 16  ;;  %v1200_v15 = vcombine.high %v1192_v6, %v1192_v6  ;;  %v1886_v16 = vcombine.low %v1184_v2, %v1192_v6  ;;  %v3145_v17 = vsel %vm2646_vm3, %v3140_v8, %v3144_v52  ;;  %v693_v18 = vpop.f32.mrf.mxu0 }
 0x139   : > { %v6881_v20 = vpack.c.bf16 %v1877_v9, %v1860_v4  ;;  %3256 = vrot.lane.b32.xlu1 %v3145_v17, %s6367_s24  ;;  %v1201_v21 = vcombine.high %v1199_v11, %v1199_v11  ;;  %v1202_v22 = vcombine.high %v693_v18, %v693_v18  ;;  %v1209_v23 = vrot.slane %v693_v18, %v6688_v55 }
 0x13a   : > { %v1900_v26 = vrot.slane %v1886_v16, %v6688_v55  ;;  %v1902_v27 = vcombine.low %v1200_v15, %v1199_v11  ;;  %v6047_v29 = vpop.f32.mrf.mxu0  ;;  %v3156_v30 = vrot.slane %v3154_v13, 1  ;;  %v3331_v35 = vrot.slane %v2325_v5, 1 }
 0x13b   : > { %v1216_v32 = vrot.slane %v1202_v22, %v6688_v55  ;;  %v1217_v33 = vcombine.high %v1209_v23, %v1209_v23  ;;  %v1903_v34 = vcombine.low %v1201_v21, %v1209_v23  ;;  %v3147_v41 = vshrl.u32 %v6881_v20, 16 }
 0x13c   : > { %v1910_v38 = vrot.slane %v1902_v27, %v6688_v55  ;;  %v698_v40 = vpop.f32.mrf.mxu0  ;;  %v3149_v42 = vshll.u32 %v6881_v20, 16  ;;  %v3330_v43 = vrot.slane %v6881_v20, 1  ;;  %v1901_v47 = vcombine.low %v1893_v10, %v1900_v26 }
 0x13d   : > { %v1218_v44 = vcombine.high %v1216_v32, %v1216_v32  ;;  %v1917_v45 = vrot.slane %v1903_v34, %v6688_v55  ;;  %v1925_v37 = vrot.slane %v1217_v33, %v6688_v55  ;;  %3368 = vrot.lane.b32.xlu1 %v3329_v12, %s6366_s21  ;;  %v1219_v24 = vcombine.high %v698_v40, %v698_v40 }
 0x13e   : > { %v1226_v48 = vrot.slane %v698_v40, %v6688_v55  ;;  %v6050_v50 = vpop.f32.mrf.mxu0  ;;  %v3151_v51 = vrot.slane %v3149_v42, 1  ;;  %v2655_v52 = vshll.u32 %v6817_v60, 16  ;;  %v3332_v2 = vsel %vm2903_vm2, %v3330_v43, %v3331_v35 }
 0x13f   : > { %v1918_v53 = vcombine.low %v1910_v38, %v1917_v45  ;;  %v1926_v58 = vcombine.low %v1216_v32, %v1218_v44  ;;  %v2327_v59 = vpack.c.bf16 %v1925_v37, %v1925_v37  ;;  %v1233_v61 = vrot.slane %v1219_v24, %v6688_v55 }
 0x140   : > { %v1234_v62 = vcombine.high %v1226_v48, %v1226_v48  ;;  %v703_v63 = vpop.f32.mrf.mxu0  ;;  %v3152_v1 = vor.u32 %v3151_v51, %v3147_v41  ;;  %v6904_v3 = vsel %vm3492_vm4, %v6745_v46, 0  ;;  %v2657_v7 = vrot.slane %v2655_v52, 1 }
 0x141   : > { %v6906_v4 = vpack.c.bf16 %v1918_v53, %v1901_v47  ;;  %v1235_v5 = vcombine.high %v1233_v61, %v1233_v61  ;;  %v1236_v6 = vcombine.high %v703_v63, %v703_v63  ;;  %6205 = vmatpush3.bf16.msra.mxu0 %v6904_v3  ;;  %v1243_v9 = vrot.slane %v703_v63, %v6688_v55 }
 0x142   : > { %v1927_v8 = vcombine.low %v1226_v48, %v1234_v62  ;;  %v3157_v10 = vsel %vm2646_vm3, %v3152_v1, %v3156_v30  ;;  %v6053_v11 = vpop.f32.mrf.mxu0  ;;  %v3166_v12 = vshll.u32 %v2327_v59, 16  ;;  %v1934_v13 = vrot.slane %v1926_v58, %v6688_v55  ;;  %v6346_v48 = vld [vmem:[%s8495_s3] sm:$0x3f]  }
 0x143   : > { %v1943_v15 = vcombine.low %v1233_v61, %v1235_v5  ;;  %v1250_v46 = vrot.slane %v1236_v6, %v6688_v55  ;;  %3258 = vrot.lane.b32.xlu0 %v3157_v10, %s6367_s24  ;;  %v3161_v16 = vshll.u32 %v6906_v4, 16  ;;  %v1251_v18 = vcombine.high %v1243_v9, %v1243_v9  ;;  %6309 = vmatprep.subr.msk.bf16.mxu1 %vm3492_vm4, %v6346_v48 }
 0x144   : > { %v1941_v17 = vrot.slane %v1927_v8, %v6688_v55  ;;  %v708_v21 = vpop.f32.mrf.mxu0  ;;  %v3159_v22 = vshrl.u32 %v6906_v4, 16  ;;  %v3168_v23 = vrot.slane %v3166_v12, 1  ;;  %v3333_v30 = vrot.slane %v6906_v4, 1 }
 0x145   : > { %v1966_v26 = vrot.slane %v1250_v46, %v6688_v55  ;;  %v1252_v27 = vcombine.high %v1250_v46, %v1250_v46  ;;  %v1253_v29 = vcombine.high %v708_v21, %v708_v21  ;;  %v1951_v32 = vrot.slane %v1943_v15, %v6688_v55 }
 0x146   : > { %v1944_v33 = vcombine.low %v1243_v9, %v1251_v18  ;;  %v1260_v34 = vrot.slane %v708_v21, %v6688_v55  ;;  %v6056_v35 = vpop.f32.mrf.mxu0  ;;  %v3163_v38 = vrot.slane %v3161_v16, 1  ;;  %v1942_v40 = vcombine.low %v1934_v13, %v1941_v17 }
 0x147   : > { %v6921_v41 = vpack.c.bf16 %v1966_v26, %v1966_v26  ;;  %v1267_v42 = vrot.slane %v1253_v29, %v6688_v55  ;;  %3370 = vrot.lane.b32.xlu0 %v3332_v2, %s6366_s21  ;;  %v3334_v43 = vrot.slane %v2327_v59, 1  ;;  %v6932_v53 = vsel %vm2646_vm3, %v6888_v31, %v2657_v7 }
 0x148   : > { %v1958_v44 = vrot.slane %v1944_v33, %v6688_v55  ;;  %v1268_v45 = vcombine.high %v1260_v34, %v1260_v34  ;;  %v1967_v37 = vcombine.low %v1252_v27, %v1260_v34  ;;  %v713_v24 = vpop.f32.mrf.mxu0  ;;  %v3164_v47 = vor.u32 %v3163_v38, %v3159_v22 }
 0x149   : > { %v1269_v50 = vcombine.high %v1267_v42, %v1267_v42  ;;  %v1270_v51 = vcombine.high %v713_v24, %v713_v24  ;;  %v1277_v52 = vrot.slane %v713_v24, %v6688_v55  ;;  %v3335_v63 = vsel %vm2903_vm2, %v3333_v30, %v3334_v43 }
 0x14a   : > { %v1959_v58 = vcombine.low %v1951_v32, %v1958_v44  ;;  %v1968_v59 = vcombine.low %v1268_v45, %v1267_v42  ;;  %v3169_v61 = vsel %vm2646_vm3, %v3164_v47, %v3168_v23  ;;  %v6059_v62 = vpop.f32.mrf.mxu0  ;;  %v1975_v1 = vrot.slane %v1967_v37, %v6688_v55 }
 0x14b   : > { %v1284_v2 = vrot.slane %v1270_v51, %v6688_v55  ;;  %v1285_v5 = vcombine.high %v1277_v52, %v1277_v52  ;;  %v1984_v6 = vcombine.low %v1269_v50, %v1277_v52  ;;  %3260 = vrot.lane.b32.xlu1 %v3169_v61, %s6367_s24  ;;  %v3178_v9 = vshll.u32 %v6921_v41, 16 }
 0x14c   : > { %v6940_v8 = vpack.c.bf16 %v1959_v58, %v1942_v40  ;;  %v1982_v31 = vrot.slane %v1968_v59, %v6688_v55  ;;  %v718_v7 = vpop.f32.mrf.mxu0  ;;  %v3337_v10 = vrot.slane %v6921_v41, 1  ;;  %v2904_v15 = vrot.slane %v6811_v54, 1 }
 0x14d   : > { %v1286_v11 = vcombine.high %v1284_v2, %v1284_v2  ;;  %v1985_v12 = vcombine.low %v1285_v5, %v1284_v2  ;;  %v1287_v13 = vcombine.high %v718_v7, %v718_v7  ;;  %v1992_v16 = vrot.slane %v1984_v6, %v6688_v55 }
 0x14e   : > { %v1983_v46 = vcombine.low %v1975_v1, %v1982_v31  ;;  %v1294_v17 = vrot.slane %v718_v7, %v6688_v55  ;;  %v6062_v18 = vpop.f32.mrf.mxu0  ;;  %v3173_v21 = vshll.u32 %v6940_v8, 16  ;;  %v3171_v27 = vshrl.u32 %v6940_v8, 16 }
 0x14f   : > { %v1999_v22 = vrot.slane %v1985_v12, %v6688_v55  ;;  %v2007_v23 = vrot.slane %v1286_v11, %v6688_v55  ;;  %v1301_v26 = vrot.slane %v1287_v13, %v6688_v55  ;;  %3372 = vrot.lane.b32.xlu1 %v3335_v63, %s6366_s21  ;;  %v3180_v33 = vrot.slane %v3178_v9, 1 }
 0x150   : > { %v1302_v29 = vcombine.high %v1294_v17, %v1294_v17  ;;  %v723_v30 = vpop.f32.mrf.mxu0  ;;  %v3175_v32 = vrot.slane %v3173_v21, 1  ;;  %v3336_v34 = vrot.slane %v6940_v8, 1  ;;  %v2905_v37 = vrot.slane %v6817_v60, 1 }
 0x151   : > { %v2000_v35 = vcombine.low %v1992_v16, %v1999_v22  ;;  %v2331_v38 = vpack.c.bf16 %v2007_v23, %v2007_v23  ;;  %v1303_v40 = vcombine.high %v1301_v26, %v1301_v26  ;;  %v1304_v41 = vcombine.high %v723_v30, %v723_v30 }
 0x152   : > { %v2008_v42 = vcombine.low %v1294_v17, %v1302_v29  ;;  %v1311_v43 = vrot.slane %v723_v30, %v6688_v55  ;;  %v6065_v44 = vpop.f32.mrf.mxu0  ;;  %v3176_v45 = vor.u32 %v3175_v32, %v3171_v27  ;;  %v3338_v61 = vsel %vm2903_vm2, %v3336_v34, %v3337_v10  ;;  %v6349_v34 = vld [vmem:[%s8496_s4 + $0x10] sm:$0x3f]  }
 0x153   : > { %v6957_v24 = vpack.c.bf16 %v2000_v35, %v1983_v46  ;;  %v2009_v47 = vcombine.low %v1301_v26, %v1303_v40  ;;  %v1318_v48 = vrot.slane %v1304_v41, %v6688_v55  ;;  %v3190_v50 = vshll.u32 %v2331_v38, 16  ;;  %6314 = vmatprep.subr.msk.bf16.mxu0 %vm3492_vm4, %v6349_v34 }
 0x154   : > { %v2016_v51 = vrot.slane %v2008_v42, %v6688_v55  ;;  %v1319_v52 = vcombine.high %v1311_v43, %v1311_v43  ;;  %v3181_v58 = vsel %vm2646_vm3, %v3176_v45, %v3180_v33  ;;  %v728_v59 = vpop.f32.mrf.mxu0  ;;  %v3340_v1 = vrot.slane %v2331_v38, 1 }
 0x155   : > { %v1320_v62 = vcombine.high %v1318_v48, %v1318_v48  ;;  %3262 = vrot.lane.b32.xlu0 %v3181_v58, %s6367_s24  ;;  %v1321_v63 = vcombine.high %v728_v59, %v728_v59  ;;  %v1328_v60 = vrot.slane %v728_v59, %v6688_v55  ;;  %v2023_v2 = vrot.slane %v2009_v47, %v6688_v55 }
 0x156   : > { %v2025_v5 = vcombine.low %v1311_v43, %v1319_v52  ;;  %v6068_v6 = vpop.f32.mrf.mxu0  ;;  %v3183_v31 = vshrl.u32 %v6957_v24, 16  ;;  %v3185_v7 = vshll.u32 %v6957_v24, 16  ;;  %v3192_v10 = vrot.slane %v3190_v50, 1 }
 0x157   : > { %v2026_v9 = vcombine.low %v1318_v48, %v1320_v62  ;;  %v1335_v11 = vrot.slane %v1321_v63, %v6688_v55  ;;  %v1336_v12 = vcombine.high %v1328_v60, %v1328_v60  ;;  %v2048_v46 = vrot.slane %v1328_v60, %v6688_v55  ;;  %v6994_v60 = vld [vmem:[%s6438_s14 + $0x8] sm:$0xff]  }
 0x158   : > { %v2033_v13 = vrot.slane %v2025_v5, %v6688_v55  ;;  %v733_v16 = vpop.f32.mrf.mxu0  ;;  %v3187_v17 = vrot.slane %v3185_v7, 1  ;;  %v3339_v18 = vrot.slane %v6957_v24, 1  ;;  %v2024_v27 = vcombine.low %v2016_v51, %v2023_v2 }
 0x159   : > { %v2040_v21 = vrot.slane %v2026_v9, %v6688_v55  ;;  %v2049_v22 = vcombine.low %v1336_v12, %v1335_v11  ;;  %3374 = vrot.lane.b32.xlu0 %v3338_v61, %s6366_s21  ;;  %v1337_v23 = vcombine.high %v1335_v11, %v1335_v11  ;;  %v1338_v26 = vcombine.high %v733_v16, %v733_v16 }
 0x15a   : > { %v2333_v29 = vpack.c.bf16 %v2048_v46, %v2048_v46  ;;  %v1345_v30 = vrot.slane %v733_v16, %v6688_v55  ;;  %v6071_v32 = vpop.f32.mrf.mxu0  ;;  %v3188_v33 = vor.u32 %v3187_v17, %v3183_v31  ;;  %v3341_v41 = vsel %vm2903_vm2, %v3339_v18, %v3340_v1 }
 0x15b   : > { %v2041_v35 = vcombine.low %v2033_v13, %v2040_v21  ;;  %v2057_v38 = vrot.slane %v2049_v22, %v6688_v55  ;;  %v1352_v40 = vrot.slane %v1338_v26, %v6688_v55  ;;  %v6991_v63 = vsel %vm2903_vm2, %v2904_v15, %v2905_v37 }
 0x15c   : > { %v3202_v42 = vshll.u32 %v2333_v29, 16  ;;  %v1353_v43 = vcombine.high %v1345_v30, %v1345_v30  ;;  %v2050_v44 = vcombine.low %v1337_v23, %v1345_v30  ;;  %v3193_v45 = vsel %vm2646_vm3, %v3188_v33, %v3192_v10  ;;  %v738_v47 = vpop.f32.mrf.mxu0 }
 0x15d   : > { %v6983_v48 = vpack.c.bf16 %v2041_v35, %v2024_v27  ;;  %3264 = vrot.lane.b32.xlu1 %v3193_v45, %s6367_s24  ;;  %v1354_v50 = vcombine.high %v1352_v40, %v1352_v40  ;;  %v1355_v51 = vcombine.high %v738_v47, %v738_v47  ;;  %v1362_v52 = vrot.slane %v738_v47, %v6688_v55 }
 0x15e   : > { %v2064_v58 = vrot.slane %v2050_v44, %v6688_v55  ;;  %v2066_v59 = vcombine.low %v1353_v43, %v1352_v40  ;;  %v6074_v61 = vpop.f32.mrf.mxu0  ;;  %v3204_v62 = vrot.slane %v3202_v42, 1  ;;  %v3343_v6 = vrot.slane %v2333_v29, 1 }
 0x15f   : > { %v1369_v1 = vrot.slane %v1355_v51, %v6688_v55  ;;  %v1370_v2 = vcombine.high %v1362_v52, %v1362_v52  ;;  %v2067_v5 = vcombine.low %v1354_v50, %v1362_v52  ;;  %v3195_v9 = vshrl.u32 %v6983_v48, 16 }
 0x160   : > { %v2074_v31 = vrot.slane %v2066_v59, %v6688_v55  ;;  %v743_v7 = vpop.f32.mrf.mxu0  ;;  %v3197_v11 = vshll.u32 %v6983_v48, 16  ;;  %v3342_v12 = vrot.slane %v6983_v48, 1  ;;  %v2065_v46 = vcombine.low %v2057_v38, %v2064_v58 }
 0x161   : > { %v1371_v10 = vcombine.high %v1369_v1, %v1369_v1  ;;  %v2081_v15 = vrot.slane %v2067_v5, %v6688_v55  ;;  %v2089_v37 = vrot.slane %v1370_v2, %v6688_v55  ;;  %3376 = vrot.lane.b32.xlu1 %v3341_v41, %s6366_s21  ;;  %v1372_v13 = vcombine.high %v743_v7, %v743_v7 }
 0x162   : > { %v1379_v16 = vrot.slane %v743_v7, %v6688_v55  ;;  %v6077_v17 = vpop.f32.mrf.mxu0  ;;  %v3199_v18 = vrot.slane %v3197_v11, 1  ;;  %v2471_v21 = vshrl.u32 %v6994_v60, 16  ;;  %v3344_v33 = vsel %vm2903_vm2, %v3342_v12, %v3343_v6 }
 0x163   : > { %v2082_v22 = vcombine.low %v2074_v31, %v2081_v15  ;;  %v2090_v23 = vcombine.low %v1369_v1, %v1371_v10  ;;  %v2335_v26 = vpack.c.bf16 %v2089_v37, %v2089_v37  ;;  %v1386_v27 = vrot.slane %v1372_v13, %v6688_v55 }
 0x164   : > { %v1387_v29 = vcombine.high %v1379_v16, %v1379_v16  ;;  %v748_v30 = vpop.f32.mrf.mxu0  ;;  %v3200_v32 = vor.u32 %v3199_v18, %v3195_v9  ;;  %v7008_v34 = vrot.slane %v2471_v21, 7  ;;  %v2474_v41 = vshll.u32 %v6994_v60, 16 }
 0x165   : > { %v7010_v35 = vpack.c.bf16 %v2082_v22, %v2065_v46  ;;  %v1388_v38 = vcombine.high %v1386_v27, %v1386_v27  ;;  %v1389_v40 = vcombine.high %v748_v30, %v748_v30  ;;  %v1396_v43 = vrot.slane %v748_v30, %v6688_v55 }
 0x166   : > { %v2091_v42 = vcombine.low %v1379_v16, %v1387_v29  ;;  %v3205_v44 = vsel %vm2646_vm3, %v3200_v32, %v3204_v62  ;;  %v6080_v45 = vpop.f32.mrf.mxu0  ;;  %v3214_v47 = vshll.u32 %v2335_v26, 16  ;;  %v2098_v50 = vrot.slane %v2090_v23, %v6688_v55 }
 0x167   : > { %v2107_v51 = vcombine.low %v1386_v27, %v1388_v38  ;;  %v1403_v52 = vrot.slane %v1389_v40, %v6688_v55  ;;  %3266 = vrot.lane.b32.xlu0 %v3205_v44, %s6367_s24  ;;  %v3209_v58 = vshll.u32 %v7010_v35, 16  ;;  %v1404_v61 = vcombine.high %v1396_v43, %v1396_v43 }
 0x168   : > { %v2105_v59 = vrot.slane %v2091_v42, %v6688_v55  ;;  %v753_v60 = vpop.f32.mrf.mxu0  ;;  %v3207_v1 = vshrl.u32 %v7010_v35, 16  ;;  %v3216_v2 = vrot.slane %v3214_v47, 1  ;;  %v3345_v31 = vrot.slane %v7010_v35, 1 }
 0x169   : > { %v2130_v62 = vrot.slane %v1403_v52, %v6688_v55  ;;  %v1405_v5 = vcombine.high %v1403_v52, %v1403_v52  ;;  %v1406_v6 = vcombine.high %v753_v60, %v753_v60  ;;  %v2115_v7 = vrot.slane %v2107_v51, %v6688_v55 }
 0x16a   : > { %v2108_v9 = vcombine.low %v1396_v43, %v1404_v61  ;;  %v1413_v11 = vrot.slane %v753_v60, %v6688_v55  ;;  %v6083_v12 = vpop.f32.mrf.mxu0  ;;  %v3211_v10 = vrot.slane %v3209_v58, 1  ;;  %v2106_v15 = vcombine.low %v2098_v50, %v2105_v59  ;;  %v3355_v43 = vpop.permute.xlu1 %3354 }
 0x16b   : > { %v2337_v37 = vpack.c.bf16 %v2130_v62, %v2130_v62  ;;  %v1420_v13 = vrot.slane %v1406_v6, %v6688_v55  ;;  %3378 = vrot.lane.b32.xlu0 %v3344_v33, %s6366_s21  ;;  %v3346_v46 = vrot.slane %v2335_v26, 1  ;;  %v2476_v32 = vor.u32 %v2474_v41, %v7008_v34 }
 0x16c   : > { %v2122_v16 = vrot.slane %v2108_v9, %v6688_v55  ;;  %v1421_v17 = vcombine.high %v1413_v11, %v1413_v11  ;;  %v2131_v18 = vcombine.low %v1405_v5, %v1413_v11  ;;  %v758_v21 = vpop.f32.mrf.mxu0  ;;  %v3212_v22 = vor.u32 %v3211_v10, %v3207_v1 }
 0x16d   : > { %v3243_v23 = vpop.permute.xlu0 %3242  ;;  %v1422_v27 = vcombine.high %v1420_v13, %v1420_v13  ;;  %v1423_v29 = vcombine.high %v758_v21, %v758_v21  ;;  %v1430_v30 = vrot.slane %v758_v21, %v6688_v55  ;;  %v3347_v26 = vsel %vm2903_vm2, %v3345_v31, %v3346_v46  ;;  %v6333_v31 = vld [vmem:[%s6438_s14] sm:$0xff]  }
 0x16e   : > { %v2123_v38 = vcombine.low %v2115_v7, %v2122_v16  ;;  %v2132_v40 = vcombine.low %v1421_v17, %v1420_v13  ;;  %v3387_v42 = vsel %vm2984_vm8, %v6703_v36, %v3243_v23  ;;  %v6086_v33 = vpop.f32.mrf.mxu0  ;;  %v3217_v50 = vsel %vm2646_vm3, %v3212_v22, %v3216_v2 }
 0x16f   : > { %v1437_v44 = vrot.slane %v1423_v29, %v6688_v55  ;;  %v1438_v45 = vcombine.high %v1430_v30, %v1430_v30  ;;  %v2148_v47 = vcombine.low %v1422_v27, %v1430_v30  ;;  %v2139_v41 = vrot.slane %v2131_v18, %v6688_v55  ;;  %3268 = vrot.lane.b32.xlu1 %v3217_v50, %s6367_s24 }
 0x170   : > { %v7035_v51 = vpack.c.bf16 %v2123_v38, %v2106_v15  ;;  %v2146_v52 = vrot.slane %v2132_v40, %v6688_v55  ;;  %v3419_v36 = vsel %vm3017_vm9, %v3387_v42, %v3355_v43  ;;  %v7041_v58 = vpop.f32.mrf.mxu0  ;;  %v3226_v1 = vshll.u32 %v2337_v37, 16  ;;  %v6334_v43 = vld [vmem:[%s6438_s14 + $0x18] sm:$0xff]  }
 0x171   : > { %v1439_v59 = vcombine.high %v1437_v44, %v1437_v44  ;;  %v2149_v61 = vcombine.low %v1438_v45, %v1437_v44  ;;  %v2156_v60 = vrot.slane %v2148_v47, %v6688_v55  ;;  %6104 = vmatprep.mubr.msk.bf16.mxu1 %vm3459_vm10, %v3419_v36  ;;  %v3349_v6 = vrot.slane %v2337_v37, 1  ;;  %v3357_v40 = vpop.permute.xlu1 %3356 }
 0x172   : > { %v2147_v2 = vcombine.low %v2139_v41, %v2146_v52  ;;  %v3219_v62 = vshrl.u32 %v7035_v51, 16  ;;  %v3221_v5 = vshll.u32 %v7035_v51, 16  ;;  %v6089_v7 = vpop.f32.mrf.mxu0  ;;  %v3348_v12 = vrot.slane %v7035_v51, 1  ;;  %v6335_v41 = vld [vmem:[%s6438_s14 + $0x10] sm:$0xff]  }
 0x173   : > { %v2163_v9 = vrot.slane %v2149_v61, %v6688_v55  ;;  %v2171_v11 = vrot.slane %v1439_v59, %v6688_v55  ;;  %v7053_v10 = vsel %vm6800_vm7, 0, %v2476_v32  ;;  %3380 = vrot.lane.b32.xlu1 %v3347_v26, %s6366_s21  ;;  %v2631_v13 = vsel %vm6800_vm7, %v7008_v34, 0 }
 0x174   : > { %v3223_v15 = vrot.slane %v3221_v5, 1  ;;  %v2672_v37 = vshrl.u32 %v7053_v10, 16  ;;  %v2674_v46 = vshll.u32 %v7053_v10, 16  ;;  %v7061_v16 = vpop.f32.mrf.mxu0  ;;  %v3228_v21 = vrot.slane %v3226_v1, 1 }
 0x175   : > { %v2164_v17 = vcombine.low %v2156_v60, %v2163_v9  ;;  %v2339_v18 = vpack.c.bf16 %v2171_v11, %v2171_v11  ;;  %v2679_v22 = vshll.u32 %v2631_v13, 16  ;;  %v3350_v29 = vsel %vm2903_vm2, %v3348_v12, %v3349_v6  ;;  %v7086_v11 = vld [vmem:[%s6438_s14 + $0x28] sm:$0xff]  }
 0x176   : > { %v3245_v23 = vpop.permute.xlu0 %3244  ;;  %v3224_v27 = vor.u32 %v3223_v15, %v3219_v62  ;;  %v2676_v30 = vrot.slane %v2674_v46, 1  ;;  %v2464_v32 = vshrl.u32 %v6333_v31, 16  ;;  %v6092_v38 = vpop.f32.mrf.mxu0  ;;  %v2467_v26 = vshll.u32 %v6333_v31, 16 }
 0x177   : > { %v7064_v34 = vpack.c.bf16 %v2164_v17, %v2147_v2  ;;  %v3389_v42 = vsel %vm2984_vm8, %v6725_v14, %v3245_v23  ;;  %v3238_v33 = vshll.u32 %v2339_v18, 16  ;;  %v2681_v50 = vrot.slane %v2679_v22, 1 }
 0x178   : > { %v3421_v44 = vsel %vm3017_vm9, %v3389_v42, %v3357_v40  ;;  %v3229_v45 = vsel %vm2646_vm3, %v3224_v27, %v3228_v21  ;;  %v2677_v47 = vor.u32 %v2676_v30, %v2672_v37  ;;  %v7072_v52 = vpop.f32.mrf.mxu0  ;;  %v3352_v61 = vrot.slane %v2339_v18, 1 }
 0x179   : > { %6105 = vmatmul.mubr.msk.bf16.vlgmr.msra.gmra.mxu1 %vm3459_vm10, %v3421_v44  ;;  %6206 = vmatprep.mubr.msk.bf16.mxu0 %vm3459_vm10, %v3421_v44  ;;  %v3231_v36 = vshrl.u32 %v7064_v34, 16  ;;  %v3233_v14 = vshll.u32 %v7064_v34, 16  ;;  %v3351_v59 = vrot.slane %v7064_v34, 1  ;;  %v3240_v60 = vrot.slane %v3238_v33, 1 }
 0x17a   : > { %3270 = vrot.lane.b32.xlu0 %v3229_v45, %s6367_s24  ;;  %v2466_v1 = vrot.slane %v2464_v32, 7  ;;  %v2910_v2 = vrot.slane %v7053_v10, 1  ;;  %v2911_v62 = vrot.slane %v2631_v13, 1  ;;  %v6095_v5 = vpop.f32.mrf.mxu0  ;;  %v7083_v7 = vsel %vm2646_vm3, %v2677_v47, %v2681_v50 }
 0x17b   : > { %v3235_v6 = vrot.slane %v3233_v14, 1  ;;  %v3353_v31 = vsel %vm2903_vm2, %v3351_v59, %v3352_v61  ;;  %v2485_v9 = vshrl.u32 %v6334_v43, 16  ;;  %v2488_v37 = vshll.u32 %v6334_v43, 16 }
 0x17c   : > { %v2469_v12 = vor.u32 %v2467_v26, %v2466_v1  ;;  %v2630_v15 = vsel %vm6800_vm7, %v2466_v1, 0  ;;  %v2478_v46 = vshrl.u32 %v6335_v41, 16  ;;  %v7090_v17 = vpop.f32.mrf.mxu0  ;;  %v7093_v21 = vsel %vm2903_vm2, %v2910_v2, %v2911_v62 }
 0x17d   : > { %v3236_v18 = vor.u32 %v3235_v6, %v3231_v36  ;;  %v2667_v13 = vshll.u32 %v2630_v15, 16  ;;  %v2487_v22 = vrot.slane %v2485_v9, 7  ;;  %v2908_v27 = vrot.slane %v2630_v15, 1 }
 0x17e   : > { %3382 = vrot.lane.b32.xlu0 %v3350_v29, %s6366_s21  ;;  %v7098_v23 = vsel %vm6800_vm7, 0, %v2469_v12  ;;  %v2480_v30 = vrot.slane %v2478_v46, 7  ;;  %v2481_v32 = vshll.u32 %v6335_v41, 16  ;;  %v6098_v38 = vpop.f32.mrf.mxu0  ;;  %v2499_v43 = vshrl.u32 %v7086_v11, 16 }
 0x17f   : > { %v3247_v40 = vpop.permute.xlu0 %3246  ;;  %v3241_v42 = vsel %vm2646_vm3, %v3236_v18, %v3240_v60  ;;  %v2660_v33 = vshrl.u32 %v7098_v23, 16  ;;  %v2662_v26 = vshll.u32 %v7098_v23, 16  ;;  %v2669_v29 = vrot.slane %v2667_v13, 1 }
 0x180   : > { %3272 = vrot.lane.b32.xlu1 %v3241_v42, %s6367_s24  ;;  %v2907_v44 = vrot.slane %v7098_v23, 1  ;;  %v2490_v45 = vor.u32 %v2488_v37, %v2487_v22  ;;  %v2633_v47 = vsel %vm6800_vm7, %v2487_v22, 0  ;;  %v7108_v50 = vpop.f32.mrf.mxu0  ;;  %v2483_v14 = vor.u32 %v2481_v32, %v2480_v30  ;;  %v6337_v37 = vld [vmem:[%s6438_s14 + $0x20] sm:$0xff]   ;;  %v6338_v42 = vld [vmem:[%s6438_s14 + $0x38] sm:$0xff]  }
 0x181   : > { %v2664_v41 = vrot.slane %v2662_v26, 1  ;;  %v2703_v36 = vshll.u32 %v2633_v47, 16  ;;  %v2632_v59 = vsel %vm6800_vm7, %v2480_v30, 0  ;;  %v3391_v61 = vsel %vm2984_vm8, %v6750_v56, %v3247_v40 }
 0x182   : > { %2839 = vrot.lane.b32.xlu0 %v6932_v53, %s6367_s24  ;;  %v2909_v60 = vsel %vm2903_vm2, %v2907_v44, %v2908_v27  ;;  %v7119_v1 = vsel %vm6800_vm7, 0, %v2490_v45  ;;  %v2691_v2 = vshll.u32 %v2632_v59, 16  ;;  %v6101_v62 = vpop.f32.mrf.mxu0  ;;  %v2917_v15 = vrot.slane %v2633_v47, 1  ;;  %v6339_v47 = vld [vmem:[%s6438_s14 + $0x30] sm:$0xff]  }
 0x183   : > { %v3359_v5 = vpop.permute.xlu0 %3358  ;;  %v2665_v6 = vor.u32 %v2664_v41, %v2660_v33  ;;  %v2696_v9 = vshrl.u32 %v7119_v1, 16  ;;  %v2698_v12 = vshll.u32 %v7119_v1, 16  ;;  %v2705_v53 = vrot.slane %v2703_v36, 1 }
 0x184   : > { %v7125_v56 = vsel %vm3017_vm9, %v3391_v61, %v3359_v5  ;;  %3384 = vrot.lane.b32.xlu1 %v3353_v31, %s6366_s21  ;;  %v7130_v46 = vsel %vm6800_vm7, 0, %v2483_v14  ;;  %v2916_v18 = vrot.slane %v7119_v1, 1  ;;  %v2693_v30 = vrot.slane %v2691_v2, 1 }
 0x185   : > { %6108 = vmatprep.mubr.msk.bf16.mxu1 %vm3459_vm10, %v7125_v56  ;;  %6207 = vmatmul.mubr.msk.bf16.vlgmr.msra.gmra.mxu0 %vm3459_vm10, %v7125_v56  ;;  %v2670_v13 = vsel %vm2646_vm3, %v2665_v6, %v2669_v29  ;;  %v2700_v22 = vrot.slane %v2698_v12, 1  ;;  %v2684_v27 = vshrl.u32 %v7130_v46, 16  ;;  %v2686_v31 = vshll.u32 %v7130_v46, 16 }
 0x186   : > { %2952 = vrot.lane.b32.xlu0 %v6991_v63, %s6366_s21  ;;  %v2913_v32 = vrot.slane %v7130_v46, 1  ;;  %v2914_v38 = vrot.slane %v2632_v59, 1  ;;  %v2501_v40 = vrot.slane %v2499_v43, 7  ;;  %v2502_v45 = vshll.u32 %v7086_v11, 16 }
 0x187   : > { %v3249_v33 = vpop.permute.xlu1 %3248  ;;  %v2701_v26 = vor.u32 %v2700_v22, %v2696_v9  ;;  %v2688_v44 = vrot.slane %v2686_v31, 1  ;;  %v2492_v29 = vshrl.u32 %v6337_v37, 16  ;;  %v7150_v63 = vsel %vm2903_vm2, %v2916_v18, %v2917_v15 }
 0x188   : > { %v3393_v41 = vsel %vm2984_vm8, %v6766_v28, %v3249_v33  ;;  %2841 = vrot.lane.b32.xlu1 %v2670_v13, %s6367_s24  ;;  %v2635_v36 = vsel %vm6800_vm7, %v2501_v40, 0  ;;  %v2495_v43 = vshll.u32 %v6337_v37, 16  ;;  %v2915_v59 = vsel %vm2903_vm2, %v2913_v32, %v2914_v38 }
 0x189   : > { %v2689_v14 = vor.u32 %v2688_v44, %v2684_v27  ;;  %v2504_v61 = vor.u32 %v2502_v45, %v2501_v40  ;;  %v2727_v2 = vshll.u32 %v2635_v36, 16  ;;  %v2706_v11 = vsel %vm2646_vm3, %v2701_v26, %v2705_v53 }
 0x18a   : > { %2843 = vrot.lane.b32.xlu0 %v7083_v7, %s6367_s24  ;;  %v2494_v28 = vrot.slane %v2492_v29, 7  ;;  %v2923_v62 = vrot.slane %v2635_v36, 1  ;;  %v2513_v5 = vshrl.u32 %v6338_v42, 16  ;;  %v2516_v15 = vshll.u32 %v6338_v42, 16 }
 0x18b   : > { %v3361_v6 = vpop.permute.xlu1 %3360  ;;  %v2694_v9 = vsel %vm2646_vm3, %v2689_v14, %v2693_v30  ;;  %v7161_v12 = vsel %vm6800_vm7, 0, %v2504_v61  ;;  %v2506_v37 = vshrl.u32 %v6339_v47, 16  ;;  %v2729_v22 = vrot.slane %v2727_v2, 1 }
 0x18c   : > { %v7164_v18 = vsel %vm3017_vm9, %v3393_v41, %v3361_v6  ;;  %2954 = vrot.lane.b32.xlu1 %v2909_v60, %s6366_s21  ;;  %v2720_v7 = vshrl.u32 %v7161_v12, 16  ;;  %v2722_v53 = vshll.u32 %v7161_v12, 16  ;;  %v2497_v13 = vor.u32 %v2495_v43, %v2494_v28 }
 0x18d   : > { %6109 = vmatmul.mubr.msk.bf16.gmra.mxu1 %vm3459_vm10, %v7164_v18  ;;  %6210 = vmatprep.mubr.msk.bf16.mxu0 %vm3459_vm10, %v7164_v18  ;;  %v2634_v27 = vsel %vm6800_vm7, %v2494_v28, 0  ;;  %v2922_v31 = vrot.slane %v7161_v12, 1  ;;  %v2515_v30 = vrot.slane %v2513_v5, 7  ;;  %v2508_v44 = vrot.slane %v2506_v37, 7 }
 0x18e   : > { %2956 = vrot.lane.b32.xlu0 %v7093_v21, %s6366_s21  ;;  %v2724_v60 = vrot.slane %v2722_v53, 1  ;;  %v7180_v32 = vsel %vm6800_vm7, 0, %v2497_v13  ;;  %v2715_v38 = vshll.u32 %v2634_v27, 16  ;;  %v2920_v40 = vrot.slane %v2634_v27, 1  ;;  %v6340_v13 = vld [vmem:[%s6438_s14 + $0x48] sm:$0xff]  }
 0x18f   : > { %v2708_v42 = vshrl.u32 %v7180_v32, 16  ;;  %v2710_v33 = vshll.u32 %v7180_v32, 16  ;;  %v2919_v26 = vrot.slane %v7180_v32, 1  ;;  %v7187_v29 = vsel %vm2903_vm2, %v2922_v31, %v2923_v62 }
 0x190   : > { %2845 = vrot.lane.b32.xlu1 %v2694_v9, %s6367_s24  ;;  %v2725_v45 = vor.u32 %v2724_v60, %v2720_v7  ;;  %v2518_v21 = vor.u32 %v2516_v15, %v2515_v30  ;;  %v2637_v41 = vsel %vm6800_vm7, %v2515_v30, 0  ;;  %v2717_v14 = vrot.slane %v2715_v38, 1  ;;  %v6341_v38 = vld [vmem:[%s6438_s14 + $0x40] sm:$0xff]  }
 0x191   : > { %v3251_v36 = vpop.permute.xlu0 %3250  ;;  %v2712_v43 = vrot.slane %v2710_v33, 1  ;;  %v2751_v61 = vshll.u32 %v2637_v41, 16  ;;  %v2509_v2 = vshll.u32 %v6339_v47, 16  ;;  %v2921_v5 = vsel %vm2903_vm2, %v2919_v26, %v2920_v40 }
 0x192   : > { %v3395_v28 = vsel %vm2984_vm8, %v6790_v19, %v3251_v36  ;;  %2847 = vrot.lane.b32.xlu0 %v2706_v11, %s6367_s24  ;;  %v7197_v62 = vsel %vm6800_vm7, 0, %v2518_v21  ;;  %v7201_v6 = vsel %vm6800_vm7, %v2508_v44, 0  ;;  %v2730_v9 = vsel %vm2646_vm3, %v2725_v45, %v2729_v22 }
 0x193   : > { %v2713_v15 = vor.u32 %v2712_v43, %v2708_v42  ;;  %v2744_v47 = vshrl.u32 %v7197_v62, 16  ;;  %v2746_v19 = vshll.u32 %v7197_v62, 16  ;;  %v2511_v11 = vor.u32 %v2509_v2, %v2508_v44 }
 0x194   : > { %2958 = vrot.lane.b32.xlu1 %v2915_v59, %s6366_s21  ;;  %v2739_v37 = vshll.u32 %v7201_v6, 16  ;;  %v2928_v7 = vrot.slane %v7197_v62, 1  ;;  %v2929_v53 = vrot.slane %v2637_v41, 1  ;;  %v2753_v60 = vrot.slane %v2751_v61, 1 }
 0x195   : > { %v3363_v27 = vpop.permute.xlu0 %3362  ;;  %v2718_v31 = vsel %vm2646_vm3, %v2713_v15, %v2717_v14  ;;  %v2748_v30 = vrot.slane %v2746_v19, 1  ;;  %v1440_v22 = vcombine.high %v7041_v58, %v7041_v58  ;;  %v7221_v59 = vsel %vm6800_vm7, 0, %v2511_v11 }
 0x196   : > { %v7215_v40 = vsel %vm3017_vm9, %v3395_v28, %v3363_v27  ;;  %2960 = vrot.lane.b32.xlu0 %v7150_v63, %s6366_s21  ;;  %v2741_v42 = vrot.slane %v2739_v37, 1  ;;  %v2926_v33 = vrot.slane %v7201_v6, 1  ;;  %v2732_v44 = vshrl.u32 %v7221_v59, 16 }
 0x197   : > { %6112 = vmatprep.mubr.msk.bf16.mxu1 %vm3459_vm10, %v7215_v40  ;;  %6211 = vmatmul.mubr.msk.bf16.gmra.mxu0 %vm3459_vm10, %v7215_v40  ;;  %v2749_v26 = vor.u32 %v2748_v30, %v2744_v47  ;;  %v2734_v45 = vshll.u32 %v7221_v59, 16  ;;  %v7231_v63 = vsel %vm2903_vm2, %v2928_v7, %v2929_v53  ;;  %v1447_v21 = vrot.slane %v7041_v58, %v6688_v55 }
 0x198   : > { %2849 = vrot.lane.b32.xlu1 %v2718_v31, %s6367_s24  ;;  %v1454_v41 = vrot.slane %v1440_v22, %v6688_v55  ;;  %v2527_v36 = vshrl.u32 %v6340_v13, 16  ;;  %v2530_v43 = vshll.u32 %v6340_v13, 16  ;;  %v2925_v28 = vrot.slane %v7221_v59, 1 }
 0x199   : > { %v3253_v14 = vpop.permute.xlu1 %3252  ;;  %v2754_v61 = vsel %vm2646_vm3, %v2749_v26, %v2753_v60  ;;  %v2736_v2 = vrot.slane %v2734_v45, 1  ;;  %v2520_v6 = vshrl.u32 %v6341_v38, 16  ;;  %v1455_v47 = vcombine.high %v1447_v21, %v1447_v21 }
 0x19a   : > { %v3397_v15 = vsel %vm2984_vm8, %v6813_v57, %v3253_v14  ;;  %2851 = vrot.lane.b32.xlu0 %v2730_v9, %s6367_s24  ;;  %v1456_v19 = vcombine.high %v1454_v41, %v1454_v41  ;;  %v2529_v11 = vrot.slane %v2527_v36, 7  ;;  %v2523_v7 = vshll.u32 %v6341_v38, 16 }
 0x19b   : > { %v2737_v58 = vor.u32 %v2736_v2, %v2732_v44  ;;  %v2522_v37 = vrot.slane %v2520_v6, 7  ;;  %v1457_v53 = vcombine.high %v7061_v16, %v7061_v16  ;;  %v2172_v13 = vcombine.low %v1447_v21, %v1455_v47 }
 0x19c   : > { %2962 = vrot.lane.b32.xlu1 %v2921_v5, %s6366_s21  ;;  %v2173_v27 = vcombine.low %v1454_v41, %v1456_v19  ;;  %v2532_v31 = vor.u32 %v2530_v43, %v2529_v11  ;;  %v2639_v30 = vsel %vm6800_vm7, %v2529_v11, 0 }
 0x19d   : > { %v3365_v57 = vpop.permute.xlu1 %3364  ;;  %v2742_v9 = vsel %vm2646_vm3, %v2737_v58, %v2741_v42  ;;  %v2775_v60 = vshll.u32 %v2639_v30, 16  ;;  %v2525_v22 = vor.u32 %v2523_v7, %v2522_v37  ;;  %v2638_v26 = vsel %vm6800_vm7, %v2522_v37, 0  ;;  %v6342_v37 = vld [vmem:[%s6438_s14 + $0x58] sm:$0xff]  }
 0x19e   : > { %v7251_v38 = vsel %vm3017_vm9, %v3397_v15, %v3365_v57  ;;  %2964 = vrot.lane.b32.xlu0 %v7187_v29, %s6366_s21  ;;  %v2180_v5 = vrot.slane %v2172_v13, %v6688_v55  ;;  %v2187_v44 = vrot.slane %v2173_v27, %v6688_v55  ;;  %v7259_v45 = vsel %vm6800_vm7, 0, %v2532_v31 }
 0x19f   : > { %6113 = vmatmul.mubr.msk.bf16.gmra.mxu1 %vm3459_vm10, %v7251_v38  ;;  %6214 = vmatprep.mubr.msk.bf16.mxu0 %vm3459_vm10, %v7251_v38  ;;  %v2927_v42 = vsel %vm2903_vm2, %v2925_v28, %v2926_v33  ;;  %v2768_v21 = vshrl.u32 %v7259_v45, 16  ;;  %v2770_v29 = vshll.u32 %v7259_v45, 16  ;;  %v7270_v41 = vsel %vm6800_vm7, 0, %v2525_v22 }
 0x1a0   : > { %2853 = vrot.lane.b32.xlu1 %v2742_v9, %s6367_s24  ;;  %v2777_v36 = vrot.slane %v2775_v60, 1  ;;  %v2756_v43 = vshrl.u32 %v7270_v41, 16  ;;  %v2758_v14 = vshll.u32 %v7270_v41, 16  ;;  %v2763_v2 = vshll.u32 %v2638_v26, 16  ;;  %v6343_v9 = vld [vmem:[%s6438_s14 + $0x50] sm:$0xff]  }
 0x1a1   : > { %v2772_v6 = vrot.slane %v2770_v29, 1  ;;  %v1464_v33 = vrot.slane %v7061_v16, %v6688_v55  ;;  %v1471_v28 = vrot.slane %v1457_v53, %v6688_v55  ;;  %v2934_v15 = vrot.slane %v7259_v45, 1 }
 0x1a2   : > { %2855 = vrot.lane.b32.xlu0 %v2754_v61, %s6367_s24  ;;  %v2188_v47 = vcombine.low %v2180_v5, %v2187_v44  ;;  %v2760_v19 = vrot.slane %v2758_v14, 1  ;;  %v2765_v11 = vrot.slane %v2763_v2, 1  ;;  %v2935_v58 = vrot.slane %v2639_v30, 1 }
 0x1a3   : > { %v3255_v7 = vpop.permute.xlu0 %3254  ;;  %v2773_v13 = vor.u32 %v2772_v6, %v2768_v21  ;;  %v1472_v27 = vcombine.high %v1464_v33, %v1464_v33  ;;  %v1473_v31 = vcombine.high %v1471_v28, %v1471_v28  ;;  %v2931_v57 = vrot.slane %v7270_v41, 1 }
 0x1a4   : > { %v3399_v16 = vsel %vm2984_vm8, %v6843_v49, %v3255_v7  ;;  %2966 = vrot.lane.b32.xlu1 %v2927_v42, %s6366_s21  ;;  %v2761_v53 = vor.u32 %v2760_v19, %v2756_v43  ;;  %v2932_v60 = vrot.slane %v2638_v26, 1  ;;  %v1474_v61 = vcombine.high %v7072_v52, %v7072_v52 }
 0x1a5   : > { %v2778_v30 = vsel %vm2646_vm3, %v2773_v13, %v2777_v36  ;;  %v2189_v22 = vcombine.low %v1464_v33, %v1472_v27  ;;  %v2190_v5 = vcombine.low %v1471_v28, %v1473_v31  ;;  %v2936_v44 = vsel %vm2903_vm2, %v2934_v15, %v2935_v58 }
 0x1a6   : > { %2968 = vrot.lane.b32.xlu0 %v7231_v63, %s6366_s21  ;;  %v2766_v21 = vsel %vm2646_vm3, %v2761_v53, %v2765_v11  ;;  %v1481_v49 = vrot.slane %v7072_v52, %v6688_v55  ;;  %v1488_v42 = vrot.slane %v1474_v61, %v6688_v55  ;;  %v2541_v26 = vshrl.u32 %v6342_v37, 16 }
 0x1a7   : > { %v3367_v29 = vpop.permute.xlu0 %3366  ;;  %v2197_v43 = vrot.slane %v2189_v22, %v6688_v55  ;;  %v2204_v36 = vrot.slane %v2190_v5, %v6688_v55  ;;  %v2544_v14 = vshll.u32 %v6342_v37, 16  ;;  %v2534_v2 = vshrl.u32 %v6343_v9, 16 }
 0x1a8   : > { %v7299_v6 = vsel %vm3017_vm9, %v3399_v16, %v3367_v29  ;;  %2857 = vrot.lane.b32.xlu1 %v2766_v21, %s6367_s24  ;;  %v1489_v63 = vcombine.high %v1481_v49, %v1481_v49  ;;  %v2212_v33 = vrot.slane %v1481_v49, %v6688_v55  ;;  %v2543_v28 = vrot.slane %v2541_v26, 7 }
 0x1a9   : > { %6116 = vmatprep.mubr.msk.bf16.mxu1 %vm3459_vm10, %v7299_v6  ;;  %6215 = vmatmul.mubr.msk.bf16.gmra.mxu0 %vm3459_vm10, %v7299_v6  ;;  %v2205_v52 = vcombine.low %v2197_v43, %v2204_v36  ;;  %v2933_v15 = vsel %vm2903_vm2, %v2931_v57, %v2932_v60  ;;  %v2536_v19 = vrot.slane %v2534_v2, 7  ;;  %v2537_v11 = vshll.u32 %v6343_v9, 16 }
 0x1aa   : > { %2859 = vrot.lane.b32.xlu0 %v2778_v30, %s6367_s24  ;;  %v2213_v58 = vcombine.low %v1489_v63, %v1488_v42  ;;  %v2546_v37 = vor.u32 %v2544_v14, %v2543_v28  ;;  %v2641_v7 = vsel %vm6800_vm7, %v2543_v28, 0  ;;  %v1490_v13 = vcombine.high %v1488_v42, %v1488_v42 }
 0x1ab   : > { %v3257_v27 = vpop.permute.xlu1 %3256  ;;  %v7311_v31 = vpack.c.bf16 %v2205_v52, %v2188_v47  ;;  %v2799_v16 = vshll.u32 %v2641_v7, 16  ;;  %v2539_v53 = vor.u32 %v2537_v11, %v2536_v19  ;;  %v2640_v61 = vsel %vm6800_vm7, %v2536_v19, 0  ;;  %v6344_v52 = vld [vmem:[%s6438_s14 + $0x68] sm:$0xff]  }
 0x1ac   : > { %v3401_v57 = vsel %vm2984_vm8, %v6859_v25, %v3257_v27  ;;  %2970 = vrot.lane.b32.xlu1 %v2933_v15, %s6366_s21  ;;  %v2221_v9 = vrot.slane %v2213_v58, %v6688_v55  ;;  %v7319_v60 = vpack.c.bf16 %v2212_v33, %v2212_v33  ;;  %v7323_v30 = vsel %vm6800_vm7, 0, %v2546_v37  ;;  %v6345_v27 = vld [vmem:[%s6438_s14 + $0x60] sm:$0xff]  }
 0x1ad   : > { %v2792_v47 = vshrl.u32 %v7323_v30, 16  ;;  %v2794_v22 = vshll.u32 %v7323_v30, 16  ;;  %v2801_v5 = vrot.slane %v2799_v16, 1  ;;  %v7329_v21 = vsel %vm6800_vm7, 0, %v2539_v53 }
 0x1ae   : > { %2972 = vrot.lane.b32.xlu0 %v2936_v44, %s6366_s21  ;;  %v2780_v25 = vshrl.u32 %v7329_v21, 16  ;;  %v2782_v49 = vshll.u32 %v7329_v21, 16  ;;  %v2787_v42 = vshll.u32 %v2640_v61, 16  ;;  %v1491_v26 = vcombine.high %v7090_v17, %v7090_v17 }
 0x1af   : > { %v3369_v29 = vpop.permute.xlu1 %3368  ;;  %v2796_v43 = vrot.slane %v2794_v22, 1  ;;  %v1498_v36 = vrot.slane %v7090_v17, %v6688_v55  ;;  %v2940_v14 = vrot.slane %v7323_v30, 1  ;;  %v2941_v2 = vrot.slane %v2641_v7, 1 }
 0x1b0   : > { %v7340_v63 = vsel %vm3017_vm9, %v3401_v57, %v3369_v29  ;;  %v2784_v44 = vrot.slane %v2782_v49, 1  ;;  %v2789_v33 = vrot.slane %v2787_v42, 1  ;;  %v1505_v28 = vrot.slane %v1491_v26, %v6688_v55 }
 0x1b1   : > { %6117 = vmatmul.mubr.msk.bf16.gmra.mxu1 %vm3459_vm10, %v7340_v63  ;;  %6218 = vmatprep.mubr.msk.bf16.mxu0 %vm3459_vm10, %v7340_v63  ;;  %v2797_v15 = vor.u32 %v2796_v43, %v2792_v47  ;;  %v1506_v17 = vcombine.high %v1498_v36, %v1498_v36  ;;  %v2214_v19 = vcombine.low %v1490_v13, %v1498_v36  ;;  %v2937_v58 = vrot.slane %v7329_v21, 1  ;;  %v6347_v43 = vld [vmem:[%s6438_s14 + $0x78] sm:$0xff]  }
 0x1b2   : > { %v2785_v11 = vor.u32 %v2784_v44, %v2780_v25  ;;  %v2938_v37 = vrot.slane %v2640_v61, 1  ;;  %v1507_v7 = vcombine.high %v1505_v28, %v1505_v28  ;;  %v1514_v22 = vrot.slane %v7108_v50, %v6688_v55  ;;  %v7363_v50 = vld [vmem:[%s8495_s3 + $0x8] sm:$0x3f]  }
 0x1b3   : > { %v2802_v16 = vsel %vm2646_vm3, %v2797_v15, %v2801_v5  ;;  %v2228_v53 = vrot.slane %v2214_v19, %v6688_v55  ;;  %v2230_v57 = vcombine.low %v1506_v17, %v1505_v28  ;;  %v2942_v13 = vsel %vm2903_vm2, %v2940_v14, %v2941_v2  ;;  %v6352_v28 = vld [vmem:[%s8495_s3] sm:$0x3f]  }
 0x1b4   : > { %2863 = vrot.lane.b32.xlu0 %v2802_v16, %s6367_s24  ;;  %v2790_v47 = vsel %vm2646_vm3, %v2785_v11, %v2789_v33  ;;  %v2555_v25 = vshrl.u32 %v6344_v52, 16  ;;  %v2558_v49 = vshll.u32 %v6344_v52, 16  ;;  %v1515_v26 = vcombine.high %v1514_v22, %v1514_v22 }
 0x1b5   : > { %2861 = vrot.lane.b32.xlu1 %v2790_v47, %s6367_s24  ;;  %v2229_v61 = vcombine.low %v2221_v9, %v2228_v53  ;;  %v2238_v42 = vrot.slane %v2230_v57, %v6688_v55  ;;  %v3259_v5 = vpop.permute.xlu0 %3258  ;;  %v2231_v29 = vcombine.low %v1507_v7, %v1514_v22  ;;  %v2939_v36 = vsel %vm2903_vm2, %v2937_v58, %v2938_v37 }
 0x1b6   : > { %v2557_v44 = vrot.slane %v2555_v25, 7  ;;  %v2548_v14 = vshrl.u32 %v6345_v27, 16  ;;  %v2551_v2 = vshll.u32 %v6345_v27, 16  ;;  %v3891_v33 = vshll.u32 %v7319_v60, 16 }
 0x1b7   : > { %v2245_v9 = vrot.slane %v2231_v29, %v6688_v55  ;;  %v3695_v52 = vsel %vm3492_vm4, %v6352_v28, 0  ;;  %v2253_v15 = vrot.slane %v1515_v26, %v6688_v55  ;;  %v3403_v58 = vsel %vm2984_vm8, %v6881_v20, %v3259_v5 }
 0x1b8   : > { %2976 = vrot.lane.b32.xlu0 %v2942_v13, %s6366_s21  ;;  %v2560_v17 = vor.u32 %v2558_v49, %v2557_v44  ;;  %v2643_v19 = vsel %vm6800_vm7, %v2557_v44, 0  ;;  %v2550_v11 = vrot.slane %v2548_v14, 7  ;;  %6137 = vmatpush3.bf16.msra.mxu1 %v3695_v52  ;;  %v2569_v16 = vshrl.u32 %v6347_v43, 16  ;;  %v6348_v49 = vld [vmem:[%s6438_s14 + $0x70] sm:$0xff]  }
 0x1b9   : > { %2974 = vrot.lane.b32.xlu1 %v2939_v36, %s6366_s21  ;;  %v2246_v37 = vcombine.low %v2238_v42, %v2245_v9  ;;  %v3371_v7 = vpop.permute.xlu0 %3370  ;;  %v2823_v27 = vshll.u32 %v2643_v19, 16  ;;  %6310 = vmatprep.subr.msk.bf16.mxu1 %vm3492_vm4, %v7363_v50  ;;  %v2572_v25 = vshll.u32 %v6347_v43, 16  ;;  %v7399_v42 = vpack.c.bf16 %v2253_v15, %v2253_v15 }
 0x1ba   : > { %v7382_v55 = vsel %vm3017_vm9, %v3403_v58, %v3371_v7  ;;  %v7386_v53 = vsel %vm6800_vm7, 0, %v2560_v17  ;;  %v2553_v57 = vor.u32 %v2551_v2, %v2550_v11  ;;  %v2642_v20 = vsel %vm6800_vm7, %v2550_v11, 0 }
 0x1bb   : > { %v7390_v22 = vpack.c.bf16 %v2246_v37, %v2229_v61  ;;  %v2816_v47 = vshrl.u32 %v7386_v53, 16  ;;  %v2818_v13 = vshll.u32 %v7386_v53, 16  ;;  %6120 = vmatprep.mubr.msk.bf16.mxu1 %vm3459_vm10, %v7382_v55  ;;  %6219 = vmatmul.mubr.msk.bf16.gmra.mxu0 %vm3459_vm10, %v7382_v55  ;;  %v2811_v61 = vshll.u32 %v2642_v20, 16 }
 0x1bc   : > { %v7403_v5 = vsel %vm6800_vm7, 0, %v2553_v57  ;;  %v2947_v26 = vrot.slane %v2643_v19, 1  ;;  %v2825_v36 = vrot.slane %v2823_v27, 1  ;;  %v2946_v9 = vrot.slane %v7386_v53, 1 }
 0x1bd   : > { %v2820_v29 = vrot.slane %v2818_v13, 1  ;;  %v2804_v44 = vshrl.u32 %v7403_v5, 16  ;;  %v2806_v14 = vshll.u32 %v7403_v5, 16  ;;  %v3261_v2 = vpop.permute.xlu1 %3260  ;;  %v2943_v43 = vrot.slane %v7403_v5, 1 }
 0x1be   : > { %v2944_v28 = vrot.slane %v2642_v20, 1  ;;  %v2571_v52 = vrot.slane %v2569_v16, 7  ;;  %v2813_v11 = vrot.slane %v2811_v61, 1  ;;  %v2562_v58 = vshrl.u32 %v6348_v49, 16 }
 0x1bf   : > { %v2821_v15 = vor.u32 %v2820_v29, %v2816_v47  ;;  %v2808_v17 = vrot.slane %v2806_v14, 1  ;;  %v3405_v19 = vsel %vm2984_vm8, %v6906_v4, %v3261_v2  ;;  %v2565_v27 = vshll.u32 %v6348_v49, 16 }
 0x1c0   : > { %v2574_v37 = vor.u32 %v2572_v25, %v2571_v52  ;;  %v7413_v7 = vsel %vm6800_vm7, %v2571_v52, 0  ;;  %v2564_v16 = vrot.slane %v2562_v58, 7  ;;  %v3884_v25 = vshrl.u32 %v7311_v31, 16 }
 0x1c1   : > { %v2826_v57 = vsel %vm2646_vm3, %v2821_v15, %v2825_v36  ;;  %v2809_v13 = vor.u32 %v2808_v17, %v2804_v44  ;;  %v3373_v0 = vpop.permute.xlu1 %3372  ;;  %v3866_v20 = vshll.u32 %v7413_v7, 16  ;;  %v3886_v49 = vshll.u32 %v7311_v31, 16 }
 0x1c2   : > { %2867 = vrot.lane.b32.xlu0 %v2826_v57, %s6367_s24  ;;  %v7419_v47 = vsel %vm3017_vm9, %v3405_v19, %v3373_v0  ;;  %v7423_v4 = vsel %vm6800_vm7, 0, %v2574_v37  ;;  %v2948_v29 = vsel %vm2903_vm2, %v2946_v9, %v2947_v26  ;;  %v2945_v0 = vsel %vm2903_vm2, %v2943_v43, %v2944_v28 }
 0x1c3   : > { %v2814_v61 = vsel %vm2646_vm3, %v2809_v13, %v2813_v11  ;;  %v3859_v36 = vshrl.u32 %v7423_v4, 16  ;;  %v3861_v44 = vshll.u32 %v7423_v4, 16  ;;  %6121 = vmatmul.mubr.msk.bf16.gmra.mxu1 %vm3459_vm10, %v7419_v47  ;;  %6222 = vmatprep.mubr.msk.bf16.mxu0 %vm3459_vm10, %v7419_v47  ;;  %v2567_v14 = vor.u32 %v2565_v27, %v2564_v16 }
 0x1c4   : > { %2865 = vrot.lane.b32.xlu1 %v2814_v61, %s6367_s24  ;;  %v2644_v2 = vsel %vm6800_vm7, %v2564_v16, 0  ;;  %v3888_v52 = vrot.slane %v3886_v49, 1  ;;  %v3868_v9 = vrot.slane %v3866_v20, 1  ;;  %v4323_v17 = vshll.u32 %v7390_v22, 16 }
 0x1c5   : > { %v3863_v26 = vrot.slane %v3861_v44, 1  ;;  %v2835_v15 = vshll.u32 %v2644_v2, 16  ;;  %v7443_v11 = vsel %vm6800_vm7, 0, %v2567_v14  ;;  %v3893_v43 = vrot.slane %v3891_v33, 1 }
 0x1c6   : > { %2980 = vrot.lane.b32.xlu0 %v2948_v29, %s6366_s21  ;;  %v3889_v58 = vor.u32 %v3888_v52, %v3884_v25  ;;  %v4321_v28 = vshrl.u32 %v7390_v22, 16  ;;  %v2828_v37 = vshrl.u32 %v7443_v11, 16  ;;  %v2830_v27 = vshll.u32 %v7443_v11, 16 }
 0x1c7   : > { %v3864_v19 = vor.u32 %v3863_v26, %v3859_v36  ;;  %v3263_v57 = vpop.permute.xlu0 %3262  ;;  %v4328_v13 = vshll.u32 %v7399_v42, 16  ;;  %v4325_v20 = vrot.slane %v4323_v17, 1  ;;  %v2837_v25 = vrot.slane %v2835_v15, 1  ;;  %v6353_v26 = vld [vmem:[%s8496_s4 + $0x10] sm:$0x3f]  }
 0x1c8   : > { %2978 = vrot.lane.b32.xlu1 %v2945_v0, %s6366_s21  ;;  %v2832_v16 = vrot.slane %v2830_v27, 1  ;;  %v3894_v33 = vsel %vm2646_vm3, %v3889_v58, %v3893_v43  ;;  %v2949_v49 = vrot.slane %v7443_v11, 1  ;;  %v2950_v61 = vrot.slane %v2644_v2, 1 }
 0x1c9   : > { %v3869_v39 = vsel %vm2646_vm3, %v3864_v19, %v3868_v9  ;;  %v3407_v36 = vsel %vm2984_vm8, %v6940_v8, %v3263_v57  ;;  %v4326_v44 = vor.u32 %v4325_v20, %v4321_v28  ;;  %v4330_v14 = vrot.slane %v4328_v13, 1 }
 0x1ca   : > { %3870 = vrot.lane.b32.xlu0 %v3869_v39, %s6367_s24  ;;  %v2833_v29 = vor.u32 %v2832_v16, %v2828_v37  ;;  %v4560_v9 = vsel %vm3492_vm4, %v6353_v26, 0  ;;  %v2951_v8 = vsel %vm2903_vm2, %v2949_v49, %v2950_v61  ;;  %v3874_v17 = vrot.slane %v7423_v4, 1 }
 0x1cb   : > { %v3375_v52 = vpop.permute.xlu0 %3374  ;;  %v4331_v2 = vsel %vm2646_vm3, %v4326_v44, %v4330_v14  ;;  %v3875_v58 = vrot.slane %v7413_v7, 1  ;;  %6273 = vmatpush3.bf16.msra.mxu0 %v4560_v9  ;;  %v3899_v19 = vrot.slane %v7311_v31, 1  ;;  %v3900_v37 = vrot.slane %v7319_v60, 1 }
 0x1cc   : > { %v3439_v0 = vsel %vm3017_vm9, %v3407_v36, %v3375_v52  ;;  %v2838_v15 = vsel %vm2646_vm3, %v2833_v29, %v2837_v25  ;;  %v4336_v60 = vrot.slane %v7390_v22, 1 }
 0x1cd   : > { %6124 = vmatprep.mubr.msk.bf16.mxu1 %vm3459_vm10, %v3439_v0  ;;  %6223 = vmatmul.mubr.msk.bf16.gmra.mxu0 %vm3459_vm10, %v3439_v0  ;;  %v3876_v28 = vsel %vm2903_vm2, %v3874_v17, %v3875_v58 }
 0x1ce   : > { %2869 = vrot.lane.b32.xlu1 %v2838_v15, %s6367_s24  ;;  %3895 = vrot.lane.b32.xlu0 %v3894_v33, %s6367_s24 }
 0x1cf   : > { %6274 = vmatprep.mubr.msk.bf16.mxu0 %vm3459_vm10, %v7125_v56  ;;  %v3265_v43 = vpop.permute.xlu1 %3264  ;;  %v3901_v56 = vsel %vm2903_vm2, %v3899_v19, %v3900_v37 }
 0x1d0   : > { %v3409_v27 = vsel %vm2984_vm8, %v6957_v24, %v3265_v43  ;;  %v4337_v24 = vrot.slane %v7399_v42, 1 }
 0x1d2   : > { %2982 = vrot.lane.b32.xlu1 %v2951_v8, %s6366_s21  ;;  %4332 = vrot.lane.b32.xlu0 %v4331_v2, %s6367_s24  ;;  %v4338_v20 = vsel %vm2903_vm2, %v4336_v60, %v4337_v24 }
 0x1d3   : > { %v3377_v57 = vpop.permute.xlu1 %3376 }
 0x1d4   : > { %v7482_v7 = vsel %vm3017_vm9, %v3409_v27, %v3377_v57 }
 0x1d5   : > { %6125 = vmatmul.mubr.msk.bf16.gmra.mxu1 %vm3459_vm10, %v7482_v7  ;;  %6275 = vmatmul.mubr.msk.bf16.vlgmr.msra.gmra.mxu0 %vm3459_vm10, %v7164_v18 }
 0x1d6   : > { %3877 = vrot.lane.b32.xlu1 %v3876_v28, %s6366_s21  ;;  %6278 = vmatprep.mubr.msk.bf16.mxu0 %vm3459_vm10, %v7215_v40 }
 0x1d9   : > { %v3267_v13 = vpop.permute.xlu0 %3266 }
 0x1da   : > { %3902 = vrot.lane.b32.xlu1 %v3901_v56, %s6366_s21  ;;  %v3411_v39 = vsel %vm2984_vm8, %v6983_v48, %v3267_v13 }
 0x1dd   : > { %6279 = vmatmul.mubr.msk.bf16.gmra.mxu0 %vm3459_vm10, %v7251_v38  ;;  %v3379_v18 = vpop.permute.xlu0 %3378 }
 0x1de   : > { %4339 = vrot.lane.b32.xlu1 %v4338_v20, %s6366_s21  ;;  %v7502_v40 = vsel %vm3017_vm9, %v3411_v39, %v3379_v18  ;;  %6282 = vmatprep.mubr.msk.bf16.mxu0 %vm3459_vm10, %v7299_v6  ;;  %s6315_s21 = smul.u32 216, %s8548_s28 }
 0x1df   : > { %6128 = vmatprep.mubr.msk.bf16.mxu1 %vm3459_vm10, %v7502_v40 }
 0x1e0   : > { %s7867_s24 = scalar_lea.vmem %s8498_s6, %s6315_s21 }
 0x1e1   : > { %v3269_v42 = vpop.permute.xlu1 %3268 }
 0x1e2   : > { %v3413_v48 = vsel %vm2984_vm8, %v7010_v35, %v3269_v42 }
 0x1e5   : > { %6283 = vmatmul.mubr.msk.bf16.gmra.mxu0 %vm3459_vm10, %v7340_v63  ;;  %v3381_v38 = vpop.permute.xlu1 %3380 }
 0x1e6   : > { %6286 = vmatprep.mubr.msk.bf16.mxu0 %vm3459_vm10, %v7382_v55  ;;  %v7515_v16 = vsel %vm3017_vm9, %v3413_v48, %v3381_v38 }
 0x1e7   : > { %6129 = vmatmul.mubr.msk.bf16.gmra.mxu1 %vm3459_vm10, %v7515_v16 }
 0x1ec   : > { %v3271_v6 = vpop.permute.xlu0 %3270 }
 0x1ed   : > { %6287 = vmatmul.mubr.msk.bf16.gmra.mxu0 %vm3459_vm10, %v7419_v47  ;;  %v3415_v63 = vsel %vm2984_vm8, %v7035_v51, %v3271_v6 }
 0x1ee   : > { %6290 = vmatprep.mubr.msk.bf16.mxu0 %vm3459_vm10, %v3439_v0  ;;  %v3919_v0 = vsel %vm3492_vm4, %v7363_v50, 0 }
 0x1f0   : > { %v3383_v35 = vpop.permute.xlu0 %3382 }
 0x1f1   : > { %v7525_v25 = vsel %vm3017_vm9, %v3415_v63, %v3383_v35 }
 0x1f2   : > { %6132 = vmatprep.mubr.msk.bf16.mxu1 %vm3459_vm10, %v7525_v25  ;;  %v3273_v55 = vpop.permute.xlu1 %3272 }
 0x1f3   : > { %v3417_v49 = vsel %vm2984_vm8, %v7064_v34, %v3273_v55 }
 0x1f4   : > { %v2840_v33 = vpop.permute.xlu0 %2839 }
 0x1f5   : > { %6291 = vmatmul.mubr.msk.bf16.gmra.mxu0 %vm3459_vm10, %v7482_v7  ;;  %v2986_v47 = vsel %vm2984_vm8, %v6811_v54, %v2840_v33 }
 0x1f6   : > { %6294 = vmatprep.mubr.msk.bf16.mxu0 %vm3459_vm10, %v7502_v40  ;;  %v3385_v51 = vpop.permute.xlu1 %3384 }
 0x1f7   : > { %v7538_v61 = vsel %vm3017_vm9, %v3417_v49, %v3385_v51 }
 0x1f8   : > { %v2953_v29 = vpop.permute.xlu0 %2952  ;;  %6133 = vmatmul.mubr.msk.bf16.gmra.mxu1 %vm3459_vm10, %v7538_v61 }
 0x1f9   : > { %v7543_v36 = vsel %vm3017_vm9, %v2986_v47, %v2953_v29 }
 0x1fa   : > { %v2842_v44 = vpop.permute.xlu1 %2841  ;;  %6138 = vmatprep.mubr.msk.bf16.mxu1 %vm3459_vm10, %v7543_v36 }
 0x1fb   : > { %v2988_v14 = vsel %vm2984_vm8, %v7098_v23, %v2842_v44  ;;  %v6354_v23 = vld [vmem:[%s8496_s4 + $0x8] sm:$0x3f]  }
 0x1fc   : > { %v2844_v54 = vpop.permute.xlu0 %2843 }
 0x1fd   : > { %6295 = vmatmul.mubr.msk.bf16.gmra.mxu0 %vm3459_vm10, %v7515_v16  ;;  %v2990_v34 = vsel %vm2984_vm8, %v7053_v10, %v2844_v54 }
 0x1fe   : > { %6298 = vmatprep.mubr.msk.bf16.mxu0 %vm3459_vm10, %v7525_v25  ;;  %v2955_v52 = vpop.permute.xlu1 %2954 }
 0x1ff   : > { %v7558_v26 = vsel %vm3017_vm9, %v2988_v14, %v2955_v52 }
 0x200   : > { %v2957_v9 = vpop.permute.xlu0 %2956  ;;  %6139 = vmatmul.mubr.msk.bf16.vlgmr.msra.gmra.mxu1 %vm3459_vm10, %v7558_v26 }
 0x201   : > { %v7563_v15 = vsel %vm3017_vm9, %v2990_v34, %v2957_v9  ;;  %6171 = vmatpush3.bf16.msra.mxu1 %v3919_v0 }
 0x202   : > { %v2846_v10 = vpop.permute.xlu1 %2845  ;;  %6142 = vmatprep.mubr.msk.bf16.mxu1 %vm3459_vm10, %v7563_v15  ;;  %6312 = vmatprep.subr.msk.bf16.mxu1 %vm3492_vm4, %v6354_v23 }
 0x203   : > { %v2992_v2 = vsel %vm2984_vm8, %v7130_v46, %v2846_v10 }
 0x204   : > { %v2848_v50 = vpop.permute.xlu0 %2847 }
 0x205   : > { %6299 = vmatmul.mubr.msk.bf16.gmra.mxu0 %vm3459_vm10, %v7538_v61  ;;  %v2994_v8 = vsel %vm2984_vm8, %v7119_v1, %v2848_v50 }
 0x206   : > { %v2959_v17 = vpop.permute.xlu1 %2958 }
 0x207   : > { %v7578_v58 = vsel %vm3017_vm9, %v2992_v2, %v2959_v17 }
 0x208   : > { %v2961_v43 = vpop.permute.xlu0 %2960  ;;  %6143 = vmatmul.mubr.msk.bf16.gmra.mxu1 %vm3459_vm10, %v7578_v58 }
 0x209   : > { %v7583_v28 = vsel %vm3017_vm9, %v2994_v8, %v2961_v43 }
 0x20a   : > { %v2850_v19 = vpop.permute.xlu1 %2849  ;;  %6146 = vmatprep.mubr.msk.bf16.mxu1 %vm3459_vm10, %v7583_v28 }
 0x20b   : > { %v2996_v46 = vsel %vm2984_vm8, %v7180_v32, %v2850_v19 }
 0x20c   : > { %v2852_v37 = vpop.permute.xlu0 %2851 }
 0x20d   : > { %v2998_v1 = vsel %vm2984_vm8, %v7161_v12, %v2852_v37 }
 0x20e   : > { %v2963_v27 = vpop.permute.xlu1 %2962 }
 0x20f   : > { %v7592_v57 = vsel %vm3017_vm9, %v2996_v46, %v2963_v27 }
 0x210   : > { %v2965_v56 = vpop.permute.xlu0 %2964  ;;  %6147 = vmatmul.mubr.msk.bf16.gmra.mxu1 %vm3459_vm10, %v7592_v57 }
 0x211   : > { %v7597_v60 = vsel %vm3017_vm9, %v2998_v1, %v2965_v56 }
 0x212   : > { %v2854_v24 = vpop.permute.xlu1 %2853  ;;  %6150 = vmatprep.mubr.msk.bf16.mxu1 %vm3459_vm10, %v7597_v60 }
 0x213   : > { %v3000_v32 = vsel %vm2984_vm8, %v7221_v59, %v2854_v24 }
 0x214   : > { %v2856_v13 = vpop.permute.xlu0 %2855 }
 0x215   : > { %v3002_v12 = vsel %vm2984_vm8, %v7197_v62, %v2856_v13 }
 0x216   : > { %v2967_v20 = vpop.permute.xlu1 %2966 }
 0x217   : > { %v7606_v39 = vsel %vm3017_vm9, %v3000_v32, %v2967_v20 }
 0x218   : > { %v2969_v18 = vpop.permute.xlu0 %2968  ;;  %6151 = vmatmul.mubr.msk.bf16.gmra.mxu1 %vm3459_vm10, %v7606_v39 }
 0x219   : > { %v7611_v42 = vsel %vm3017_vm9, %v3002_v12, %v2969_v18 }
 0x21a   : > { %v2858_v48 = vpop.permute.xlu1 %2857  ;;  %6154 = vmatprep.mubr.msk.bf16.mxu1 %vm3459_vm10, %v7611_v42 }
 0x21b   : > { %v3004_v59 = vsel %vm2984_vm8, %v7270_v41, %v2858_v48 }
 0x21c   : > { %v2860_v38 = vpop.permute.xlu0 %2859 }
 0x21d   : > { %v3006_v62 = vsel %vm2984_vm8, %v7259_v45, %v2860_v38 }
 0x21e   : > { %v2971_v6 = vpop.permute.xlu1 %2970 }
 0x21f   : > { %v7620_v63 = vsel %vm3017_vm9, %v3004_v59, %v2971_v6 }
 0x220   : > { %v2973_v35 = vpop.permute.xlu0 %2972  ;;  %6155 = vmatmul.mubr.msk.bf16.gmra.mxu1 %vm3459_vm10, %v7620_v63 }
 0x221   : > { %v7625_v55 = vsel %vm3017_vm9, %v3006_v62, %v2973_v35 }
 0x222   : > { %6158 = vmatprep.mubr.msk.bf16.mxu1 %vm3459_vm10, %v7625_v55 }
 0x226   : > { %v2864_v33 = vpop.permute.xlu0 %2863 }
 0x227   : > { %v2862_v47 = vpop.permute.xlu1 %2861  ;;  %v3010_v45 = vsel %vm2984_vm8, %v7323_v30, %v2864_v33 }
 0x228   : > { %v3008_v49 = vsel %vm2984_vm8, %v7329_v21, %v2862_v47 }
 0x22a   : > { %v2977_v41 = vpop.permute.xlu0 %2976 }
 0x22b   : > { %v7634_v51 = vsel %vm3017_vm9, %v3010_v45, %v2977_v41  ;;  %v2975_v29 = vpop.permute.xlu1 %2974 }
 0x22c   : > { %v7637_v44 = vsel %vm3017_vm9, %v3008_v49, %v2975_v29 }
 0x22d   : > { %6159 = vmatmul.mubr.msk.bf16.gmra.mxu1 %vm3459_vm10, %v7637_v44 }
 0x22e   : > { %6162 = vmatprep.mubr.msk.bf16.mxu1 %vm3459_vm10, %v7634_v51 }
 0x234   : > { %v2868_v54 = vpop.permute.xlu0 %2867 }
 0x235   : > { %v3014_v30 = vsel %vm2984_vm8, %v7386_v53, %v2868_v54 }
 0x236   : > { %v2866_v34 = vpop.permute.xlu1 %2865 }
 0x237   : > { %v3012_v21 = vsel %vm2984_vm8, %v7403_v5, %v2866_v34 }
 0x238   : > { %v2981_v14 = vpop.permute.xlu0 %2980 }
 0x239   : > { %v7648_v52 = vsel %vm3017_vm9, %v3014_v30, %v2981_v14  ;;  %v7683_v46 = vpop.f32.mrf.mxu1 }
 0x23a   : > { %v2979_v0 = vpop.permute.xlu1 %2978 }
 0x23b   : > { %v7651_v9 = vsel %vm3017_vm9, %v3012_v21, %v2979_v0 }
 0x23c   : > { %6163 = vmatmul.mubr.msk.bf16.gmra.mxu1 %vm3459_vm10, %v7651_v9  ;;  %v3871_v23 = vpop.permute.xlu0 %3870 }
 0x23d   : > { %6166 = vmatprep.mubr.msk.bf16.mxu1 %vm3459_vm10, %v7648_v52  ;;  %v3880_v38 = vsel %vm2984_vm8, %v7423_v4, %v3871_v23 }
 0x240   : > { %v2870_v10 = vpop.permute.xlu1 %2869  ;;  %v3896_v8 = vpop.permute.xlu0 %3895 }
 0x241   : > { %v3016_v53 = vsel %vm2984_vm8, %v7443_v11, %v2870_v10  ;;  %v3905_v17 = vsel %vm2984_vm8, %v7311_v31, %v3896_v8  ;;  %v6351_v11 = vld [vmem:[%s8495_s3 + $0x10] sm:$0x3f]  }
 0x242   : > { %v4354_v47 = vsel %vm3492_vm4, %v6351_v11, 0 }
 0x244   : > { %v2983_v50 = vpop.permute.xlu1 %2982  ;;  %v4333_v19 = vpop.permute.xlu0 %4332 }
 0x245   : > { %v7660_v5 = vsel %vm3017_vm9, %v3016_v53, %v2983_v50  ;;  %v4342_v31 = vsel %vm2984_vm8, %v7390_v22, %v4333_v19  ;;  %v8509_v19 = vmov 0.0  }
 0x246   : > { %6167 = vmatmul.mubr.msk.bf16.gmra.mxu1 %vm3459_vm10, %v7660_v5 }
 0x247   : > { %6172 = vmatprep.mubr.msk.bf16.mxu1 %vm3459_vm10, %v7558_v26 }
 0x248   : > { %v3878_v2 = vpop.permute.xlu1 %3877 }
 0x249   : > { %v3882_v59 = vsel %vm3017_vm9, %v3880_v38, %v3878_v2 }
 0x24c   : > { %v3903_v43 = vpop.permute.xlu1 %3902 }
 0x24d   : > { %v3907_v37 = vsel %vm3017_vm9, %v3905_v17, %v3903_v43 }
 0x24e   : > { %6173 = vmatmul.mubr.msk.bf16.vlgmr.msra.gmra.mxu1 %vm3459_vm10, %v7563_v15  ;;  %6302 = vmatprep.mubr.msk.bf16.mxu0 %vm3459_vm10, %v3907_v37 }
 0x24f   : > { %6307 = vmatpush3.bf16.msra.mxu1 %v6904_v3  ;;  %6176 = vmatprep.mubr.msk.bf16.mxu1 %vm3459_vm10, %v7578_v58  ;;  %v7689_v3 = vpop.f32.mrf.mxu1 }
 0x250   : > { %v4340_v26 = vpop.permute.xlu1 %4339  ;;  %6313 = vmatprep.subr.msk.bf16.mxu1 %vm3492_vm4, %v6351_v11 }
 0x251   : > { %v4344_v1 = vsel %vm3017_vm9, %v4342_v31, %v4340_v26  ;;  %v7691_v27 = vpop.f32.mrf.mxu1 }
 0x252   : > { %6303 = vmatmul.mubr.msk.bf16.gmra.mxu0 %vm3459_vm10, %v4344_v1 }
 0x253   : > { %v7697_v22 = vpop.f32.mrf.mxu1 }
 0x255   : > { %v7699_v56 = vpop.f32.mrf.mxu1 }
 0x256   : > { %6177 = vmatmul.mubr.msk.bf16.gmra.mxu1 %vm3459_vm10, %v7583_v28 }
 0x257   : > { %6180 = vmatprep.mubr.msk.bf16.mxu1 %vm3459_vm10, %v7592_v57  ;;  %v7705_v24 = vpop.f32.mrf.mxu1 }
 0x259   : > { %v7707_v13 = vpop.f32.mrf.mxu1 }
 0x25b   : > { %v7713_v12 = vpop.f32.mrf.mxu1 }
 0x25e   : > { %6181 = vmatmul.mubr.msk.bf16.gmra.mxu1 %vm3459_vm10, %v7597_v60 }
 0x25f   : > { %6184 = vmatprep.mubr.msk.bf16.mxu1 %vm3459_vm10, %v7606_v39  ;;  %v7715_v32 = vpop.f32.mrf.mxu1 }
 0x261   : > { %v7717_v20 = vpop.f32.mrf.mxu1 }
 0x263   : > { %v7723_v18 = vpop.f32.mrf.mxu1 }
 0x265   : > { %v7725_v48 = vpop.f32.mrf.mxu1 }
 0x266   : > { %6185 = vmatmul.mubr.msk.bf16.gmra.mxu1 %vm3459_vm10, %v7611_v42 }
 0x267   : > { %6188 = vmatprep.mubr.msk.bf16.mxu1 %vm3459_vm10, %v7620_v63 }
 0x26e   : > { %6189 = vmatmul.mubr.msk.bf16.gmra.mxu1 %vm3459_vm10, %v7625_v55 }
 0x26f   : > { %6192 = vmatprep.mubr.msk.bf16.mxu1 %vm3459_vm10, %v7637_v44 }
 0x271   : > { %v7733_v62 = vpop.f32.mrf.mxu1 }
 0x273   : > { %v7736_v6 = vpop.f32.mrf.mxu1 }
 0x275   : > { %v7741_v35 = vpop.f32.mrf.mxu1 }
 0x276   : > { %6193 = vmatmul.mubr.msk.bf16.gmra.mxu1 %vm3459_vm10, %v7634_v51 }
 0x277   : > { %6196 = vmatprep.mubr.msk.bf16.mxu1 %vm3459_vm10, %v7651_v9  ;;  %v7743_v33 = vpop.f32.mrf.mxu1 }
 0x27e   : > { %6197 = vmatmul.mubr.msk.bf16.gmra.mxu1 %vm3459_vm10, %v7648_v52 }
 0x27f   : > { %6200 = vmatprep.mubr.msk.bf16.mxu1 %vm3459_vm10, %v7660_v5 }
 0x283   : > { %v7748_v4 = vpop.f32.mrf.mxu1 }
 0x285   : > { %v7752_v45 = vpop.f32.mrf.mxu1 }
 0x286   : > { %6201 = vmatmul.mubr.msk.bf16.gmra.mxu1 %vm3459_vm10, %v3882_v59 }
 0x287   : > { %6226 = vmatprep.mubr.msk.bf16.mxu1 %vm3459_vm10, %v7482_v7  ;;  %v7754_v41 = vpop.f32.mrf.mxu1 }
 0x289   : > { %v7760_v7 = vpop.f32.mrf.mxu1 }
 0x28e   : > { %6227 = vmatmul.mubr.msk.bf16.vlgmr.msra.gmra.mxu1 %vm3459_vm10, %v7502_v40 }
 0x28f   : > { %6239 = vmatpush3.bf16.msra.mxu1 %v4354_v47  ;;  %6230 = vmatprep.mubr.msk.bf16.mxu1 %vm3459_vm10, %v7515_v16 }
 0x295   : > { %v7762_v49 = vpop.f32.mrf.mxu1 }
 0x296   : > { %6231 = vmatmul.mubr.msk.bf16.gmra.mxu1 %vm3459_vm10, %v7525_v25 }
 0x297   : > { %6234 = vmatprep.mubr.msk.bf16.mxu1 %vm3459_vm10, %v7538_v61  ;;  %v7767_v40 = vpop.f32.mrf.mxu1 }
 0x299   : > { %v7769_v16 = vpop.f32.mrf.mxu1 }
 0x29b   : > { %v7775_v25 = vpop.f32.mrf.mxu1 }
 0x29e   : > { %6235 = vmatmul.mubr.msk.bf16.gmra.mxu1 %vm3459_vm10, %v3907_v37  ;;  %v4828_v37 = vrot.slane %v8509_v19, 7 }
 0x29f   : > { %6240 = vmatprep.mubr.msk.bf16.mxu1 %vm3459_vm10, %v7563_v15 }
 0x2a0   : > { %v4945_v31 = vsel %vm2609_vm5, %v4828_v37, 0.0  ;;  %v5762_v26 = vpack.c.bf16 %v4828_v37, %v4828_v37 }
 0x2a1   : > { %v5763_v38 = vpack.c.bf16 %v4945_v31, %v4945_v31 }
 0x2a2   : > { %5185 = vst.msk [vmem:[%s7867_s24 + $0x4] sm:$0xf] %vm5183_vm11, %v5762_v26  ;;  %5237 = vst.msk [vmem:[%s7867_s24 + $0xd0] sm:$0xf] %vm5183_vm11, %v5762_v26 }
 0x2a3   : > { %5187 = vst.msk [vmem:[%s7867_s24 + $0x8] sm:$0x1] %vm5186_vm12, %v5763_v38  ;;  %5238 = vst.msk [vmem:[%s7867_s24 + $0xd4] sm:$0x1] %vm5186_vm12, %v5763_v38 }
 0x2a6   : > { %6241 = vmatmul.mubr.msk.bf16.vlgmr.msra.gmra.mxu1 %vm3459_vm10, %v7578_v58 }
 0x2a7   : > { %6244 = vmatprep.mubr.msk.bf16.mxu1 %vm3459_vm10, %v7583_v28  ;;  %v7777_v61 = vpop.f32.mrf.mxu1 }
 0x2a9   : > { %v7781_v29 = vpop.f32.mrf.mxu1 }
 0x2ab   : > { %v7785_v15 = vpop.f32.mrf.mxu1 }
 0x2ad   : > { %v7789_v58 = vpop.f32.mrf.mxu1 }
 0x2ae   : > { %6245 = vmatmul.mubr.msk.bf16.gmra.mxu1 %vm3459_vm10, %v7592_v57  ;;  %8504 = vst [vmem:[#allocation2_spill] sm:$0xff] %v7789_v58 }
 0x2af   : > { %6248 = vmatprep.mubr.msk.bf16.mxu1 %vm3459_vm10, %v7597_v60 }
 0x2b6   : > { %6249 = vmatmul.mubr.msk.bf16.gmra.mxu1 %vm3459_vm10, %v7606_v39 }
 0x2b7   : > { %6252 = vmatprep.mubr.msk.bf16.mxu1 %vm3459_vm10, %v7611_v42 }
 0x2b8   : > { %v7793_v28 = vpop.f32.mrf.mxu1 }
 0x2b9   : > { %8505 = vst [vmem:[#allocation3_spill] sm:$0xff] %v7793_v28 }
 0x2ba   : > { %v7795_v54 = vpop.f32.mrf.mxu1 }
 0x2bb   : > { %8506 = vst [vmem:[#allocation4_spill] sm:$0xff] %v7795_v54 }
 0x2bc   : > { %v7797_v57 = vpop.f32.mrf.mxu1 }
 0x2bd   : > { %8507 = vst [vmem:[#allocation5_spill] sm:$0xff] %v7797_v57 }
 0x2be   : > { %6253 = vmatmul.mubr.msk.bf16.gmra.mxu1 %vm3459_vm10, %v7620_v63  ;;  %v7801_v60 = vpop.f32.mrf.mxu1 }
 0x2bf   : > { %8508 = vst [vmem:[#allocation6_spill] sm:$0xff] %v7801_v60  ;;  %6256 = vmatprep.mubr.msk.bf16.mxu1 %vm3459_vm10, %v7625_v55 }
 0x2c0   : > { %v6140_v39 = vpop.f32.mrf.mxu1 }
 0x2c2   : > { %v3731_v34 = vpop.f32.mrf.mxu1 }
 0x2c4   : > { %v7805_v30 = vpop.f32.mrf.mxu1 }
 0x2c6   : > { %6257 = vmatmul.mubr.msk.bf16.gmra.mxu1 %vm3459_vm10, %v7637_v44  ;;  %v7809_v42 = vpop.f32.mrf.mxu1 }
 0x2c7   : > { %6260 = vmatprep.mubr.msk.bf16.mxu1 %vm3459_vm10, %v7634_v51 }
 0x2c8   : > { %v7813_v14 = vpop.f32.mrf.mxu1 }
 0x2ca   : > { %v7815_v63 = vpop.f32.mrf.mxu1 }
 0x2cc   : > { %v7817_v21 = vpop.f32.mrf.mxu1 }
 0x2ce   : > { %6261 = vmatmul.mubr.msk.bf16.gmra.mxu1 %vm3459_vm10, %v7651_v9  ;;  %v7821_v55 = vpop.f32.mrf.mxu1 }
 0x2cf   : > { %6264 = vmatprep.mubr.msk.bf16.mxu1 %vm3459_vm10, %v7648_v52 }
 0x2d0   : > { %v7825_v44 = vpop.f32.mrf.mxu1 }
 0x2d2   : > { %v7827_v0 = vpop.f32.mrf.mxu1 }
 0x2d4   : > { %v7829_v51 = vpop.f32.mrf.mxu1 }
 0x2d6   : > { %6265 = vmatmul.mubr.msk.bf16.gmra.mxu1 %vm3459_vm10, %v7660_v5  ;;  %v7833_v10 = vpop.f32.mrf.mxu1 }
 0x2d7   : > { %6268 = vmatprep.mubr.msk.bf16.mxu1 %vm3459_vm10, %v3882_v59 }
 0x2d8   : > { %v7836_v9 = vpop.f32.mrf.mxu1 }
 0x2da   : > { %v7838_v23 = vpop.f32.mrf.mxu1 }
 0x2dc   : > { %v7840_v53 = vpop.f32.mrf.mxu1 }
 0x2de   : > { %6269 = vmatmul.mubr.msk.bf16.gmra.mxu1 %vm3459_vm10, %v7543_v36  ;;  %v7844_v52 = vpop.f32.mrf.mxu1  ;;  %v4928_v36 = vsel %vm2609_vm5, 0.0, %v4828_v37  ;;  %v7887_v37 = vpop.f32.mrf.mxu0 }
 0x2df   : > { %v5761_v1 = vpack.c.bf16 %v4928_v36, %v4928_v36  ;;  %8510 = vst [vmem:[#allocation7_spill] sm:$0xff] %v7887_v37  ;;  %v3740_v37 = vadd.f32 %v6140_v39, %v7683_v46 }
 0x2e0   : > { %v7846_v50 = vpop.f32.mrf.mxu1  ;;  %v7893_v60 = vpop.f32.mrf.mxu0 }
 0x2e1   : > { %5184 = vst.msk [vmem:[%s7867_s24] sm:$0xf] %vm5183_vm11, %v5761_v1  ;;  %5236 = vst.msk [vmem:[%s7867_s24 + $0xcc] sm:$0xf] %vm5183_vm11, %v5761_v1 }
 0x2e2   : > { %v7848_v8 = vpop.f32.mrf.mxu1  ;;  %8513 = vst [vmem:[#allocation10_spill] sm:$0xff] %v7893_v60  ;;  %v7897_v57 = vpop.f32.mrf.mxu0 }
 0x2e3   : > { %8515 = vst [vmem:[#allocation12_spill] sm:$0xff] %v7897_v57  ;;  %v3743_v57 = vadd.f32 %v7805_v30, %v7691_v27  ;;  %v3748_v27 = vadd.f32 %v7815_v63, %v7705_v24  ;;  %v3772_v24 = vadd.f32 %v7825_v44, %v7715_v32  ;;  %v3767_v32 = vadd.f32 %v7833_v10, %v7725_v48 }
 0x2e4   : > { %v7850_v5 = vpop.f32.mrf.mxu1  ;;  %v7903_v38 = vpop.f32.mrf.mxu0  ;;  %v3791_v48 = vadd.f32 %v7840_v53, %v7741_v35  ;;  %v3796_v35 = vadd.f32 %v7848_v8, %v7752_v45 }
 0x2e5   : > { %8518 = vst [vmem:[#allocation15_spill] sm:$0xff] %v7903_v38 }
 0x2e6   : > { %v7852_v2 = vpop.f32.mrf.mxu1  ;;  %v7908_v58 = vpop.f32.mrf.mxu0 }
 0x2ed   : > { %v7854_v17 = vpop.f32.mrf.mxu1 }
 0x2ee   : > { %v3820_v45 = vadd.f32 %v7854_v17, %v7762_v49 }
 0x2ef   : > { %v7856_v43 = vpop.f32.mrf.mxu1 }
 0x2f1   : > { %v7859_v11 = vpop.f32.mrf.mxu1 }
 0x2f3   : > { %v7869_v59 = vpop.f32.mrf.mxu1 }
 0x2f4   : > { %v3815_v49 = vadd.f32 %v7869_v59, %v7775_v25 }
 0x2fc   : > { %v7883_v47 = vpop.f32.mrf.mxu1 }
 0x2fe   : > { %v7885_v19 = vpop.f32.mrf.mxu1 }
 0x300   : > { %v7889_v36 = vpop.f32.mrf.mxu1 }
 0x301   : > { %8511 = vst [vmem:[#allocation8_spill] sm:$0xff] %v7889_v36 }
 0x302   : > { %v7891_v31 = vpop.f32.mrf.mxu1 }
 0x303   : > { %8512 = vst [vmem:[#allocation9_spill] sm:$0xff] %v7891_v31  ;;  %v3732_v31 = vadd.f32 %v3731_v34, %v7689_v3  ;;  %v3756_v3 = vadd.f32 %v7813_v14, %v7699_v56  ;;  %v3751_v56 = vadd.f32 %v7821_v55, %v7713_v12  ;;  %v3775_v12 = vadd.f32 %v7829_v51, %v7723_v18 }
 0x304   : > { %v3780_v18 = vadd.f32 %v7838_v23, %v7736_v6  ;;  %v3804_v6 = vadd.f32 %v7846_v50, %v7748_v4  ;;  %v3799_v4 = vadd.f32 %v7852_v2, %v7760_v7  ;;  %v3823_v7 = vadd.f32 %v7859_v11, %v7769_v16 }
 0x306   : > { %v7895_v26 = vpop.f32.mrf.mxu1 }
 0x307   : > { %8514 = vst [vmem:[#allocation11_spill] sm:$0xff] %v7895_v26 }
 0x308   : > { %v7899_v54 = vpop.f32.mrf.mxu1  ;;  %v8522_v11 = vld [vmem:[#allocation8_spill] sm:$0xff] }
 0x309   : > { %8516 = vst [vmem:[#allocation13_spill] sm:$0xff] %v7899_v54 }
 0x30a   : > { %v7901_v1 = vpop.f32.mrf.mxu1 }
 0x30b   : > { %8517 = vst [vmem:[#allocation14_spill] sm:$0xff] %v7901_v1  ;;  %v7917_v1 = vpop.f32.mrf.mxu0 }
 0x30c   : > { %v7905_v28 = vpop.f32.mrf.mxu1 }
 0x30d   : > { %8519 = vst [vmem:[#allocation16_spill] sm:$0xff] %v7905_v28  ;;  %v3735_v28 = vadd.f32 %v7809_v42, %v7697_v22  ;;  %v3759_v22 = vadd.f32 %v7817_v21, %v7707_v13  ;;  %v3764_v13 = vadd.f32 %v7827_v0, %v7717_v20  ;;  %v3788_v20 = vadd.f32 %v7836_v9, %v7733_v62 }
 0x30e   : > { %v6174_v36 = vpop.f32.mrf.mxu1  ;;  %v3783_v62 = vadd.f32 %v7844_v52, %v7743_v33  ;;  %v3807_v33 = vadd.f32 %v7850_v5, %v7754_v41  ;;  %v3812_v41 = vadd.f32 %v7856_v43, %v7767_v40 }
 0x30f   : > { %v7911_v60 = vadd.f32 %v6174_v36, %v3740_v37  ;;  %v7927_v37 = vpop.f32.mrf.mxu0 }
 0x310   : > { %v3955_v26 = vpop.f32.mrf.mxu1 }
 0x311   : > { %v7915_v54 = vadd.f32 %v3955_v26, %v3732_v31  ;;  %v7937_v42 = vpop.f32.mrf.mxu0 }
 0x312   : > { %v6175_v38 = vpop.f32.mrf.mxu1 }
 0x313   : > { %v7921_v46 = vadd.f32 %v6175_v38, %v3743_v57  ;;  %v7943_v14 = vpop.f32.mrf.mxu0 }
 0x314   : > { %v3958_v39 = vpop.f32.mrf.mxu1 }
 0x315   : > { %v7925_v34 = vadd.f32 %v3958_v39, %v3735_v28 }
 0x316   : > { %v6178_v36 = vpop.f32.mrf.mxu1 }
 0x317   : > { %v7931_v30 = vadd.f32 %v6178_v36, %v3756_v3  ;;  %v7953_v3 = vpop.f32.mrf.mxu0 }
 0x318   : > { %v3971_v31 = vpop.f32.mrf.mxu1 }
 0x319   : > { %v7935_v57 = vadd.f32 %v3971_v31, %v3748_v27  ;;  %v7963_v31 = vpop.f32.mrf.mxu0 }
 0x31a   : > { %v6179_v26 = vpop.f32.mrf.mxu1 }
 0x31b   : > { %v7941_v28 = vadd.f32 %v6179_v26, %v3759_v22 }
 0x31c   : > { %v3974_v38 = vpop.f32.mrf.mxu1 }
 0x31d   : > { %v7947_v63 = vadd.f32 %v3974_v38, %v3751_v56  ;;  %v7973_v56 = vpop.f32.mrf.mxu0 }
 0x31e   : > { %v6182_v39 = vpop.f32.mrf.mxu1 }
 0x31f   : > { %v7951_v21 = vadd.f32 %v6182_v39, %v3772_v24  ;;  %v7979_v24 = vpop.f32.mrf.mxu0 }
 0x320   : > { %v3987_v36 = vpop.f32.mrf.mxu1 }
 0x321   : > { %v7957_v55 = vadd.f32 %v3987_v36, %v3764_v13  ;;  %v7989_v36 = vpop.f32.mrf.mxu0 }
 0x322   : > { %v6183_v27 = vpop.f32.mrf.mxu1 }
 0x323   : > { %v7961_v44 = vadd.f32 %v6183_v27, %v3775_v12 }
 0x324   : > { %v3990_v22 = vpop.f32.mrf.mxu1 }
 0x325   : > { %v7967_v0 = vadd.f32 %v3990_v22, %v3767_v32  ;;  %v7999_v32 = vpop.f32.mrf.mxu0 }
 0x326   : > { %v6186_v26 = vpop.f32.mrf.mxu1 }
 0x327   : > { %v7971_v51 = vadd.f32 %v6186_v26, %v3788_v20  ;;  %v8009_v26 = vpop.f32.mrf.mxu0 }
 0x328   : > { %v4003_v38 = vpop.f32.mrf.mxu1 }
 0x329   : > { %v7977_v10 = vadd.f32 %v4003_v38, %v3780_v18  ;;  %v8013_v38 = vpop.f32.mrf.mxu0 }
 0x32a   : > { %v6187_v39 = vpop.f32.mrf.mxu1 }
 0x32b   : > { %v7983_v9 = vadd.f32 %v6187_v39, %v3791_v48 }
 0x32c   : > { %v4006_v13 = vpop.f32.mrf.mxu1 }
 0x32d   : > { %v7987_v23 = vadd.f32 %v4006_v13, %v3783_v62  ;;  %v8019_v62 = vpop.f32.mrf.mxu0 }
 0x32e   : > { %v6190_v12 = vpop.f32.mrf.mxu1 }
 0x32f   : > { %v7993_v53 = vadd.f32 %v6190_v12, %v3804_v6  ;;  %v3836_v6 = vadd.f32 %v7883_v47, %v7777_v61  ;;  %v3828_v12 = vadd.f32 %v7885_v19, %v7781_v29  ;;  %v8526_v47 = vld [vmem:[#allocation3_spill] sm:$0xff] }
 0x330   : > { %v4019_v27 = vpop.f32.mrf.mxu1 }
 0x331   : > { %v7997_v52 = vadd.f32 %v4019_v27, %v3796_v35  ;;  %v8025_v27 = vpop.f32.mrf.mxu0 }
 0x332   : > { %v6191_v22 = vpop.f32.mrf.mxu1  ;;  %8521 = vst [vmem:[#allocation18_spill] sm:$0xff] %v8025_v27 }
 0x333   : > { %v8003_v50 = vadd.f32 %v6191_v22, %v3807_v33  ;;  %v3839_v33 = vadd.f32 %v8522_v11, %v7785_v15  ;;  %v8523_v22 = vld [vmem:[#allocation2_spill] sm:$0xff] }
 0x334   : > { %v4022_v20 = vpop.f32.mrf.mxu1 }
 0x335   : > { %v8007_v8 = vadd.f32 %v4022_v20, %v3799_v4  ;;  %v8524_v4 = vld [vmem:[#allocation9_spill] sm:$0xff] }
 0x336   : > { %v6194_v18 = vpop.f32.mrf.mxu1  ;;  %v3831_v20 = vadd.f32 %v8524_v4, %v8523_v22 }
 0x337   : > { %8520 = vst [vmem:[#allocation17_spill] sm:$0xff] %v8007_v8  ;;  %v4104_v5 = vadd.f32 %v6194_v18, %v3820_v45  ;;  %v8031_v18 = vpop.f32.mrf.mxu0 }
 0x338   : > { %v4035_v48 = vpop.f32.mrf.mxu1  ;;  %8525 = vst [vmem:[#allocation8_spill] sm:$0xff] %v8031_v18 }
 0x339   : > { %v4102_v2 = vadd.f32 %v4035_v48, %v3812_v41  ;;  %v8527_v41 = vld [vmem:[#allocation11_spill] sm:$0xff] }
 0x33a   : > { %v6195_v39 = vpop.f32.mrf.mxu1  ;;  %v3852_v48 = vadd.f32 %v8527_v41, %v8526_v47 }
 0x33b   : > { %v4105_v17 = vadd.f32 %v6195_v39, %v3823_v7  ;;  %v8528_v7 = vld [vmem:[#allocation4_spill] sm:$0xff]  ;;  %v8529_v39 = vld [vmem:[#allocation13_spill] sm:$0xff] }
 0x33c   : > { %v4038_v13 = vpop.f32.mrf.mxu1 }
 0x33d   : > { %v4103_v40 = vadd.f32 %v4038_v13, %v3815_v49  ;;  %v3844_v49 = vadd.f32 %v8529_v39, %v8528_v7 }
 0x33e   : > { %v6198_v43 = vpop.f32.mrf.mxu1 }
 0x33f   : > { %v4108_v35 = vadd.f32 %v6198_v43, %v3836_v6  ;;  %v6276_v6 = vpop.f32.mrf.mxu0  ;;  %v8530_v43 = vld [vmem:[#allocation5_spill] sm:$0xff] }
 0x340   : > { %v4051_v16 = vpop.f32.mrf.mxu1 }
 0x341   : > { %v4106_v25 = vadd.f32 %v4051_v16, %v3828_v12  ;;  %v8531_v12 = vld [vmem:[#allocation14_spill] sm:$0xff]  ;;  %v4596_v8 = vpop.f32.mrf.mxu0 }
 0x342   : > { %v6199_v59 = vpop.f32.mrf.mxu1  ;;  %v3855_v16 = vadd.f32 %v8531_v12, %v8530_v43 }
 0x343   : > { %v4109_v45 = vadd.f32 %v6199_v59, %v3839_v33  ;;  %v8532_v33 = vld [vmem:[#allocation6_spill] sm:$0xff]  ;;  %v8533_v59 = vld [vmem:[#allocation16_spill] sm:$0xff]  ;;  %v6277_v41 = vpop.f32.mrf.mxu0 }
 0x344   : > { %v4054_v61 = vpop.f32.mrf.mxu1  ;;  %v3847_v4 = vadd.f32 %v8533_v59, %v8532_v33 }
 0x345   : > { %v4107_v29 = vadd.f32 %v4054_v61, %v3831_v20  ;;  %v8047_v43 = vpop.f32.mrf.mxu0 }
 0x346   : > { %v6202_v19 = vpop.f32.mrf.mxu1 }
 0x347   : > { %v4112_v13 = vadd.f32 %v6202_v19, %v3852_v48 }
 0x348   : > { %v4067_v15 = vpop.f32.mrf.mxu1 }
 0x349   : > { %v4110_v11 = vadd.f32 %v4067_v15, %v3844_v49 }
 0x34a   : > { %v6203_v22 = vpop.f32.mrf.mxu1 }
 0x34b   : > { %v4113_v18 = vadd.f32 %v6203_v22, %v3855_v16  ;;  %v8053_v22 = vpop.f32.mrf.mxu0 }
 0x34c   : > { %v4070_v27 = vpop.f32.mrf.mxu1 }
 0x34d   : > { %v4111_v47 = vadd.f32 %v4070_v27, %v3847_v4 }
 0x34e   : > { %v6228_v20 = vpop.f32.mrf.mxu1 }
 0x34f   : > { %v8041_v61 = vadd.f32 %v6228_v20, %v4104_v5 }
 0x350   : > { %v4241_v7 = vpop.f32.mrf.mxu1 }
 0x351   : > { %v8043_v48 = vadd.f32 %v4241_v7, %v4102_v2  ;;  %v8059_v2 = vpop.f32.mrf.mxu0 }
 0x352   : > { %v6229_v19 = vpop.f32.mrf.mxu1 }
 0x353   : > { %v8045_v39 = vadd.f32 %v6229_v19, %v4105_v17 }
 0x354   : > { %v4244_v49 = vpop.f32.mrf.mxu1 }
 0x355   : > { %v8049_v15 = vadd.f32 %v4244_v49, %v4103_v40  ;;  %v8065_v40 = vpop.f32.mrf.mxu0 }
 0x356   : > { %v6232_v12 = vpop.f32.mrf.mxu1 }
 0x357   : > { %v8051_v16 = vadd.f32 %v6232_v12, %v4108_v35 }
 0x358   : > { %v4257_v27 = vpop.f32.mrf.mxu1 }
 0x359   : > { %v8055_v5 = vadd.f32 %v4257_v27, %v4106_v25  ;;  %v8071_v25 = vpop.f32.mrf.mxu0 }
 0x35a   : > { %v6233_v33 = vpop.f32.mrf.mxu1 }
 0x35b   : > { %v8057_v59 = vadd.f32 %v6233_v33, %v4109_v45  ;;  %v8537_v33 = vld [vmem:[#allocation7_spill] sm:$0xff] }
 0x35c   : > { %v4260_v17 = vpop.f32.mrf.mxu1 }
 0x35d   : > { %v8061_v4 = vadd.f32 %v4260_v17, %v4107_v29  ;;  %v4290_v29 = vadd.f32 %v8537_v33, %v7911_v60  ;;  %v8540_v60 = vld [vmem:[#allocation15_spill] sm:$0xff] }
 0x35e   : > { %v6236_v20 = vpop.f32.mrf.mxu1  ;;  %v4289_v33 = vadd.f32 %v8540_v60, %v7925_v34 }
 0x35f   : > { %8534 = vst [vmem:[#allocation2_spill] sm:$0xff] %v8061_v4  ;;  %v8063_v7 = vadd.f32 %v6236_v20, %v4112_v13  ;;  %v8538_v13 = vld [vmem:[#allocation10_spill] sm:$0xff] }
 0x360   : > { %v4273_v35 = vpop.f32.mrf.mxu1  ;;  %v4288_v20 = vadd.f32 %v8538_v13, %v7915_v54  ;;  %v4295_v13 = vadd.f32 %v7927_v37, %v7941_v28  ;;  %v8113_v37 = vadd.f32 %v7963_v31, %v7961_v44  ;;  %v8125_v28 = vadd.f32 %v7989_v36, %v7977_v10 }
 0x361   : > { %8535 = vst [vmem:[#allocation9_spill] sm:$0xff] %v8063_v7  ;;  %v8067_v19 = vadd.f32 %v4273_v35, %v4110_v11  ;;  %v8079_v7 = vpop.f32.mrf.mxu0  ;;  %v8539_v35 = vld [vmem:[#allocation12_spill] sm:$0xff] }
 0x362   : > { %v6237_v49 = vpop.f32.mrf.mxu1 }
 0x363   : > { %v8069_v12 = vadd.f32 %v6237_v49, %v4113_v18  ;;  %v8084_v18 = vld [vmem:[%s8497_s5] ss:$0 sm:$0xff] }
 0x364   : > { %v4276_v45 = vpop.f32.mrf.mxu1 }
 0x365   : > { %v8073_v27 = vadd.f32 %v4276_v45, %v4111_v47  ;;  %v4291_v47 = vadd.f32 %v8539_v35, %v7921_v46  ;;  %v8102_v46 = vadd.f32 %v7943_v14, %v7951_v21  ;;  %v8130_v21 = vadd.f32 %v7999_v32, %v7983_v9  ;;  %v8541_v9 = vld [vmem:[#allocation18_spill] sm:$0xff] }
 0x366   : > { %v6242_v17 = vpop.f32.mrf.mxu1 }
 0x367   : > { %8536 = vst [vmem:[#allocation3_spill] sm:$0xff] %v8073_v27  ;;  %v4519_v4 = vadd.f32 %v6242_v17, %v4290_v29  ;;  %v4294_v29 = vadd.f32 %v7908_v58, %v7931_v30  ;;  %v4292_v17 = vadd.f32 %v7917_v1, %v7935_v57  ;;  %v8098_v27 = vadd.f32 %v7937_v42, %v7947_v63  ;;  %v8109_v1 = vpop.f32.mrf.mxu0 }
 0x368   : > { %v4390_v11 = vpop.f32.mrf.mxu1  ;;  %v8107_v58 = vadd.f32 %v7953_v3, %v7957_v55  ;;  %v8117_v57 = vadd.f32 %v7973_v56, %v7967_v0  ;;  %v8121_v42 = vadd.f32 %v7979_v24, %v7971_v51  ;;  %v8134_v3 = vadd.f32 %v8009_v26, %v7987_v23 }
 0x369   : > { %v4725_v49 = vadd.f32 %v6276_v6, %v4519_v4  ;;  %v4517_v45 = vadd.f32 %v4390_v11, %v4288_v20  ;;  %v8138_v51 = vadd.f32 %v8013_v38, %v7993_v53  ;;  %v8143_v24 = vadd.f32 %v8019_v62, %v7997_v52  ;;  %v8149_v36 = vpop.f32.mrf.mxu0  ;;  %v8542_v52 = vld [vmem:[#allocation17_spill] sm:$0xff]  ;;  %v8543_v62 = vld [vmem:[#allocation8_spill] sm:$0xff] }
 0x36a   : > { %v6243_v54 = vpop.f32.mrf.mxu1  ;;  %v8147_v23 = vadd.f32 %v8541_v9, %v8003_v50  ;;  %v8156_v35 = vadd.f32 %v8543_v62, %v8542_v52 }
 0x36b   : > { %v4764_v34 = vadd.f32 %v8084_v18, %v4725_v49  ;;  %v4723_v6 = vadd.f32 %v4596_v8, %v4517_v45  ;;  %v4520_v4 = vadd.f32 %v6243_v54, %v4291_v47 }
 0x36c   : > { %v4393_v30 = vpop.f32.mrf.mxu1 }
 0x36d   : > { %v4833_v14 = vrot.slane %v4764_v34, 7  ;;  %v4762_v63 = vadd.f32 %v8084_v18, %v4723_v6  ;;  %v5311_v55 = vmul.f32 %v4764_v34, %v4764_v34  ;;  %v4726_v44 = vadd.f32 %v6277_v41, %v4520_v4 }
 0x36e   : > { %v4518_v31 = vadd.f32 %v4393_v30, %v4289_v33  ;;  %v6246_v0 = vpop.f32.mrf.mxu1  ;;  %v5242_v50 = vsel %vm2984_vm8, %v4764_v34, 0.0 }
 0x36f   : > { %v4930_v56 = vsel %vm2609_vm5, 0.0, %v4833_v14  ;;  %v4830_v10 = vrot.slane %v4762_v63, 7  ;;  %v5309_v8 = vmul.f32 %v4762_v63, %v4762_v63  ;;  %v4765_v26 = vadd.f32 %v8084_v18, %v4726_v44 }
 0x370   : > { %v5767_v32 = vpack.c.bf16 %v4930_v56, %v4930_v56  ;;  %v4724_v53 = vadd.f32 %v8047_v43, %v4518_v31  ;;  %v4406_v38 = vpop.f32.mrf.mxu1  ;;  %v4523_v20 = vadd.f32 %v6246_v0, %v4294_v29  ;;  %v5344_v47 = vsel %vm2984_vm8, %v5311_v55, 0.0 }
 0x371   : > { %v4929_v41 = vsel %vm2609_vm5, 0.0, %v4830_v10  ;;  %v4521_v11 = vadd.f32 %v4406_v38, %v4292_v17  ;;  %v4834_v45 = vrot.slane %v4765_v26, 7  ;;  %v5239_v43 = vsel %vm2984_vm8, %v4762_v63, 0.0  ;;  %v8166_v17 = vpop.f32.mrf.mxu0 }
 0x372   : > { %5191 = vst.msk [vmem:[%s7867_s24 + $0x18] sm:$0xf] %vm5183_vm11, %v5767_v32  ;;  %v5764_v49 = vpack.c.bf16 %v4929_v41, %v4929_v41  ;;  %v6247_v60 = vpop.f32.mrf.mxu1  ;;  %v4763_v33 = vadd.f32 %v8084_v18, %v4724_v53  ;;  %v4729_v29 = vadd.f32 %v8053_v22, %v4523_v20  ;;  %v5341_v34 = vsel %vm2984_vm8, %v5309_v8, 0.0 }
 0x373   : > { %v4727_v54 = vadd.f32 %v8059_v2, %v4521_v11  ;;  %v4835_v6 = vsel %vm2609_vm5, %v4833_v14, %v4834_v45  ;;  %v4947_v4 = vsel %vm2609_vm5, %v4834_v45, 0.0  ;;  %v4524_v30 = vadd.f32 %v6247_v60, %v4295_v13  ;;  %v8185_v38 = vpop.f32.mrf.mxu0 }
 0x374   : > { %5188 = vst.msk [vmem:[%s7867_s24 + $0xc] sm:$0xf] %vm5183_vm11, %v5764_v49  ;;  %v4409_v63 = vpop.f32.mrf.mxu1  ;;  %v5768_v55 = vpack.c.bf16 %v4835_v6, %v4835_v6  ;;  %v5769_v44 = vpack.c.bf16 %v4947_v4, %v4947_v4  ;;  %v5312_v31 = vmul.f32 %v4765_v26, %v4765_v26  ;;  %v4831_v22 = vrot.slane %v4763_v33, 7 }
 0x375   : > { %v5240_v2 = vsel %vm2984_vm8, %v4763_v33, 0.0  ;;  %v5310_v0 = vmul.f32 %v4763_v33, %v4763_v33  ;;  %v4768_v56 = vadd.f32 %v8084_v18, %v4729_v29  ;;  %v8176_v9 = vadd.f32 %v8084_v18, %v4727_v54 }
 0x376   : > { %v6250_v32 = vpop.f32.mrf.mxu1  ;;  %5192 = vst.msk [vmem:[%s7867_s24 + $0x1c] sm:$0xf] %vm5183_vm11, %v5768_v55  ;;  %v4832_v13 = vsel %vm2609_vm5, %v4830_v10, %v4831_v22  ;;  %v4946_v14 = vsel %vm2609_vm5, %v4831_v22, 0.0  ;;  %v5241_v8 = vadd.f32 %v5240_v2, %v5239_v43  ;;  %v4730_v53 = vadd.f32 %v8065_v40, %v4524_v30 }
 0x377   : > { %5193 = vst.msk [vmem:[%s7867_s24 + $0x20] sm:$0x1] %vm5186_vm12, %v5769_v44  ;;  %v5765_v41 = vpack.c.bf16 %v4832_v13, %v4832_v13  ;;  %v5766_v20 = vpack.c.bf16 %v4946_v14, %v4946_v14  ;;  %v5342_v11 = vsel %vm2984_vm8, %v5310_v0, 0.0  ;;  %v4839_v52 = vrot.slane %v4768_v56, 7 }
 0x378   : > { %v4422_v62 = vpop.f32.mrf.mxu1  ;;  %v5244_v49 = vsel %vm2984_vm8, %v4765_v26, 0.0  ;;  %v5346_v45 = vsel %vm2984_vm8, %v5312_v31, 0.0  ;;  %v5243_v60 = vadd.f32 %v5242_v50, %v5241_v8  ;;  %v5343_v33 = vadd.f32 %v5342_v11, %v5341_v34  ;;  %v8199_v34 = vpop.f32.mrf.mxu0 }
 0x379   : > { %5189 = vst.msk [vmem:[%s7867_s24 + $0x10] sm:$0xf] %vm5183_vm11, %v5765_v41  ;;  %v4932_v40 = vsel %vm2609_vm5, 0.0, %v4839_v52  ;;  %v5250_v10 = vsel %vm2984_vm8, %v4768_v56, 0.0  ;;  %v4836_v43 = vrot.slane %v8176_v9, 7  ;;  %v5313_v29 = vmul.f32 %v8176_v9, %v8176_v9 }
 0x37a   : > { %5190 = vst.msk [vmem:[%s7867_s24 + $0x14] sm:$0x1] %vm5186_vm12, %v5766_v20  ;;  %v6251_v54 = vpop.f32.mrf.mxu1  ;;  %v5345_v26 = vadd.f32 %v5344_v47, %v5343_v33  ;;  %v5773_v6 = vpack.c.bf16 %v4932_v40, %v4932_v40  ;;  %v5315_v4 = vmul.f32 %v4768_v56, %v4768_v56  ;;  %v5245_v50 = vadd.f32 %v5244_v49, %v5243_v60  ;;  %v8216_v11 = vpop.f32.mrf.mxu0 }
 0x37b   : > { %v4931_v30 = vsel %vm2609_vm5, 0.0, %v4836_v43  ;;  %v5246_v55 = vsel %vm2984_vm8, %v8176_v9, 0.0  ;;  %v4769_v44 = vadd.f32 %v8084_v18, %v4730_v53  ;;  %v4522_v31 = vadd.f32 %v4409_v63, %v8098_v27 }
 0x37c   : > { %v4425_v22 = vpop.f32.mrf.mxu1  ;;  %5197 = vst.msk [vmem:[%s7867_s24 + $0x30] sm:$0xf] %vm5183_vm11, %v5773_v6  ;;  %v5770_v2 = vpack.c.bf16 %v4931_v30, %v4931_v30  ;;  %v5247_v47 = vadd.f32 %v5246_v55, %v5245_v50  ;;  %v5347_v0 = vadd.f32 %v5346_v45, %v5345_v26  ;;  %v4527_v56 = vadd.f32 %v6250_v32, %v8102_v46  ;;  %v8232_v50 = vpop.f32.mrf.mxu0 }
 0x37d   : > { %v5348_v13 = vsel %vm2984_vm8, %v5313_v29, 0.0  ;;  %v4840_v14 = vrot.slane %v4769_v44, 7  ;;  %v5316_v8 = vmul.f32 %v4769_v44, %v4769_v44  ;;  %v4728_v41 = vadd.f32 %v8071_v25, %v4522_v31 }
 0x37e   : > { %v6254_v20 = vpop.f32.mrf.mxu1  ;;  %5194 = vst.msk [vmem:[%s7867_s24 + $0x24] sm:$0xf] %vm5183_vm11, %v5770_v2  ;;  %v5349_v9 = vadd.f32 %v5348_v13, %v5347_v0  ;;  %v4733_v27 = vadd.f32 %v8079_v7, %v4527_v56  ;;  %v4525_v63 = vadd.f32 %v4422_v62, %v8107_v58  ;;  %v4528_v53 = vadd.f32 %v6251_v54, %v8113_v37 }
 0x37f   : > { %v5352_v46 = vsel %vm2984_vm8, %v5315_v4, 0.0  ;;  %v4841_v32 = vsel %vm2609_vm5, %v4839_v52, %v4840_v14  ;;  %v4949_v25 = vsel %vm2609_vm5, %v4840_v14, 0.0  ;;  %v4767_v49 = vadd.f32 %v8084_v18, %v4728_v41 }
 0x380   : > { %v4438_v45 = vpop.f32.mrf.mxu1  ;;  %v5774_v60 = vpack.c.bf16 %v4841_v32, %v4841_v32  ;;  %v5775_v33 = vpack.c.bf16 %v4949_v25, %v4949_v25  ;;  %v4772_v7 = vadd.f32 %v8084_v18, %v4733_v27  ;;  %v4731_v58 = vadd.f32 %v8109_v1, %v4525_v63  ;;  %v8248_v32 = vpop.f32.mrf.mxu0 }
 0x381   : > { %v5252_v37 = vsel %vm2984_vm8, %v4769_v44, 0.0  ;;  %v4837_v62 = vrot.slane %v4767_v49, 7  ;;  %v5248_v40 = vsel %vm2984_vm8, %v4767_v49, 0.0  ;;  %v5314_v29 = vmul.f32 %v4767_v49, %v4767_v49 }
 0x382   : > { %v6255_v54 = vpop.f32.mrf.mxu1  ;;  %5198 = vst.msk [vmem:[%s7867_s24 + $0x34] sm:$0xf] %vm5183_vm11, %v5774_v60  ;;  %v5354_v52 = vsel %vm2984_vm8, %v5316_v8, 0.0  ;;  %v5249_v26 = vadd.f32 %v5248_v40, %v5247_v47  ;;  %v4845_v6 = vrot.slane %v4772_v7, 7  ;;  %v4734_v4 = vadd.f32 %v8149_v36, %v4528_v53 }
 0x383   : > { %5199 = vst.msk [vmem:[%s7867_s24 + $0x38] sm:$0x1] %vm5186_vm12, %v5775_v33  ;;  %v4838_v1 = vsel %vm2609_vm5, %v4836_v43, %v4837_v62  ;;  %v4948_v30 = vsel %vm2609_vm5, %v4837_v62, 0.0  ;;  %v5350_v55 = vsel %vm2984_vm8, %v5314_v29, 0.0  ;;  %v4770_v44 = vadd.f32 %v8084_v18, %v4731_v58 }
 0x384   : > { %v8238_v31 = vpop.f32.mrf.mxu1  ;;  %v5771_v2 = vpack.c.bf16 %v4838_v1, %v4838_v1  ;;  %v5772_v0 = vpack.c.bf16 %v4948_v30, %v4948_v30  ;;  %v5251_v47 = vadd.f32 %v5250_v10, %v5249_v26  ;;  %v5351_v56 = vadd.f32 %v5350_v55, %v5349_v9 }
 0x385   : > { %v4934_v36 = vsel %vm2609_vm5, 0.0, %v4845_v6  ;;  %v5319_v13 = vmul.f32 %v4772_v7, %v4772_v7  ;;  %v4842_v14 = vrot.slane %v4770_v44, 7  ;;  %v5254_v8 = vsel %vm2984_vm8, %v4770_v44, 0.0 }
 0x386   : > { %v8242_v43 = vpop.f32.mrf.mxu1  ;;  %5195 = vst.msk [vmem:[%s7867_s24 + $0x28] sm:$0xf] %vm5183_vm11, %v5771_v2  ;;  %v5353_v41 = vadd.f32 %v5352_v46, %v5351_v56  ;;  %v5779_v27 = vpack.c.bf16 %v4934_v36, %v4934_v36  ;;  %v5253_v63 = vadd.f32 %v5252_v37, %v5251_v47  ;;  %v5317_v53 = vmul.f32 %v4770_v44, %v4770_v44 }
 0x387   : > { %5196 = vst.msk [vmem:[%s7867_s24 + $0x2c] sm:$0x1] %vm5186_vm12, %v5772_v0  ;;  %v4933_v10 = vsel %vm2609_vm5, 0.0, %v4842_v14  ;;  %v4773_v9 = vadd.f32 %v8084_v18, %v4734_v4  ;;  %v4526_v25 = vadd.f32 %v4425_v22, %v8117_v57  ;;  %v4531_v49 = vadd.f32 %v6254_v20, %v8121_v42 }
 0x388   : > { %v8254_v60 = vpop.f32.mrf.mxu1  ;;  %5203 = vst.msk [vmem:[%s7867_s24 + $0x48] sm:$0xf] %vm5183_vm11, %v5779_v27  ;;  %v5258_v46 = vsel %vm2984_vm8, %v4772_v7, 0.0  ;;  %v5776_v33 = vpack.c.bf16 %v4933_v10, %v4933_v10  ;;  %v5255_v58 = vadd.f32 %v5254_v8, %v5253_v63  ;;  %v5355_v37 = vadd.f32 %v5354_v52, %v5353_v41  ;;  %v8268_v7 = vpop.f32.mrf.mxu0 }
 0x389   : > { %v5356_v62 = vsel %vm2984_vm8, %v5317_v53, 0.0  ;;  %v4846_v40 = vrot.slane %v4773_v9, 7  ;;  %v5320_v29 = vmul.f32 %v4773_v9, %v4773_v9  ;;  %v4732_v26 = vadd.f32 %v8166_v17, %v4526_v25 }
 0x38a   : > { %v8261_v4 = vpop.f32.mrf.mxu1  ;;  %5200 = vst.msk [vmem:[%s7867_s24 + $0x3c] sm:$0xf] %vm5183_vm11, %v5776_v33  ;;  %v5357_v57 = vadd.f32 %v5356_v62, %v5355_v37  ;;  %v4737_v42 = vadd.f32 %v8185_v38, %v4531_v49  ;;  %v4529_v22 = vadd.f32 %v4438_v45, %v8125_v28  ;;  %v4532_v20 = vadd.f32 %v6255_v54, %v8130_v21 }
 0x38b   : > { %v5360_v52 = vsel %vm2984_vm8, %v5319_v13, 0.0  ;;  %v4847_v1 = vsel %vm2609_vm5, %v4845_v6, %v4846_v40  ;;  %v4951_v17 = vsel %vm2609_vm5, %v4846_v40, 0.0  ;;  %v4771_v30 = vadd.f32 %v8084_v18, %v4732_v26  ;;  %v6293_v13 = vpop.f32.mrf.mxu0 }
 0x38c   : > { %v8274_v55 = vpop.f32.mrf.mxu1  ;;  %v5780_v44 = vpack.c.bf16 %v4847_v1, %v4847_v1  ;;  %v5781_v38 = vpack.c.bf16 %v4951_v17, %v4951_v17  ;;  %v4776_v28 = vadd.f32 %v8084_v18, %v4737_v42  ;;  %v4735_v45 = vadd.f32 %v8199_v34, %v4529_v22 }
 0x38d   : > { %v5260_v21 = vsel %vm2984_vm8, %v4773_v9, 0.0  ;;  %v4843_v54 = vrot.slane %v4771_v30, 7  ;;  %v5256_v2 = vsel %vm2984_vm8, %v4771_v30, 0.0  ;;  %v5318_v0 = vmul.f32 %v4771_v30, %v4771_v30 }
 0x38e   : > { %5204 = vst.msk [vmem:[%s7867_s24 + $0x4c] sm:$0xf] %vm5183_vm11, %v5780_v44  ;;  %v5362_v6 = vsel %vm2984_vm8, %v5320_v29, 0.0  ;;  %v5257_v47 = vadd.f32 %v5256_v2, %v5255_v58  ;;  %v4851_v56 = vrot.slane %v4776_v28, 7  ;;  %v4738_v36 = vadd.f32 %v8216_v11, %v4532_v20  ;;  %v8290_v63 = vpop.f32.mrf.mxu1  ;;  %v8298_v29 = vpop.f32.mrf.mxu0 }
 0x38f   : > { %5205 = vst.msk [vmem:[%s7867_s24 + $0x50] sm:$0x1] %vm5186_vm12, %v5781_v38  ;;  %v4844_v34 = vsel %vm2609_vm5, %v4842_v14, %v4843_v54  ;;  %v4950_v8 = vsel %vm2609_vm5, %v4843_v54, 0.0  ;;  %v5358_v41 = vsel %vm2984_vm8, %v5318_v0, 0.0  ;;  %v4774_v27 = vadd.f32 %v8084_v18, %v4735_v45 }
 0x390   : > { %v5777_v53 = vpack.c.bf16 %v4844_v34, %v4844_v34  ;;  %v5778_v10 = vpack.c.bf16 %v4950_v8, %v4950_v8  ;;  %v5259_v9 = vadd.f32 %v5258_v46, %v5257_v47  ;;  %v5359_v25 = vadd.f32 %v5358_v41, %v5357_v57  ;;  %v8306_v22 = vpop.f32.mrf.mxu1 }
 0x391   : > { %v4936_v49 = vsel %vm2609_vm5, 0.0, %v4851_v56  ;;  %v5323_v11 = vmul.f32 %v4776_v28, %v4776_v28  ;;  %v4848_v33 = vrot.slane %v4774_v27, 7  ;;  %v5262_v58 = vsel %vm2984_vm8, %v4774_v27, 0.0 }
 0x392   : > { %5201 = vst.msk [vmem:[%s7867_s24 + $0x40] sm:$0xf] %vm5183_vm11, %v5777_v53  ;;  %v5361_v14 = vadd.f32 %v5360_v52, %v5359_v25  ;;  %v5785_v37 = vpack.c.bf16 %v4936_v49, %v4936_v49  ;;  %v5261_v62 = vadd.f32 %v5260_v21, %v5259_v9  ;;  %v5321_v40 = vmul.f32 %v4774_v27, %v4774_v27  ;;  %v6263_v0 = vpop.f32.mrf.mxu1 }
 0x393   : > { %5202 = vst.msk [vmem:[%s7867_s24 + $0x44] sm:$0x1] %vm5186_vm12, %v5778_v10  ;;  %v4935_v46 = vsel %vm2609_vm5, 0.0, %v4848_v33  ;;  %v4777_v26 = vadd.f32 %v8084_v18, %v4738_v36  ;;  %v4530_v57 = vadd.f32 %v8238_v31, %v8134_v3  ;;  %v4535_v42 = vadd.f32 %v8242_v43, %v8138_v51 }
 0x394   : > { %5209 = vst.msk [vmem:[%s7867_s24 + $0x60] sm:$0xf] %vm5183_vm11, %v5785_v37  ;;  %v5266_v20 = vsel %vm2984_vm8, %v4776_v28, 0.0  ;;  %v5782_v52 = vpack.c.bf16 %v4935_v46, %v4935_v46  ;;  %v5263_v1 = vadd.f32 %v5262_v58, %v5261_v62  ;;  %v5363_v17 = vadd.f32 %v5362_v6, %v5361_v14  ;;  %v6296_v28 = vpop.f32.mrf.mxu0  ;;  %v8337_v25 = vpop.f32.mrf.mxu1 }
 0x395   : > { %v5364_v30 = vsel %vm2984_vm8, %v5321_v40, 0.0  ;;  %v4852_v44 = vrot.slane %v4777_v26, 7  ;;  %v5324_v38 = vmul.f32 %v4777_v26, %v4777_v26  ;;  %v4736_v45 = vadd.f32 %v8232_v50, %v4530_v57 }
 0x396   : > { %5206 = vst.msk [vmem:[%s7867_s24 + $0x54] sm:$0xf] %vm5183_vm11, %v5782_v52  ;;  %v5365_v3 = vadd.f32 %v5364_v30, %v5363_v17  ;;  %v4741_v51 = vadd.f32 %v8248_v32, %v4535_v42  ;;  %v4533_v31 = vadd.f32 %v8254_v60, %v8143_v24  ;;  %v4536_v43 = vadd.f32 %v8261_v4, %v8147_v23  ;;  %v4676_v27 = vpop.f32.mrf.mxu0  ;;  %v6266_v30 = vpop.f32.mrf.mxu1 }
 0x397   : > { %v5368_v21 = vsel %vm2984_vm8, %v5323_v11, 0.0  ;;  %v4853_v54 = vsel %vm2609_vm5, %v4851_v56, %v4852_v44  ;;  %v4953_v50 = vsel %vm2609_vm5, %v4852_v44, 0.0  ;;  %v4775_v2 = vadd.f32 %v8084_v18, %v4736_v45 }
 0x398   : > { %v5786_v6 = vpack.c.bf16 %v4853_v54, %v4853_v54  ;;  %v5787_v32 = vpack.c.bf16 %v4953_v50, %v4953_v50  ;;  %v4780_v47 = vadd.f32 %v8084_v18, %v4741_v51  ;;  %v4739_v24 = vadd.f32 %v8268_v7, %v4533_v31  ;;  %v6297_v42 = vpop.f32.mrf.mxu0 }
 0x399   : > { %v5268_v60 = vsel %vm2984_vm8, %v4777_v26, 0.0  ;;  %v4849_v23 = vrot.slane %v4775_v2, 7  ;;  %v5264_v4 = vsel %vm2984_vm8, %v4775_v2, 0.0  ;;  %v5322_v36 = vmul.f32 %v4775_v2, %v4775_v2 }
 0x39a   : > { %5210 = vst.msk [vmem:[%s7867_s24 + $0x64] sm:$0xf] %vm5183_vm11, %v5786_v6  ;;  %v5370_v56 = vsel %vm2984_vm8, %v5324_v38, 0.0  ;;  %v5265_v34 = vadd.f32 %v5264_v4, %v5263_v1  ;;  %v4857_v8 = vrot.slane %v4780_v47, 7  ;;  %v4742_v41 = vadd.f32 %v6293_v13, %v4536_v43  ;;  %v4679_v54 = vpop.f32.mrf.mxu0 }
 0x39b   : > { %5211 = vst.msk [vmem:[%s7867_s24 + $0x68] sm:$0x1] %vm5186_vm12, %v5787_v32  ;;  %v4850_v7 = vsel %vm2609_vm5, %v4848_v33, %v4849_v23  ;;  %v4952_v53 = vsel %vm2609_vm5, %v4849_v23, 0.0  ;;  %v5366_v10 = vsel %vm2984_vm8, %v5322_v36, 0.0  ;;  %v4778_v9 = vadd.f32 %v8084_v18, %v4739_v24  ;;  %v4486_v32 = vpop.f32.mrf.mxu1 }
 0x39c   : > { %v5783_v49 = vpack.c.bf16 %v4850_v7, %v4850_v7  ;;  %v5784_v11 = vpack.c.bf16 %v4952_v53, %v4952_v53  ;;  %v5267_v58 = vadd.f32 %v5266_v20, %v5265_v34  ;;  %v5367_v14 = vadd.f32 %v5366_v10, %v5365_v3  ;;  %v6300_v34 = vpop.f32.mrf.mxu0 }
 0x39d   : > { %v4938_v37 = vsel %vm2609_vm5, 0.0, %v4857_v8  ;;  %v5327_v13 = vmul.f32 %v4780_v47, %v4780_v47  ;;  %v4854_v62 = vrot.slane %v4778_v9, 7  ;;  %v5270_v40 = vsel %vm2984_vm8, %v4778_v9, 0.0  ;;  %v6267_v53 = vpop.f32.mrf.mxu1 }
 0x39e   : > { %5207 = vst.msk [vmem:[%s7867_s24 + $0x58] sm:$0xf] %vm5183_vm11, %v5783_v49  ;;  %v5369_v33 = vadd.f32 %v5368_v21, %v5367_v14  ;;  %v5791_v46 = vpack.c.bf16 %v4938_v37, %v4938_v37  ;;  %v5269_v26 = vadd.f32 %v5268_v60, %v5267_v58  ;;  %v5325_v57 = vmul.f32 %v4778_v9, %v4778_v9 }
 0x39f   : > { %5208 = vst.msk [vmem:[%s7867_s24 + $0x5c] sm:$0x1] %vm5186_vm12, %v5784_v11  ;;  %v4937_v20 = vsel %vm2609_vm5, 0.0, %v4854_v62  ;;  %v4781_v52 = vadd.f32 %v8084_v18, %v4742_v41  ;;  %v4534_v1 = vadd.f32 %v8274_v55, %v8156_v35  ;;  %v4539_v17 = vadd.f32 %v8290_v63, %v8041_v61 }
 0x3a0   : > { %5215 = vst.msk [vmem:[%s7867_s24 + $0x78] sm:$0xf] %vm5183_vm11, %v5791_v46  ;;  %v5274_v44 = vsel %vm2984_vm8, %v4780_v47, 0.0  ;;  %v5788_v38 = vpack.c.bf16 %v4937_v20, %v4937_v20  ;;  %v5271_v45 = vadd.f32 %v5270_v40, %v5269_v26  ;;  %v5371_v3 = vadd.f32 %v5370_v56, %v5369_v33  ;;  %v4692_v26 = vpop.f32.mrf.mxu0 }
 0x3a1   : > { %v5372_v51 = vsel %vm2984_vm8, %v5325_v57, 0.0  ;;  %v4858_v31 = vrot.slane %v4781_v52, 7  ;;  %v5328_v43 = vmul.f32 %v4781_v52, %v4781_v52  ;;  %v4740_v21 = vadd.f32 %v8298_v29, %v4534_v1  ;;  %v4489_v1 = vpop.f32.mrf.mxu1 }
 0x3a2   : > { %5212 = vst.msk [vmem:[%s7867_s24 + $0x6c] sm:$0xf] %vm5183_vm11, %v5788_v38  ;;  %v5373_v35 = vadd.f32 %v5372_v51, %v5371_v3  ;;  %v4745_v55 = vadd.f32 %v6296_v28, %v4539_v17  ;;  %v4537_v61 = vadd.f32 %v8306_v22, %v8043_v48  ;;  %v4540_v63 = vadd.f32 %v6263_v0, %v8045_v39 }
 0x3a3   : > { %v5376_v50 = vsel %vm2984_vm8, %v5327_v13, 0.0  ;;  %v4859_v2 = vsel %vm2609_vm5, %v4857_v8, %v4858_v31  ;;  %v4955_v6 = vsel %vm2609_vm5, %v4858_v31, 0.0  ;;  %v4779_v29 = vadd.f32 %v8084_v18, %v4740_v21 }
 0x3a4   : > { %v5792_v47 = vpack.c.bf16 %v4859_v2, %v4859_v2  ;;  %v5793_v24 = vpack.c.bf16 %v4955_v6, %v4955_v6  ;;  %v4784_v28 = vadd.f32 %v8084_v18, %v4745_v55  ;;  %v4743_v60 = vadd.f32 %v4676_v27, %v4537_v61 }
 0x3a5   : > { %v5276_v48 = vsel %vm2984_vm8, %v4781_v52, 0.0  ;;  %v4855_v22 = vrot.slane %v4779_v29, 7  ;;  %v5272_v39 = vsel %vm2984_vm8, %v4779_v29, 0.0  ;;  %v5326_v0 = vmul.f32 %v4779_v29, %v4779_v29 }
 0x3a6   : > { %5216 = vst.msk [vmem:[%s7867_s24 + $0x7c] sm:$0xf] %vm5183_vm11, %v5792_v47  ;;  %v5378_v23 = vsel %vm2984_vm8, %v5328_v43, 0.0  ;;  %v5273_v4 = vadd.f32 %v5272_v39, %v5271_v45  ;;  %v4863_v36 = vrot.slane %v4784_v28, 7  ;;  %v4746_v56 = vadd.f32 %v6297_v42, %v4540_v63  ;;  %v6270_v63 = vpop.f32.mrf.mxu1 }
 0x3a7   : > { %5217 = vst.msk [vmem:[%s7867_s24 + $0x80] sm:$0x1] %vm5186_vm12, %v5793_v24  ;;  %v4856_v8 = vsel %vm2609_vm5, %v4854_v62, %v4855_v22  ;;  %v4954_v41 = vsel %vm2609_vm5, %v4855_v22, 0.0  ;;  %v5374_v27 = vsel %vm2984_vm8, %v5326_v0, 0.0  ;;  %v4782_v7 = vadd.f32 %v8084_v18, %v4743_v60 }
 0x3a8   : > { %v5789_v10 = vpack.c.bf16 %v4856_v8, %v4856_v8  ;;  %v5790_v9 = vpack.c.bf16 %v4954_v41, %v4954_v41  ;;  %v5275_v49 = vadd.f32 %v5274_v44, %v5273_v4  ;;  %v5375_v11 = vadd.f32 %v5374_v27, %v5373_v35  ;;  %v4502_v4 = vpop.f32.mrf.mxu1 }
 0x3a9   : > { %v4940_v58 = vsel %vm2609_vm5, 0.0, %v4863_v36  ;;  %v5331_v14 = vmul.f32 %v4784_v28, %v4784_v28  ;;  %v4860_v37 = vrot.slane %v4782_v7, 7  ;;  %v5278_v13 = vsel %vm2984_vm8, %v4782_v7, 0.0 }
 0x3aa   : > { %5213 = vst.msk [vmem:[%s7867_s24 + $0x70] sm:$0xf] %vm5183_vm11, %v5789_v10  ;;  %v5377_v62 = vadd.f32 %v5376_v50, %v5375_v11  ;;  %v5797_v40 = vpack.c.bf16 %v4940_v58, %v4940_v58  ;;  %v5277_v33 = vadd.f32 %v5276_v48, %v5275_v49  ;;  %v5329_v46 = vmul.f32 %v4782_v7, %v4782_v7 }
 0x3ab   : > { %5214 = vst.msk [vmem:[%s7867_s24 + $0x74] sm:$0x1] %vm5186_vm12, %v5790_v9  ;;  %v4939_v57 = vsel %vm2609_vm5, 0.0, %v4860_v37  ;;  %v4785_v42 = vadd.f32 %v8084_v18, %v4746_v56  ;;  %v4538_v20 = vadd.f32 %v8337_v25, %v8049_v15  ;;  %v4543_v52 = vadd.f32 %v6266_v30, %v8051_v16  ;;  %v6301_v25 = vpop.f32.mrf.mxu0 }
 0x3ac   : > { %5221 = vst.msk [vmem:[%s7867_s24 + $0x90] sm:$0xf] %vm5183_vm11, %v5797_v40  ;;  %v5794_v17 = vpack.c.bf16 %v4939_v57, %v4939_v57  ;;  %v5279_v44 = vadd.f32 %v5278_v13, %v5277_v33  ;;  %v5379_v38 = vadd.f32 %v5378_v23, %v5377_v62  ;;  %v5282_v45 = vsel %vm2984_vm8, %v4784_v28, 0.0  ;;  %v8544_v13 = vld [vmem:[#allocation2_spill] sm:$0xff]  ;;  %v8545_v40 = vld [vmem:[#allocation9_spill] sm:$0xff] }
 0x3ad   : > { %v5380_v3 = vsel %vm2984_vm8, %v5329_v46, 0.0  ;;  %v4864_v51 = vrot.slane %v4785_v42, 7  ;;  %v4744_v31 = vadd.f32 %v4679_v54, %v4538_v20  ;;  %v4749_v21 = vadd.f32 %v6300_v34, %v4543_v52  ;;  %v4695_v48 = vpop.f32.mrf.mxu0  ;;  %v6271_v46 = vpop.f32.mrf.mxu1 }
 0x3ae   : > { %5218 = vst.msk [vmem:[%s7867_s24 + $0x84] sm:$0xf] %vm5183_vm11, %v5794_v17  ;;  %v5381_v43 = vadd.f32 %v5380_v3, %v5379_v38  ;;  %v4541_v15 = vadd.f32 %v4486_v32, %v8055_v5  ;;  %v4544_v16 = vadd.f32 %v6267_v53, %v8057_v59  ;;  %v5384_v30 = vsel %vm2984_vm8, %v5331_v14, 0.0 }
 0x3af   : > { %v4865_v35 = vsel %vm2609_vm5, %v4863_v36, %v4864_v51  ;;  %v4957_v55 = vsel %vm2609_vm5, %v4864_v51, 0.0  ;;  %v4783_v61 = vadd.f32 %v8084_v18, %v4744_v31  ;;  %v4788_v2 = vadd.f32 %v8084_v18, %v4749_v21  ;;  %v6304_v41 = vpop.f32.mrf.mxu0 }
 0x3b0   : > { %v5798_v54 = vpack.c.bf16 %v4865_v35, %v4865_v35  ;;  %v5799_v50 = vpack.c.bf16 %v4957_v55, %v4957_v55  ;;  %v4747_v6 = vadd.f32 %v4692_v26, %v4541_v15  ;;  %v5332_v5 = vmul.f32 %v4785_v42, %v4785_v42 }
 0x3b1   : > { %v4861_v29 = vrot.slane %v4783_v61, 7  ;;  %v5280_v59 = vsel %vm2984_vm8, %v4783_v61, 0.0  ;;  %v5330_v32 = vmul.f32 %v4783_v61, %v4783_v61  ;;  %v5284_v47 = vsel %vm2984_vm8, %v4785_v42, 0.0  ;;  %v4708_v20 = vpop.f32.mrf.mxu0 }
 0x3b2   : > { %5222 = vst.msk [vmem:[%s7867_s24 + $0x94] sm:$0xf] %vm5183_vm11, %v5798_v54  ;;  %v5281_v24 = vadd.f32 %v5280_v59, %v5279_v44  ;;  %v4869_v28 = vrot.slane %v4788_v2, 7  ;;  %v4750_v60 = vadd.f32 %v6301_v25, %v4544_v16  ;;  %v4786_v23 = vadd.f32 %v8084_v18, %v4747_v6 }
 0x3b3   : > { %5223 = vst.msk [vmem:[%s7867_s24 + $0x98] sm:$0x1] %vm5186_vm12, %v5799_v50  ;;  %v4862_v22 = vsel %vm2609_vm5, %v4860_v37, %v4861_v29  ;;  %v4956_v39 = vsel %vm2609_vm5, %v4861_v29, 0.0  ;;  %v5382_v0 = vsel %vm2984_vm8, %v5330_v32, 0.0  ;;  %v5386_v27 = vsel %vm2984_vm8, %v5332_v5, 0.0  ;;  %v6305_v55 = vpop.f32.mrf.mxu0 }
 0x3b4   : > { %v5795_v36 = vpack.c.bf16 %v4862_v22, %v4862_v22  ;;  %v5796_v56 = vpack.c.bf16 %v4956_v39, %v4956_v39  ;;  %v5283_v34 = vadd.f32 %v5282_v45, %v5281_v24  ;;  %v5383_v8 = vadd.f32 %v5382_v0, %v5381_v43 }
 0x3b5   : > { %v4942_v7 = vsel %vm2609_vm5, 0.0, %v4869_v28  ;;  %v4866_v53 = vrot.slane %v4786_v23, 7  ;;  %v5286_v10 = vsel %vm2984_vm8, %v4786_v23, 0.0  ;;  %v5333_v58 = vmul.f32 %v4786_v23, %v4786_v23 }
 0x3b6   : > { %5219 = vst.msk [vmem:[%s7867_s24 + $0x88] sm:$0xf] %vm5183_vm11, %v5795_v36  ;;  %v5385_v9 = vadd.f32 %v5384_v30, %v5383_v8  ;;  %v5803_v49 = vpack.c.bf16 %v4942_v7, %v4942_v7  ;;  %v5285_v11 = vadd.f32 %v5284_v47, %v5283_v34  ;;  %v4789_v37 = vadd.f32 %v8084_v18, %v4750_v60  ;;  %v8546_v7 = vld [vmem:[#allocation3_spill] sm:$0xff] }
 0x3b7   : > { %5220 = vst.msk [vmem:[%s7867_s24 + $0x8c] sm:$0x1] %vm5186_vm12, %v5796_v56  ;;  %v4941_v14 = vsel %vm2609_vm5, 0.0, %v4866_v53  ;;  %v4542_v62 = vadd.f32 %v4489_v1, %v8544_v13  ;;  %v4547_v33 = vadd.f32 %v6270_v63, %v8545_v40  ;;  %v5335_v52 = vmul.f32 %v4788_v2, %v4788_v2 }
 0x3b8   : > { %5227 = vst.msk [vmem:[%s7867_s24 + $0xa8] sm:$0xf] %vm5183_vm11, %v5803_v49  ;;  %v5800_v26 = vpack.c.bf16 %v4941_v14, %v4941_v14  ;;  %v5287_v57 = vadd.f32 %v5286_v10, %v5285_v11  ;;  %v5387_v42 = vadd.f32 %v5386_v27, %v5385_v9  ;;  %v5388_v17 = vsel %vm2984_vm8, %v5333_v58, 0.0  ;;  %v4711_v10 = vpop.f32.mrf.mxu0 }
 0x3b9   : > { %v4870_v44 = vrot.slane %v4789_v37, 7  ;;  %v4748_v38 = vadd.f32 %v4695_v48, %v4542_v62  ;;  %v4753_v3 = vadd.f32 %v6304_v41, %v4547_v33  ;;  %v4545_v1 = vadd.f32 %v4502_v4, %v8067_v19  ;;  %v4505_v48 = vpop.f32.mrf.mxu1 }
 0x3ba   : > { %5224 = vst.msk [vmem:[%s7867_s24 + $0x9c] sm:$0xf] %vm5183_vm11, %v5800_v26  ;;  %v5389_v45 = vadd.f32 %v5388_v17, %v5387_v42  ;;  %v4548_v51 = vadd.f32 %v6271_v46, %v8069_v12  ;;  %v5290_v31 = vsel %vm2984_vm8, %v4788_v2, 0.0  ;;  %v5336_v61 = vmul.f32 %v4789_v37, %v4789_v37 }
 0x3bb   : > { %v4871_v43 = vsel %vm2609_vm5, %v4869_v28, %v4870_v44  ;;  %v4959_v21 = vsel %vm2609_vm5, %v4870_v44, 0.0  ;;  %v4787_v15 = vadd.f32 %v8084_v18, %v4748_v38  ;;  %v4792_v30 = vadd.f32 %v8084_v18, %v4753_v3 }
 0x3bc   : > { %v5804_v16 = vpack.c.bf16 %v4871_v43, %v4871_v43  ;;  %v5805_v25 = vpack.c.bf16 %v4959_v21, %v4959_v21  ;;  %v4751_v35 = vadd.f32 %v4708_v20, %v4545_v1  ;;  %v5392_v54 = vsel %vm2984_vm8, %v5335_v52, 0.0 }
 0x3bd   : > { %v4867_v19 = vrot.slane %v4787_v15, 7  ;;  %v5288_v63 = vsel %vm2984_vm8, %v4787_v15, 0.0  ;;  %v5334_v12 = vmul.f32 %v4787_v15, %v4787_v15  ;;  %v4875_v2 = vrot.slane %v4792_v30, 7 }
 0x3be   : > { %5228 = vst.msk [vmem:[%s7867_s24 + $0xac] sm:$0xf] %vm5183_vm11, %v5804_v16  ;;  %v5289_v50 = vadd.f32 %v5288_v63, %v5287_v57  ;;  %v4754_v6 = vadd.f32 %v6305_v55, %v4548_v51  ;;  %v4790_v32 = vadd.f32 %v8084_v18, %v4751_v35  ;;  %v5292_v22 = vsel %vm2984_vm8, %v4789_v37, 0.0 }
 0x3bf   : > { %5229 = vst.msk [vmem:[%s7867_s24 + $0xb0] sm:$0x1] %vm5186_vm12, %v5805_v25  ;;  %v4868_v5 = vsel %vm2609_vm5, %v4866_v53, %v4867_v19  ;;  %v4958_v29 = vsel %vm2609_vm5, %v4867_v19, 0.0  ;;  %v5390_v59 = vsel %vm2984_vm8, %v5334_v12, 0.0  ;;  %v5394_v39 = vsel %vm2984_vm8, %v5336_v61, 0.0 }
 0x3c0   : > { %v5801_v47 = vpack.c.bf16 %v4868_v5, %v4868_v5  ;;  %v5802_v24 = vpack.c.bf16 %v4958_v29, %v4958_v29  ;;  %v5291_v28 = vadd.f32 %v5290_v31, %v5289_v50  ;;  %v5391_v60 = vadd.f32 %v5390_v59, %v5389_v45 }
 0x3c1   : > { %v4944_v0 = vsel %vm2609_vm5, 0.0, %v4875_v2  ;;  %v4872_v23 = vrot.slane %v4790_v32, 7  ;;  %v5337_v34 = vmul.f32 %v4790_v32, %v4790_v32  ;;  %v5294_v41 = vsel %vm2984_vm8, %v4790_v32, 0.0 }
 0x3c2   : > { %5225 = vst.msk [vmem:[%s7867_s24 + $0xa0] sm:$0xf] %vm5183_vm11, %v5801_v47  ;;  %v5393_v4 = vadd.f32 %v5392_v54, %v5391_v60  ;;  %v5809_v36 = vpack.c.bf16 %v4944_v0, %v4944_v0  ;;  %v5293_v56 = vadd.f32 %v5292_v22, %v5291_v28  ;;  %v4793_v27 = vadd.f32 %v8084_v18, %v4754_v6 }
 0x3c3   : > { %5226 = vst.msk [vmem:[%s7867_s24 + $0xa4] sm:$0x1] %vm5186_vm12, %v5802_v24  ;;  %v4943_v8 = vsel %vm2609_vm5, 0.0, %v4872_v23  ;;  %v4546_v53 = vadd.f32 %v4505_v48, %v8546_v7  ;;  %v5396_v58 = vsel %vm2984_vm8, %v5337_v34, 0.0  ;;  %v5339_v57 = vmul.f32 %v4792_v30, %v4792_v30 }
 0x3c4   : > { %5233 = vst.msk [vmem:[%s7867_s24 + $0xc0] sm:$0xf] %vm5183_vm11, %v5809_v36  ;;  %v5806_v9 = vpack.c.bf16 %v4943_v8, %v4943_v8  ;;  %v5295_v49 = vadd.f32 %v5294_v41, %v5293_v56  ;;  %v5395_v11 = vadd.f32 %v5394_v39, %v5393_v4  ;;  %v4876_v14 = vrot.slane %v4793_v27, 7 }
 0x3c5   : > { %v4752_v37 = vadd.f32 %v4711_v10, %v4546_v53  ;;  %v5298_v17 = vsel %vm2984_vm8, %v4792_v30, 0.0  ;;  %v5340_v38 = vmul.f32 %v4793_v27, %v4793_v27  ;;  %v5400_v21 = vsel %vm2984_vm8, %v5339_v57, 0.0 }
 0x3c6   : > { %5230 = vst.msk [vmem:[%s7867_s24 + $0xb4] sm:$0xf] %vm5183_vm11, %v5806_v9  ;;  %v5397_v13 = vadd.f32 %v5396_v58, %v5395_v11  ;;  %v4877_v62 = vsel %vm2609_vm5, %v4875_v2, %v4876_v14  ;;  %v4961_v40 = vsel %vm2609_vm5, %v4876_v14, 0.0  ;;  %v5300_v15 = vsel %vm2984_vm8, %v4793_v27, 0.0 }
 0x3c7   : > { %v4791_v33 = vadd.f32 %v8084_v18, %v4752_v37  ;;  %v5810_v46 = vpack.c.bf16 %v4877_v62, %v4877_v62  ;;  %v5811_v26 = vpack.c.bf16 %v4961_v40, %v4961_v40  ;;  %v5402_v30 = vsel %vm2984_vm8, %v5340_v38, 0.0 }
 0x3c9   : > { %v4873_v42 = vrot.slane %v4791_v33, 7  ;;  %v5296_v20 = vsel %vm2984_vm8, %v4791_v33, 0.0  ;;  %v5338_v52 = vmul.f32 %v4791_v33, %v4791_v33  ;;  %5234 = vst.msk [vmem:[%s7867_s24 + $0xc4] sm:$0xf] %vm5183_vm11, %v5810_v46 }
 0x3ca   : > { %5235 = vst.msk [vmem:[%s7867_s24 + $0xc8] sm:$0x1] %vm5186_vm12, %v5811_v26  ;;  %v5297_v44 = vadd.f32 %v5296_v20, %v5295_v49 }
 0x3cb   : > { %v4874_v45 = vsel %vm2609_vm5, %v4872_v23, %v4873_v42  ;;  %v4960_v18 = vsel %vm2609_vm5, %v4873_v42, 0.0  ;;  %v5398_v3 = vsel %vm2984_vm8, %v5338_v52, 0.0 }
 0x3cc   : > { %v5807_v1 = vpack.c.bf16 %v4874_v45, %v4874_v45  ;;  %v5808_v51 = vpack.c.bf16 %v4960_v18, %v4960_v18  ;;  %v5299_v31 = vadd.f32 %v5298_v17, %v5297_v44  ;;  %v5399_v43 = vadd.f32 %v5398_v3, %v5397_v13 }
 0x3ce   : > { %5231 = vst.msk [vmem:[%s7867_s24 + $0xb8] sm:$0xf] %vm5183_vm11, %v5807_v1  ;;  %v5301_v16 = vadd.f32 %v5300_v15, %v5299_v31  ;;  %v5401_v25 = vadd.f32 %v5400_v21, %v5399_v43 }
 0x3cf   : > { %5232 = vst.msk [vmem:[%s7867_s24 + $0xbc] sm:$0x1] %vm5186_vm12, %v5808_v51 }
 0x3d0   : > { %v5302_v35 = vrot.slane %v5301_v16, 4  ;;  %v5403_v55 = vadd.f32 %v5402_v30, %v5401_v25 }
 0x3d2   : > { %v5303_v61 = vadd.f32 %v5302_v35, %v5301_v16  ;;  %v5404_v19 = vrot.slane %v5403_v55, 4 }
 0x3d4   : > { %v5304_v63 = vrot.slane %v5303_v61, 2  ;;  %v5405_v12 = vadd.f32 %v5404_v19, %v5403_v55 }
 0x3d6   : > { %v5305_v54 = vadd.f32 %v5304_v63, %v5303_v61  ;;  %v5406_v50 = vrot.slane %v5405_v12, 2 }
 0x3d8   : > { %v5306_v2 = vrot.slane %v5305_v54, 1  ;;  %v5407_v6 = vadd.f32 %v5406_v50, %v5405_v12 }
 0x3da   : > { %v5307_v5 = vadd.f32 %v5306_v2, %v5305_v54  ;;  %v5408_v29 = vrot.slane %v5407_v6, 1 }
 0x3dc   : > { %5308 = vst.msk [vmem:[%s339_s9] sm:$0x1] %vm5186_vm12, %v5307_v5  ;;  %v5409_v59 = vadd.f32 %v5408_v29, %v5407_v6 }
 0x3de   : > { %5410 = vst.msk [vmem:[%s342_s12] sm:$0x1] %vm5186_vm12, %v5409_v59 }
 0x3df PF: > { %s19_s27 = sadd.s32 1, %s6361_s27  }
 0x3e0   : > { %p16_p4 = scmp.ge.s32.totalorder %s19_s27, 4  }
 0x3e2   :  { %18 = sbr.rel (!%p16_p4) target bundleno = 1 (0x1), region = 105 }

</bundles_post_ra>
